<compile_context>
chip_gen: v6e
topology: v6e:2x2x1
jax: 0.10.0
libtpu: 0.0.40
codegen_flags: <defaults>
</compile_context>

<pallas_src>
import functools

import jax
import jax.numpy as jnp
from jax.experimental import pallas as pl
from jax.experimental.pallas import tpu as pltpu


# ----------------------------------------------------------------------------
# small static helpers
# ----------------------------------------------------------------------------
def _round_up(x, m):
    return ((x + m - 1) // m) * m


def _pick_time_chunk(T, max_chunk=16):
    """Largest divisor of T that is <= max_chunk (time-chunk size for the recurrent grid)."""
    tt = 1
    for d in range(1, min(T, max_chunk) + 1):
        if T % d == 0:
            tt = d
    return tt


def _pick_batch_block(Bp, target=64):
    """Largest multiple-of-8 divisor of Bp that is <= target."""
    bb = 8
    d = 8
    while d <= min(Bp, target):
        if Bp % d == 0:
            bb = d
        d += 8
    return bb


def _largest_div8_leq(n, cap):
    """Largest multiple-of-8 divisor of n that is <= cap (n is a multiple of 8)."""
    best = 8
    d = 8
    while d <= min(n, cap):
        if n % d == 0:
            best = d
        d += 8
    return best


# ----------------------------------------------------------------------------
# Kernel 1: hoisted input projection  G = X @ W_ih^T + b  (fully parallel, big MXU matmul)
# ----------------------------------------------------------------------------
def _proj_kernel(x_ref, w_ref, b_ref, o_ref):
    o_ref[...] = (
        jnp.dot(x_ref[...], w_ref[...], preferred_element_type=jnp.float32)
        + b_ref[...]
    ).astype(o_ref.dtype)


def input_projection(x2, w_ih_t, b, tm):
    """x2: (M, E) bf16; w_ih_t: (E, 4Hp) bf16; b: (1, 4Hp) f32 -> (M, 4Hp) f32."""
    M, E = x2.shape
    G4 = w_ih_t.shape[1]
    return pl.pallas_call(
        _proj_kernel,
        out_shape=jax.ShapeDtypeStruct((M, G4), jnp.float32),
        grid=(M // tm,),
        in_specs=[
            pl.BlockSpec((tm, E), lambda i: (i, 0)),
            pl.BlockSpec((E, G4), lambda i: (0, 0)),
            pl.BlockSpec((1, G4), lambda i: (0, 0)),
        ],
        out_specs=pl.BlockSpec((tm, G4), lambda i: (i, 0)),
        compiler_params=pltpu.CompilerParams(dimension_semantics=("parallel",)),
    )(x2, w_ih_t, b)


# ----------------------------------------------------------------------------
# Shared LSTM cell math (gate order matches torch.nn.LSTM: [i, f, g, o]).
# Gate slices are Hp (=128k) aligned -> free lane selects.
# ----------------------------------------------------------------------------
def _lstm_cell(g_pre, h_prev, c_prev, w_hh_ref, hp):
    gates = g_pre.astype(jnp.float32) + jnp.dot(
        h_prev.astype(w_hh_ref.dtype), w_hh_ref[...],
        preferred_element_type=jnp.float32)
    i_g = jax.nn.sigmoid(gates[:, 0 * hp:1 * hp])
    f_g = jax.nn.sigmoid(gates[:, 1 * hp:2 * hp])
    g_g = jnp.tanh(gates[:, 2 * hp:3 * hp])
    o_g = jax.nn.sigmoid(gates[:, 3 * hp:4 * hp])
    c_new = f_g * c_prev + i_g * g_g
    h_new = o_g * jnp.tanh(c_new)
    return h_new, c_new


# ----------------------------------------------------------------------------
# Kernel 2: recurrent layer that emits the full hidden sequence (used for layers 0..L-2).
# grid = (batch_blocks [parallel], time_chunks [arbitrary]); h/c live in VMEM scratch.
# ----------------------------------------------------------------------------
def _lstm_seq_kernel(g_ref, w_hh_ref, out_ref, h_scr, c_scr, *, tt, hp):
    tc = pl.program_id(1)

    @pl.when(tc == 0)
    def _():
        h_scr[...] = jnp.zeros_like(h_scr)
        c_scr[...] = jnp.zeros_like(c_scr)

    def body(i, carry):
        h_new, c_new = _lstm_cell(g_ref[i], h_scr[...], c_scr[...], w_hh_ref, hp)
        h_scr[...] = h_new
        c_scr[...] = c_new
        out_ref[i] = h_new.astype(out_ref.dtype)
        return carry

    jax.lax.fori_loop(0, tt, body, 0, unroll=True)


def lstm_seq_layer(g, w_hh_t, *, tt, hp, out_dtype):
    """g: (T, Bp, 4Hp) f32; w_hh_t: (Hp, 4Hp) bf16 -> hidden sequence (T, Bp, Hp) out_dtype."""
    T, Bp, G4 = g.shape
    bb = _pick_batch_block(Bp)
    nb, nt = Bp // bb, T // tt
    kernel = functools.partial(_lstm_seq_kernel, tt=tt, hp=hp)
    return pl.pallas_call(
        kernel,
        out_shape=jax.ShapeDtypeStruct((T, Bp, hp), out_dtype),
        grid=(nb, nt),
        in_specs=[
            pl.BlockSpec((tt, bb, G4), lambda b, t: (t, b, 0)),
            pl.BlockSpec((hp, G4), lambda b, t: (0, 0)),
        ],
        out_specs=pl.BlockSpec((tt, bb, hp), lambda b, t: (t, b, 0)),
        scratch_shapes=[
            pltpu.VMEM((bb, hp), jnp.float32),
            pltpu.VMEM((bb, hp), jnp.float32),
        ],
        compiler_params=pltpu.CompilerParams(
            dimension_semantics=("parallel", "arbitrary")),
    )(g, w_hh_t)


# ----------------------------------------------------------------------------
# Kernel 3: last recurrent layer fused with the classifier.
# Never writes the (T, B, H) sequence; emits logits (Bp, C) from the final step.
# ----------------------------------------------------------------------------
def _lstm_last_kernel(g_ref, w_hh_ref, w_out_ref, b_out_ref, logit_ref,
                      h_scr, c_scr, *, tt, hp):
    tc = pl.program_id(1)

    @pl.when(tc == 0)
    def _():
        h_scr[...] = jnp.zeros_like(h_scr)
        c_scr[...] = jnp.zeros_like(c_scr)

    def body(i, carry):
        h_new, c_new = _lstm_cell(g_ref[i], h_scr[...], c_scr[...], w_hh_ref, hp)
        h_scr[...] = h_new
        c_scr[...] = c_new
        return carry

    jax.lax.fori_loop(0, tt, body, 0, unroll=True)

    @pl.when(tc == pl.num_programs(1) - 1)
    def _():
        h_last = h_scr[...].astype(w_out_ref.dtype)
        logit_ref[...] = (
            jnp.dot(h_last, w_out_ref[...], preferred_element_type=jnp.float32)
            + b_out_ref[...]
        ).astype(logit_ref.dtype)


def lstm_last_layer_classifier(g, w_hh_t, w_out_t, b_out, *, tt, hp):
    """g: (T, Bp, 4Hp) f32; w_hh_t: (Hp, 4Hp); w_out_t: (Hp, C); b_out: (1, C) -> (Bp, C) f32."""
    T, Bp, G4 = g.shape
    C = w_out_t.shape[1]
    bb = _pick_batch_block(Bp)
    nb, nt = Bp // bb, T // tt
    kernel = functools.partial(_lstm_last_kernel, tt=tt, hp=hp)
    return pl.pallas_call(
        kernel,
        out_shape=jax.ShapeDtypeStruct((Bp, C), jnp.float32),
        grid=(nb, nt),
        in_specs=[
            pl.BlockSpec((tt, bb, G4), lambda b, t: (t, b, 0)),
            pl.BlockSpec((hp, G4), lambda b, t: (0, 0)),
            pl.BlockSpec((hp, C), lambda b, t: (0, 0)),
            pl.BlockSpec((1, C), lambda b, t: (0, 0)),
        ],
        out_specs=pl.BlockSpec((bb, C), lambda b, t: (b, 0)),
        scratch_shapes=[
            pltpu.VMEM((bb, hp), jnp.float32),
            pltpu.VMEM((bb, hp), jnp.float32),
        ],
        compiler_params=pltpu.CompilerParams(
            dimension_semantics=("parallel", "arbitrary")),
    )(g, w_hh_t, w_out_t, b_out)


# ----------------------------------------------------------------------------
# Parameter init (torch-layout, deterministic) + one-time prep (transpose, gate-pad, bias-fuse).
# ----------------------------------------------------------------------------
def init_params(key, n_vocab, embed_dim, hidden_dim, n_layers, n_classes):
    keys = jax.random.split(key, 4 * n_layers + 3)
    ki = iter(keys)
    params = {
        "embed": 0.1 * jax.random.normal(next(ki), (n_vocab, embed_dim), jnp.float32),
        "lstm": [],
    }
    in_dim = embed_dim
    for _ in range(n_layers):
        w_ih = 0.1 * jax.random.normal(next(ki), (4 * hidden_dim, in_dim), jnp.float32)
        w_hh = 0.1 * jax.random.normal(next(ki), (4 * hidden_dim, hidden_dim), jnp.float32)
        b_ih = 0.1 * jax.random.normal(next(ki), (4 * hidden_dim,), jnp.float32)
        b_hh = 0.1 * jax.random.normal(next(ki), (4 * hidden_dim,), jnp.float32)
        params["lstm"].append((w_ih, w_hh, b_ih, b_hh))
        in_dim = hidden_dim
    params["out_w"] = 0.1 * jax.random.normal(next(ki), (n_classes, hidden_dim), jnp.float32)
    params["out_b"] = 0.1 * jax.random.normal(next(ki), (n_classes,), jnp.float32)
    return params


def _pad_gate_matrix(w, in_pad, H, Hp):
    """w: (4H, in_dim) torch layout -> transposed, gate-padded (in_pad, 4Hp). Padding is zero."""
    in_dim = w.shape[1]
    wt = jnp.transpose(w)  # (in_dim, 4H)
    out = jnp.zeros((in_pad, 4 * Hp), dtype=wt.dtype)
    for g in range(4):
        out = out.at[:in_dim, g * Hp:g * Hp + H].set(wt[:, g * H:(g + 1) * H])
    return out


def _pad_gate_bias(b, H, Hp):
    out = jnp.zeros((4 * Hp,), dtype=b.dtype)
    for g in range(4):
        out = out.at[g * Hp:g * Hp + H].set(b[g * H:(g + 1) * H])
    return out


def prepare_params(params, compute_dtype=jnp.bfloat16):
    """One-time: transpose, fuse biases, pad gates to 128-lane blocks, cast matmul operands."""
    H = params["lstm"][0][1].shape[1]      # w_hh: (4H, H)
    Hp = _round_up(H, 128)
    layers = []
    in_pad = params["embed"].shape[1]      # first layer consumes unpadded embed_dim
    for (w_ih, w_hh, b_ih, b_hh) in params["lstm"]:
        w_ih_t = _pad_gate_matrix(w_ih, in_pad, H, Hp).astype(compute_dtype)
        w_hh_t = _pad_gate_matrix(w_hh, Hp, H, Hp).astype(compute_dtype)
        b = _pad_gate_bias(b_ih + b_hh, H, Hp).astype(jnp.float32)[None, :]
        layers.append((w_ih_t, w_hh_t, b))
        in_pad = Hp                        # deeper layers consume the padded hidden
    C = params["out_w"].shape[0]
    w_out_t = jnp.zeros((Hp, C), jnp.float32).at[:H, :].set(
        jnp.transpose(params["out_w"])).astype(compute_dtype)
    return {
        "embed": params["embed"].astype(jnp.float32),
        "layers": layers,
        "out_w_t": w_out_t,
        "out_b": params["out_b"].astype(jnp.float32)[None, :],
        "H": H,
        "Hp": Hp,
        "compute_dtype": compute_dtype,
    }


# ----------------------------------------------------------------------------
# Forward
# ----------------------------------------------------------------------------
def basic_lstm_forward(prepped, x_ids):
    """x_ids: (B, T) int32 token ids -> logits (B, n_classes)."""
    B, T = x_ids.shape
    Hp = prepped["Hp"]
    cdt = prepped["compute_dtype"]
    Bp = _round_up(max(B, 8), 8)           # pad batch to full sublanes
    tt = _pick_time_chunk(T)

    # Embedding lookup (glue; gather in plain JAX), time-major, batch-padded, bf16 stream.
    x = jnp.take(prepped["embed"], x_ids, axis=0)          # (B, T, E) f32
    x = jnp.transpose(x, (1, 0, 2))                        # (T, B, E)
    if Bp > B:
        x = jnp.pad(x, ((0, 0), (0, Bp - B), (0, 0)))
    x = x.astype(cdt)                                      # (T, Bp, E)

    n_layers = len(prepped["layers"])
    logits_p = None
    for li, (w_ih_t, w_hh_t, b) in enumerate(prepped["layers"]):
        e_in = w_ih_t.shape[0]
        # Hoisted, fully parallel input projection over all T*Bp rows (one big MXU matmul).
        x2 = x.reshape(T * Bp, e_in)
        tm = _largest_div8_leq(T * Bp, 512)
        g = input_projection(x2, w_ih_t, b, tm=tm).reshape(T, Bp, 4 * Hp)   # f32 gate pre-acts
        if li < n_layers - 1:
            x = lstm_seq_layer(g, w_hh_t, tt=tt, hp=Hp, out_dtype=cdt)      # (T, Bp, Hp) bf16
        else:
            # Last layer: never materialize the hidden sequence; fuse the classifier.
            logits_p = lstm_last_layer_classifier(
                g, w_hh_t, prepped["out_w_t"], prepped["out_b"], tt=tt, hp=Hp)

    # dropout(h_t) in the PyTorch module is discarded -> identity here.
    return logits_p[:B]


# ----------------------------------------------------------------------------
# Pure-JAX reference mirroring the kernel's dtype behavior (bf16 matmul operands, f32 accum).
# ----------------------------------------------------------------------------
def _reference_forward(params, x_ids, compute_dtype=jnp.bfloat16):
    x = jnp.take(params["embed"], x_ids, axis=0).astype(compute_dtype)   # (B, T, E)
    B = x.shape[0]
    n_layers = len(params["lstm"])
    h_last = None
    for li, (w_ih, w_hh, b_ih, b_hh) in enumerate(params["lstm"]):
        H = w_hh.shape[1]
        w_ih_t = jnp.transpose(w_ih).astype(compute_dtype)
        w_hh_t = jnp.transpose(w_hh).astype(compute_dtype)
        b = (b_ih + b_hh).astype(jnp.float32)
        g_all = jnp.einsum("bte,ef->btf", x, w_ih_t,
                           preferred_element_type=jnp.float32) + b[None, None, :]
        g_tb = jnp.transpose(g_all, (1, 0, 2))                           # (T, B, 4H)

        def step(carry, g_t):
            h, c = carry
            gates = g_t + jnp.dot(h.astype(compute_dtype), w_hh_t,
                                  preferred_element_type=jnp.float32)
            i = jax.nn.sigmoid(gates[:, 0 * H:1 * H])
            f = jax.nn.sigmoid(gates[:, 1 * H:2 * H])
            g = jnp.tanh(gates[:, 2 * H:3 * H])
            o = jax.nn.sigmoid(gates[:, 3 * H:4 * H])
            c = f * c + i * g
            h = o * jnp.tanh(c)
            return (h, c), h

        init = (jnp.zeros((B, H), jnp.float32), jnp.zeros((B, H), jnp.float32))
        (h_fin, _), hs = jax.lax.scan(step, init, g_tb)
        if li < n_layers - 1:
            x = jnp.transpose(hs, (1, 0, 2)).astype(compute_dtype)
        else:
            h_last = h_fin
    w_out_t = jnp.transpose(params["out_w"]).astype(compute_dtype)
    return (jnp.dot(h_last.astype(compute_dtype), w_out_t,
                    preferred_element_type=jnp.float32)
            + params["out_b"][None, :])


if __name__ == "__main__":
    # Small, module-consistent shapes.
    n_vocab, embed_dim, hidden_dim, n_layers, n_classes = 50, 16, 32, 2, 4
    B, T = 2, 8

    key = jax.random.PRNGKey(0)
    k_param, k_ids = jax.random.split(key)
    params = init_params(k_param, n_vocab, embed_dim, hidden_dim, n_layers, n_classes)
    x_ids = jax.random.randint(k_ids, (B, T), 0, n_vocab, dtype=jnp.int32)

    prepped = prepare_params(params, compute_dtype=jnp.bfloat16)
    fwd = jax.jit(functools.partial(basic_lstm_forward, prepped))

    logits = jax.block_until_ready(fwd(x_ids))
    ref = jax.block_until_ready(_reference_forward(params, x_ids))

    assert logits.shape == (B, n_classes)
    assert jnp.allclose(logits, ref, atol=2e-3, rtol=2e-3), "mismatch vs JAX reference"
    print("KERNEL_OK")
</pallas_src>

<mosaic_0001>
module attributes {stable_mosaic.version = 11 : i64} {
  func.func @_lstm_seq_kernel(%arg0: i32, %arg1: i32, %arg2: memref<8x8x512xf32, #tpu.memory_space<vmem>>, %arg3: memref<128x512xbf16, #tpu.memory_space<vmem>>, %arg4: memref<8x8x128xbf16, #tpu.memory_space<vmem>>, %arg5: memref<8x128xf32, #tpu.memory_space<vmem>>, %arg6: memref<8x128xf32, #tpu.memory_space<vmem>>) attributes {dimension_semantics = [#tpu.dimension_semantics<parallel>, #tpu.dimension_semantics<arbitrary>], iteration_bounds = array<i64: 1, 1>, scalar_prefetch = 0 : i64, scratch_operands = 2 : i64, tpu.core_type = #tpu.core_type<tc>, window_params = [{transform_indices = @transform_0, window_bounds = array<i64: 8, 8, 512>}, {pipeline_mode = #tpu.pipeline_mode<synchronous>, transform_indices = @transform_1, window_bounds = array<i64: 128, 512>}, {transform_indices = @transform_2, window_bounds = array<i64: 8, 8, 128>}]} {
    %c0_i32 = arith.constant 0 : i32
    %0 = arith.cmpi eq, %arg1, %c0_i32 : i32
    %1 = arith.extui %0 : i1 to i32
    %c0_i32_0 = arith.constant 0 : i32
    %2 = arith.cmpi ne, %1, %c0_i32_0 : i32
    scf.if %2 {
      %cst_144 = arith.constant 0.000000e+00 : f32
      %331 = vector.broadcast %cst_144 : f32 to vector<8x128xf32>
      %c0_145 = arith.constant 0 : index
      %c0_146 = arith.constant 0 : index
      %332 = vector.load %arg5[%c0_145, %c0_146] : memref<8x128xf32, #tpu.memory_space<vmem>>, vector<8x128xf32>
      tpu.vector_store %arg5[%c0_145, %c0_146], %331 {strides = array<i32>} : memref<8x128xf32, #tpu.memory_space<vmem>>, vector<8x128xf32>,
      %cst_147 = arith.constant 0.000000e+00 : f32
      %333 = vector.broadcast %cst_147 : f32 to vector<8x128xf32>
      %c0_148 = arith.constant 0 : index
      %c0_149 = arith.constant 0 : index
      %334 = vector.load %arg6[%c0_148, %c0_149] : memref<8x128xf32, #tpu.memory_space<vmem>>, vector<8x128xf32>
      tpu.vector_store %arg6[%c0_148, %c0_149], %333 {strides = array<i32>} : memref<8x128xf32, #tpu.memory_space<vmem>>, vector<8x128xf32>,
    } else {
    }
    %c0_i32_1 = arith.constant 0 : i32
    %3 = arith.index_cast %c0_i32_1 : i32 to index
    %c0 = arith.constant 0 : index
    %c0_2 = arith.constant 0 : index
    %4 = vector.load %arg2[%3, %c0, %c0_2] : memref<8x8x512xf32, #tpu.memory_space<vmem>>, vector<1x8x512xf32>
    %5 = vector.shape_cast %4 : vector<1x8x512xf32> to vector<8x512xf32>
    %c0_3 = arith.constant 0 : index
    %c0_4 = arith.constant 0 : index
    %6 = vector.load %arg5[%c0_3, %c0_4] : memref<8x128xf32, #tpu.memory_space<vmem>>, vector<8x128xf32>
    %c0_5 = arith.constant 0 : index
    %c0_6 = arith.constant 0 : index
    %7 = vector.load %arg6[%c0_5, %c0_6] : memref<8x128xf32, #tpu.memory_space<vmem>>, vector<8x128xf32>
    %8 = arith.truncf %6 : vector<8x128xf32> to vector<8x128xbf16>
    %c0_7 = arith.constant 0 : index
    %c0_8 = arith.constant 0 : index
    %9 = vector.load %arg3[%c0_7, %c0_8] : memref<128x512xbf16, #tpu.memory_space<vmem>>, vector<128x512xbf16>
    %cst = arith.constant dense<0.000000e+00> : vector<8x512xf32>
    %10 = tpu.matmul %8, %9, %cst {dimension_numbers = #tpu.dot_dimension_numbers<[1], [0], [0], [1], [0, 0, 1, 1], [], []>} : vector<8x128xbf16>, vector<128x512xbf16>, vector<8x512xf32> -> vector<8x512xf32>
    %11 = arith.addf %5, %10 : vector<8x512xf32>
    %12 = vector.extract_strided_slice %11 {offsets = [0, 0], sizes = [8, 128], strides = [1, 1]} : vector<8x512xf32> to vector<8x128xf32>
    %13 = arith.negf %12 : vector<8x128xf32>
    %14 = math.exp %13 : vector<8x128xf32>
    %cst_9 = arith.constant 1.000000e+00 : f32
    %15 = vector.broadcast %cst_9 : f32 to vector<8x128xf32>
    %16 = arith.addf %15, %14 : vector<8x128xf32>
    %17 = arith.divf %15, %16 : vector<8x128xf32>
    %18 = vector.extract_strided_slice %11 {offsets = [0, 128], sizes = [8, 128], strides = [1, 1]} : vector<8x512xf32> to vector<8x128xf32>
    %19 = arith.negf %18 : vector<8x128xf32>
    %20 = math.exp %19 : vector<8x128xf32>
    %cst_10 = arith.constant 1.000000e+00 : f32
    %21 = vector.broadcast %cst_10 : f32 to vector<8x128xf32>
    %22 = arith.addf %21, %20 : vector<8x128xf32>
    %23 = arith.divf %21, %22 : vector<8x128xf32>
    %24 = vector.extract_strided_slice %11 {offsets = [0, 256], sizes = [8, 128], strides = [1, 1]} : vector<8x512xf32> to vector<8x128xf32>
    %25 = math.tanh %24 : vector<8x128xf32>
    %26 = vector.extract_strided_slice %11 {offsets = [0, 384], sizes = [8, 128], strides = [1, 1]} : vector<8x512xf32> to vector<8x128xf32>
    %27 = arith.negf %26 : vector<8x128xf32>
    %28 = math.exp %27 : vector<8x128xf32>
    %cst_11 = arith.constant 1.000000e+00 : f32
    %29 = vector.broadcast %cst_11 : f32 to vector<8x128xf32>
    %30 = arith.addf %29, %28 : vector<8x128xf32>
    %31 = arith.divf %29, %30 : vector<8x128xf32>
    %32 = arith.mulf %23, %7 : vector<8x128xf32>
    %33 = arith.mulf %17, %25 : vector<8x128xf32>
    %34 = arith.addf %32, %33 : vector<8x128xf32>
    %35 = math.tanh %34 : vector<8x128xf32>
    %36 = arith.mulf %31, %35 : vector<8x128xf32>
    %c0_12 = arith.constant 0 : index
    %c0_13 = arith.constant 0 : index
    %37 = vector.load %arg5[%c0_12, %c0_13] : memref<8x128xf32, #tpu.memory_space<vmem>>, vector<8x128xf32>
    tpu.vector_store %arg5[%c0_12, %c0_13], %36 {strides = array<i32>} : memref<8x128xf32, #tpu.memory_space<vmem>>, vector<8x128xf32>,
    %c0_14 = arith.constant 0 : index
    %c0_15 = arith.constant 0 : index
    %38 = vector.load %arg6[%c0_14, %c0_15] : memref<8x128xf32, #tpu.memory_space<vmem>>, vector<8x128xf32>
    tpu.vector_store %arg6[%c0_14, %c0_15], %34 {strides = array<i32>} : memref<8x128xf32, #tpu.memory_space<vmem>>, vector<8x128xf32>,
    %39 = arith.truncf %36 : vector<8x128xf32> to vector<8x128xbf16>
    %40 = arith.index_cast %c0_i32_1 : i32 to index
    %c0_16 = arith.constant 0 : index
    %c0_17 = arith.constant 0 : index
    %41 = vector.load %arg4[%40, %c0_16, %c0_17] : memref<8x8x128xbf16, #tpu.memory_space<vmem>>, vector<1x8x128xbf16>
    %42 = vector.shape_cast %41 : vector<1x8x128xbf16> to vector<8x128xbf16>
    %43 = vector.shape_cast %39 : vector<8x128xbf16> to vector<1x8x128xbf16>
    tpu.vector_store %arg4[%40, %c0_16, %c0_17], %43 {strides = array<i32>} : memref<8x8x128xbf16, #tpu.memory_space<vmem>>, vector<1x8x128xbf16>,
    %c1_i32 = arith.constant 1 : i32
    %44 = arith.index_cast %c1_i32 : i32 to index
    %c0_18 = arith.constant 0 : index
    %c0_19 = arith.constant 0 : index
    %45 = vector.load %arg2[%44, %c0_18, %c0_19] : memref<8x8x512xf32, #tpu.memory_space<vmem>>, vector<1x8x512xf32>
    %46 = vector.shape_cast %45 : vector<1x8x512xf32> to vector<8x512xf32>
    %c0_20 = arith.constant 0 : index
    %c0_21 = arith.constant 0 : index
    %47 = vector.load %arg5[%c0_20, %c0_21] : memref<8x128xf32, #tpu.memory_space<vmem>>, vector<8x128xf32>
    %c0_22 = arith.constant 0 : index
    %c0_23 = arith.constant 0 : index
    %48 = vector.load %arg6[%c0_22, %c0_23] : memref<8x128xf32, #tpu.memory_space<vmem>>, vector<8x128xf32>
    %49 = arith.truncf %47 : vector<8x128xf32> to vector<8x128xbf16>
    %c0_24 = arith.constant 0 : index
    %c0_25 = arith.constant 0 : index
    %50 = vector.load %arg3[%c0_24, %c0_25] : memref<128x512xbf16, #tpu.memory_space<vmem>>, vector<128x512xbf16>
    %cst_26 = arith.constant dense<0.000000e+00> : vector<8x512xf32>
    %51 = tpu.matmul %49, %50, %cst_26 {dimension_numbers = #tpu.dot_dimension_numbers<[1], [0], [0], [1], [0, 0, 1, 1], [], []>} : vector<8x128xbf16>, vector<128x512xbf16>, vector<8x512xf32> -> vector<8x512xf32>
    %52 = arith.addf %46, %51 : vector<8x512xf32>
    %53 = vector.extract_strided_slice %52 {offsets = [0, 0], sizes = [8, 128], strides = [1, 1]} : vector<8x512xf32> to vector<8x128xf32>
    %54 = arith.negf %53 : vector<8x128xf32>
    %55 = math.exp %54 : vector<8x128xf32>
    %cst_27 = arith.constant 1.000000e+00 : f32
    %56 = vector.broadcast %cst_27 : f32 to vector<8x128xf32>
    %57 = arith.addf %56, %55 : vector<8x128xf32>
    %58 = arith.divf %56, %57 : vector<8x128xf32>
    %59 = vector.extract_strided_slice %52 {offsets = [0, 128], sizes = [8, 128], strides = [1, 1]} : vector<8x512xf32> to vector<8x128xf32>
    %60 = arith.negf %59 : vector<8x128xf32>
    %61 = math.exp %60 : vector<8x128xf32>
    %cst_28 = arith.constant 1.000000e+00 : f32
    %62 = vector.broadcast %cst_28 : f32 to vector<8x128xf32>
    %63 = arith.addf %62, %61 : vector<8x128xf32>
    %64 = arith.divf %62, %63 : vector<8x128xf32>
    %65 = vector.extract_strided_slice %52 {offsets = [0, 256], sizes = [8, 128], strides = [1, 1]} : vector<8x512xf32> to vector<8x128xf32>
    %66 = math.tanh %65 : vector<8x128xf32>
    %67 = vector.extract_strided_slice %52 {offsets = [0, 384], sizes = [8, 128], strides = [1, 1]} : vector<8x512xf32> to vector<8x128xf32>
    %68 = arith.negf %67 : vector<8x128xf32>
    %69 = math.exp %68 : vector<8x128xf32>
    %cst_29 = arith.constant 1.000000e+00 : f32
    %70 = vector.broadcast %cst_29 : f32 to vector<8x128xf32>
    %71 = arith.addf %70, %69 : vector<8x128xf32>
    %72 = arith.divf %70, %71 : vector<8x128xf32>
    %73 = arith.mulf %64, %48 : vector<8x128xf32>
    %74 = arith.mulf %58, %66 : vector<8x128xf32>
    %75 = arith.addf %73, %74 : vector<8x128xf32>
    %76 = math.tanh %75 : vector<8x128xf32>
    %77 = arith.mulf %72, %76 : vector<8x128xf32>
    %c0_30 = arith.constant 0 : index
    %c0_31 = arith.constant 0 : index
    %78 = vector.load %arg5[%c0_30, %c0_31] : memref<8x128xf32, #tpu.memory_space<vmem>>, vector<8x128xf32>
    tpu.vector_store %arg5[%c0_30, %c0_31], %77 {strides = array<i32>} : memref<8x128xf32, #tpu.memory_space<vmem>>, vector<8x128xf32>,
    %c0_32 = arith.constant 0 : index
    %c0_33 = arith.constant 0 : index
    %79 = vector.load %arg6[%c0_32, %c0_33] : memref<8x128xf32, #tpu.memory_space<vmem>>, vector<8x128xf32>
    tpu.vector_store %arg6[%c0_32, %c0_33], %75 {strides = array<i32>} : memref<8x128xf32, #tpu.memory_space<vmem>>, vector<8x128xf32>,
    %80 = arith.truncf %77 : vector<8x128xf32> to vector<8x128xbf16>
    %81 = arith.index_cast %c1_i32 : i32 to index
    %c0_34 = arith.constant 0 : index
    %c0_35 = arith.constant 0 : index
    %82 = vector.load %arg4[%81, %c0_34, %c0_35] : memref<8x8x128xbf16, #tpu.memory_space<vmem>>, vector<1x8x128xbf16>
    %83 = vector.shape_cast %82 : vector<1x8x128xbf16> to vector<8x128xbf16>
    %84 = vector.shape_cast %80 : vector<8x128xbf16> to vector<1x8x128xbf16>
    tpu.vector_store %arg4[%81, %c0_34, %c0_35], %84 {strides = array<i32>} : memref<8x8x128xbf16, #tpu.memory_space<vmem>>, vector<1x8x128xbf16>,
    %c2_i32 = arith.constant 2 : i32
    %85 = arith.index_cast %c2_i32 : i32 to index
    %c0_36 = arith.constant 0 : index
    %c0_37 = arith.constant 0 : index
    %86 = vector.load %arg2[%85, %c0_36, %c0_37] : memref<8x8x512xf32, #tpu.memory_space<vmem>>, vector<1x8x512xf32>
    %87 = vector.shape_cast %86 : vector<1x8x512xf32> to vector<8x512xf32>
    %c0_38 = arith.constant 0 : index
    %c0_39 = arith.constant 0 : index
    %88 = vector.load %arg5[%c0_38, %c0_39] : memref<8x128xf32, #tpu.memory_space<vmem>>, vector<8x128xf32>
    %c0_40 = arith.constant 0 : index
    %c0_41 = arith.constant 0 : index
    %89 = vector.load %arg6[%c0_40, %c0_41] : memref<8x128xf32, #tpu.memory_space<vmem>>, vector<8x128xf32>
    %90 = arith.truncf %88 : vector<8x128xf32> to vector<8x128xbf16>
    %c0_42 = arith.constant 0 : index
    %c0_43 = arith.constant 0 : index
    %91 = vector.load %arg3[%c0_42, %c0_43] : memref<128x512xbf16, #tpu.memory_space<vmem>>, vector<128x512xbf16>
    %cst_44 = arith.constant dense<0.000000e+00> : vector<8x512xf32>
    %92 = tpu.matmul %90, %91, %cst_44 {dimension_numbers = #tpu.dot_dimension_numbers<[1], [0], [0], [1], [0, 0, 1, 1], [], []>} : vector<8x128xbf16>, vector<128x512xbf16>, vector<8x512xf32> -> vector<8x512xf32>
    %93 = arith.addf %87, %92 : vector<8x512xf32>
    %94 = vector.extract_strided_slice %93 {offsets = [0, 0], sizes = [8, 128], strides = [1, 1]} : vector<8x512xf32> to vector<8x128xf32>
    %95 = arith.negf %94 : vector<8x128xf32>
    %96 = math.exp %95 : vector<8x128xf32>
    %cst_45 = arith.constant 1.000000e+00 : f32
    %97 = vector.broadcast %cst_45 : f32 to vector<8x128xf32>
    %98 = arith.addf %97, %96 : vector<8x128xf32>
    %99 = arith.divf %97, %98 : vector<8x128xf32>
    %100 = vector.extract_strided_slice %93 {offsets = [0, 128], sizes = [8, 128], strides = [1, 1]} : vector<8x512xf32> to vector<8x128xf32>
    %101 = arith.negf %100 : vector<8x128xf32>
    %102 = math.exp %101 : vector<8x128xf32>
    %cst_46 = arith.constant 1.000000e+00 : f32
    %103 = vector.broadcast %cst_46 : f32 to vector<8x128xf32>
    %104 = arith.addf %103, %102 : vector<8x128xf32>
    %105 = arith.divf %103, %104 : vector<8x128xf32>
    %106 = vector.extract_strided_slice %93 {offsets = [0, 256], sizes = [8, 128], strides = [1, 1]} : vector<8x512xf32> to vector<8x128xf32>
    %107 = math.tanh %106 : vector<8x128xf32>
    %108 = vector.extract_strided_slice %93 {offsets = [0, 384], sizes = [8, 128], strides = [1, 1]} : vector<8x512xf32> to vector<8x128xf32>
    %109 = arith.negf %108 : vector<8x128xf32>
    %110 = math.exp %109 : vector<8x128xf32>
    %cst_47 = arith.constant 1.000000e+00 : f32
    %111 = vector.broadcast %cst_47 : f32 to vector<8x128xf32>
    %112 = arith.addf %111, %110 : vector<8x128xf32>
    %113 = arith.divf %111, %112 : vector<8x128xf32>
    %114 = arith.mulf %105, %89 : vector<8x128xf32>
    %115 = arith.mulf %99, %107 : vector<8x128xf32>
    %116 = arith.addf %114, %115 : vector<8x128xf32>
    %117 = math.tanh %116 : vector<8x128xf32>
    %118 = arith.mulf %113, %117 : vector<8x128xf32>
    %c0_48 = arith.constant 0 : index
    %c0_49 = arith.constant 0 : index
    %119 = vector.load %arg5[%c0_48, %c0_49] : memref<8x128xf32, #tpu.memory_space<vmem>>, vector<8x128xf32>
    tpu.vector_store %arg5[%c0_48, %c0_49], %118 {strides = array<i32>} : memref<8x128xf32, #tpu.memory_space<vmem>>, vector<8x128xf32>,
    %c0_50 = arith.constant 0 : index
    %c0_51 = arith.constant 0 : index
    %120 = vector.load %arg6[%c0_50, %c0_51] : memref<8x128xf32, #tpu.memory_space<vmem>>, vector<8x128xf32>
    tpu.vector_store %arg6[%c0_50, %c0_51], %116 {strides = array<i32>} : memref<8x128xf32, #tpu.memory_space<vmem>>, vector<8x128xf32>,
    %121 = arith.truncf %118 : vector<8x128xf32> to vector<8x128xbf16>
    %122 = arith.index_cast %c2_i32 : i32 to index
    %c0_52 = arith.constant 0 : index
    %c0_53 = arith.constant 0 : index
    %123 = vector.load %arg4[%122, %c0_52, %c0_53] : memref<8x8x128xbf16, #tpu.memory_space<vmem>>, vector<1x8x128xbf16>
    %124 = vector.shape_cast %123 : vector<1x8x128xbf16> to vector<8x128xbf16>
    %125 = vector.shape_cast %121 : vector<8x128xbf16> to vector<1x8x128xbf16>
    tpu.vector_store %arg4[%122, %c0_52, %c0_53], %125 {strides = array<i32>} : memref<8x8x128xbf16, #tpu.memory_space<vmem>>, vector<1x8x128xbf16>,
    %c3_i32 = arith.constant 3 : i32
    %126 = arith.index_cast %c3_i32 : i32 to index
    %c0_54 = arith.constant 0 : index
    %c0_55 = arith.constant 0 : index
    %127 = vector.load %arg2[%126, %c0_54, %c0_55] : memref<8x8x512xf32, #tpu.memory_space<vmem>>, vector<1x8x512xf32>
    %128 = vector.shape_cast %127 : vector<1x8x512xf32> to vector<8x512xf32>
    %c0_56 = arith.constant 0 : index
    %c0_57 = arith.constant 0 : index
    %129 = vector.load %arg5[%c0_56, %c0_57] : memref<8x128xf32, #tpu.memory_space<vmem>>, vector<8x128xf32>
    %c0_58 = arith.constant 0 : index
    %c0_59 = arith.constant 0 : index
    %130 = vector.load %arg6[%c0_58, %c0_59] : memref<8x128xf32, #tpu.memory_space<vmem>>, vector<8x128xf32>
    %131 = arith.truncf %129 : vector<8x128xf32> to vector<8x128xbf16>
    %c0_60 = arith.constant 0 : index
    %c0_61 = arith.constant 0 : index
    %132 = vector.load %arg3[%c0_60, %c0_61] : memref<128x512xbf16, #tpu.memory_space<vmem>>, vector<128x512xbf16>
    %cst_62 = arith.constant dense<0.000000e+00> : vector<8x512xf32>
    %133 = tpu.matmul %131, %132, %cst_62 {dimension_numbers = #tpu.dot_dimension_numbers<[1], [0], [0], [1], [0, 0, 1, 1], [], []>} : vector<8x128xbf16>, vector<128x512xbf16>, vector<8x512xf32> -> vector<8x512xf32>
    %134 = arith.addf %128, %133 : vector<8x512xf32>
    %135 = vector.extract_strided_slice %134 {offsets = [0, 0], sizes = [8, 128], strides = [1, 1]} : vector<8x512xf32> to vector<8x128xf32>
    %136 = arith.negf %135 : vector<8x128xf32>
    %137 = math.exp %136 : vector<8x128xf32>
    %cst_63 = arith.constant 1.000000e+00 : f32
    %138 = vector.broadcast %cst_63 : f32 to vector<8x128xf32>
    %139 = arith.addf %138, %137 : vector<8x128xf32>
    %140 = arith.divf %138, %139 : vector<8x128xf32>
    %141 = vector.extract_strided_slice %134 {offsets = [0, 128], sizes = [8, 128], strides = [1, 1]} : vector<8x512xf32> to vector<8x128xf32>
    %142 = arith.negf %141 : vector<8x128xf32>
    %143 = math.exp %142 : vector<8x128xf32>
    %cst_64 = arith.constant 1.000000e+00 : f32
    %144 = vector.broadcast %cst_64 : f32 to vector<8x128xf32>
    %145 = arith.addf %144, %143 : vector<8x128xf32>
    %146 = arith.divf %144, %145 : vector<8x128xf32>
    %147 = vector.extract_strided_slice %134 {offsets = [0, 256], sizes = [8, 128], strides = [1, 1]} : vector<8x512xf32> to vector<8x128xf32>
    %148 = math.tanh %147 : vector<8x128xf32>
    %149 = vector.extract_strided_slice %134 {offsets = [0, 384], sizes = [8, 128], strides = [1, 1]} : vector<8x512xf32> to vector<8x128xf32>
    %150 = arith.negf %149 : vector<8x128xf32>
    %151 = math.exp %150 : vector<8x128xf32>
    %cst_65 = arith.constant 1.000000e+00 : f32
    %152 = vector.broadcast %cst_65 : f32 to vector<8x128xf32>
    %153 = arith.addf %152, %151 : vector<8x128xf32>
    %154 = arith.divf %152, %153 : vector<8x128xf32>
    %155 = arith.mulf %146, %130 : vector<8x128xf32>
    %156 = arith.mulf %140, %148 : vector<8x128xf32>
    %157 = arith.addf %155, %156 : vector<8x128xf32>
    %158 = math.tanh %157 : vector<8x128xf32>
    %159 = arith.mulf %154, %158 : vector<8x128xf32>
    %c0_66 = arith.constant 0 : index
    %c0_67 = arith.constant 0 : index
    %160 = vector.load %arg5[%c0_66, %c0_67] : memref<8x128xf32, #tpu.memory_space<vmem>>, vector<8x128xf32>
    tpu.vector_store %arg5[%c0_66, %c0_67], %159 {strides = array<i32>} : memref<8x128xf32, #tpu.memory_space<vmem>>, vector<8x128xf32>,
    %c0_68 = arith.constant 0 : index
    %c0_69 = arith.constant 0 : index
    %161 = vector.load %arg6[%c0_68, %c0_69] : memref<8x128xf32, #tpu.memory_space<vmem>>, vector<8x128xf32>
    tpu.vector_store %arg6[%c0_68, %c0_69], %157 {strides = array<i32>} : memref<8x128xf32, #tpu.memory_space<vmem>>, vector<8x128xf32>,
    %162 = arith.truncf %159 : vector<8x128xf32> to vector<8x128xbf16>
    %163 = arith.index_cast %c3_i32 : i32 to index
    %c0_70 = arith.constant 0 : index
    %c0_71 = arith.constant 0 : index
    %164 = vector.load %arg4[%163, %c0_70, %c0_71] : memref<8x8x128xbf16, #tpu.memory_space<vmem>>, vector<1x8x128xbf16>
    %165 = vector.shape_cast %164 : vector<1x8x128xbf16> to vector<8x128xbf16>
    %166 = vector.shape_cast %162 : vector<8x128xbf16> to vector<1x8x128xbf16>
    tpu.vector_store %arg4[%163, %c0_70, %c0_71], %166 {strides = array<i32>} : memref<8x8x128xbf16, #tpu.memory_space<vmem>>, vector<1x8x128xbf16>,
    %c4_i32 = arith.constant 4 : i32
    %167 = arith.index_cast %c4_i32 : i32 to index
    %c0_72 = arith.constant 0 : index
    %c0_73 = arith.constant 0 : index
    %168 = vector.load %arg2[%167, %c0_72, %c0_73] : memref<8x8x512xf32, #tpu.memory_space<vmem>>, vector<1x8x512xf32>
    %169 = vector.shape_cast %168 : vector<1x8x512xf32> to vector<8x512xf32>
    %c0_74 = arith.constant 0 : index
    %c0_75 = arith.constant 0 : index
    %170 = vector.load %arg5[%c0_74, %c0_75] : memref<8x128xf32, #tpu.memory_space<vmem>>, vector<8x128xf32>
    %c0_76 = arith.constant 0 : index
    %c0_77 = arith.constant 0 : index
    %171 = vector.load %arg6[%c0_76, %c0_77] : memref<8x128xf32, #tpu.memory_space<vmem>>, vector<8x128xf32>
    %172 = arith.truncf %170 : vector<8x128xf32> to vector<8x128xbf16>
    %c0_78 = arith.constant 0 : index
    %c0_79 = arith.constant 0 : index
    %173 = vector.load %arg3[%c0_78, %c0_79] : memref<128x512xbf16, #tpu.memory_space<vmem>>, vector<128x512xbf16>
    %cst_80 = arith.constant dense<0.000000e+00> : vector<8x512xf32>
    %174 = tpu.matmul %172, %173, %cst_80 {dimension_numbers = #tpu.dot_dimension_numbers<[1], [0], [0], [1], [0, 0, 1, 1], [], []>} : vector<8x128xbf16>, vector<128x512xbf16>, vector<8x512xf32> -> vector<8x512xf32>
    %175 = arith.addf %169, %174 : vector<8x512xf32>
    %176 = vector.extract_strided_slice %175 {offsets = [0, 0], sizes = [8, 128], strides = [1, 1]} : vector<8x512xf32> to vector<8x128xf32>
    %177 = arith.negf %176 : vector<8x128xf32>
    %178 = math.exp %177 : vector<8x128xf32>
    %cst_81 = arith.constant 1.000000e+00 : f32
    %179 = vector.broadcast %cst_81 : f32 to vector<8x128xf32>
    %180 = arith.addf %179, %178 : vector<8x128xf32>
    %181 = arith.divf %179, %180 : vector<8x128xf32>
    %182 = vector.extract_strided_slice %175 {offsets = [0, 128], sizes = [8, 128], strides = [1, 1]} : vector<8x512xf32> to vector<8x128xf32>
    %183 = arith.negf %182 : vector<8x128xf32>
    %184 = math.exp %183 : vector<8x128xf32>
    %cst_82 = arith.constant 1.000000e+00 : f32
    %185 = vector.broadcast %cst_82 : f32 to vector<8x128xf32>
    %186 = arith.addf %185, %184 : vector<8x128xf32>
    %187 = arith.divf %185, %186 : vector<8x128xf32>
    %188 = vector.extract_strided_slice %175 {offsets = [0, 256], sizes = [8, 128], strides = [1, 1]} : vector<8x512xf32> to vector<8x128xf32>
    %189 = math.tanh %188 : vector<8x128xf32>
    %190 = vector.extract_strided_slice %175 {offsets = [0, 384], sizes = [8, 128], strides = [1, 1]} : vector<8x512xf32> to vector<8x128xf32>
    %191 = arith.negf %190 : vector<8x128xf32>
    %192 = math.exp %191 : vector<8x128xf32>
    %cst_83 = arith.constant 1.000000e+00 : f32
    %193 = vector.broadcast %cst_83 : f32 to vector<8x128xf32>
    %194 = arith.addf %193, %192 : vector<8x128xf32>
    %195 = arith.divf %193, %194 : vector<8x128xf32>
    %196 = arith.mulf %187, %171 : vector<8x128xf32>
    %197 = arith.mulf %181, %189 : vector<8x128xf32>
    %198 = arith.addf %196, %197 : vector<8x128xf32>
    %199 = math.tanh %198 : vector<8x128xf32>
    %200 = arith.mulf %195, %199 : vector<8x128xf32>
    %c0_84 = arith.constant 0 : index
    %c0_85 = arith.constant 0 : index
    %201 = vector.load %arg5[%c0_84, %c0_85] : memref<8x128xf32, #tpu.memory_space<vmem>>, vector<8x128xf32>
    tpu.vector_store %arg5[%c0_84, %c0_85], %200 {strides = array<i32>} : memref<8x128xf32, #tpu.memory_space<vmem>>, vector<8x128xf32>,
    %c0_86 = arith.constant 0 : index
    %c0_87 = arith.constant 0 : index
    %202 = vector.load %arg6[%c0_86, %c0_87] : memref<8x128xf32, #tpu.memory_space<vmem>>, vector<8x128xf32>
    tpu.vector_store %arg6[%c0_86, %c0_87], %198 {strides = array<i32>} : memref<8x128xf32, #tpu.memory_space<vmem>>, vector<8x128xf32>,
    %203 = arith.truncf %200 : vector<8x128xf32> to vector<8x128xbf16>
    %204 = arith.index_cast %c4_i32 : i32 to index
    %c0_88 = arith.constant 0 : index
    %c0_89 = arith.constant 0 : index
    %205 = vector.load %arg4[%204, %c0_88, %c0_89] : memref<8x8x128xbf16, #tpu.memory_space<vmem>>, vector<1x8x128xbf16>
    %206 = vector.shape_cast %205 : vector<1x8x128xbf16> to vector<8x128xbf16>
    %207 = vector.shape_cast %203 : vector<8x128xbf16> to vector<1x8x128xbf16>
    tpu.vector_store %arg4[%204, %c0_88, %c0_89], %207 {strides = array<i32>} : memref<8x8x128xbf16, #tpu.memory_space<vmem>>, vector<1x8x128xbf16>,
    %c5_i32 = arith.constant 5 : i32
    %208 = arith.index_cast %c5_i32 : i32 to index
    %c0_90 = arith.constant 0 : index
    %c0_91 = arith.constant 0 : index
    %209 = vector.load %arg2[%208, %c0_90, %c0_91] : memref<8x8x512xf32, #tpu.memory_space<vmem>>, vector<1x8x512xf32>
    %210 = vector.shape_cast %209 : vector<1x8x512xf32> to vector<8x512xf32>
    %c0_92 = arith.constant 0 : index
    %c0_93 = arith.constant 0 : index
    %211 = vector.load %arg5[%c0_92, %c0_93] : memref<8x128xf32, #tpu.memory_space<vmem>>, vector<8x128xf32>
    %c0_94 = arith.constant 0 : index
    %c0_95 = arith.constant 0 : index
    %212 = vector.load %arg6[%c0_94, %c0_95] : memref<8x128xf32, #tpu.memory_space<vmem>>, vector<8x128xf32>
    %213 = arith.truncf %211 : vector<8x128xf32> to vector<8x128xbf16>
    %c0_96 = arith.constant 0 : index
    %c0_97 = arith.constant 0 : index
    %214 = vector.load %arg3[%c0_96, %c0_97] : memref<128x512xbf16, #tpu.memory_space<vmem>>, vector<128x512xbf16>
    %cst_98 = arith.constant dense<0.000000e+00> : vector<8x512xf32>
    %215 = tpu.matmul %213, %214, %cst_98 {dimension_numbers = #tpu.dot_dimension_numbers<[1], [0], [0], [1], [0, 0, 1, 1], [], []>} : vector<8x128xbf16>, vector<128x512xbf16>, vector<8x512xf32> -> vector<8x512xf32>
    %216 = arith.addf %210, %215 : vector<8x512xf32>
    %217 = vector.extract_strided_slice %216 {offsets = [0, 0], sizes = [8, 128], strides = [1, 1]} : vector<8x512xf32> to vector<8x128xf32>
    %218 = arith.negf %217 : vector<8x128xf32>
    %219 = math.exp %218 : vector<8x128xf32>
    %cst_99 = arith.constant 1.000000e+00 : f32
    %220 = vector.broadcast %cst_99 : f32 to vector<8x128xf32>
    %221 = arith.addf %220, %219 : vector<8x128xf32>
    %222 = arith.divf %220, %221 : vector<8x128xf32>
    %223 = vector.extract_strided_slice %216 {offsets = [0, 128], sizes = [8, 128], strides = [1, 1]} : vector<8x512xf32> to vector<8x128xf32>
    %224 = arith.negf %223 : vector<8x128xf32>
    %225 = math.exp %224 : vector<8x128xf32>
    %cst_100 = arith.constant 1.000000e+00 : f32
    %226 = vector.broadcast %cst_100 : f32 to vector<8x128xf32>
    %227 = arith.addf %226, %225 : vector<8x128xf32>
    %228 = arith.divf %226, %227 : vector<8x128xf32>
    %229 = vector.extract_strided_slice %216 {offsets = [0, 256], sizes = [8, 128], strides = [1, 1]} : vector<8x512xf32> to vector<8x128xf32>
    %230 = math.tanh %229 : vector<8x128xf32>
    %231 = vector.extract_strided_slice %216 {offsets = [0, 384], sizes = [8, 128], strides = [1, 1]} : vector<8x512xf32> to vector<8x128xf32>
    %232 = arith.negf %231 : vector<8x128xf32>
    %233 = math.exp %232 : vector<8x128xf32>
    %cst_101 = arith.constant 1.000000e+00 : f32
    %234 = vector.broadcast %cst_101 : f32 to vector<8x128xf32>
    %235 = arith.addf %234, %233 : vector<8x128xf32>
    %236 = arith.divf %234, %235 : vector<8x128xf32>
    %237 = arith.mulf %228, %212 : vector<8x128xf32>
    %238 = arith.mulf %222, %230 : vector<8x128xf32>
    %239 = arith.addf %237, %238 : vector<8x128xf32>
    %240 = math.tanh %239 : vector<8x128xf32>
    %241 = arith.mulf %236, %240 : vector<8x128xf32>
    %c0_102 = arith.constant 0 : index
    %c0_103 = arith.constant 0 : index
    %242 = vector.load %arg5[%c0_102, %c0_103] : memref<8x128xf32, #tpu.memory_space<vmem>>, vector<8x128xf32>
    tpu.vector_store %arg5[%c0_102, %c0_103], %241 {strides = array<i32>} : memref<8x128xf32, #tpu.memory_space<vmem>>, vector<8x128xf32>,
    %c0_104 = arith.constant 0 : index
    %c0_105 = arith.constant 0 : index
    %243 = vector.load %arg6[%c0_104, %c0_105] : memref<8x128xf32, #tpu.memory_space<vmem>>, vector<8x128xf32>
    tpu.vector_store %arg6[%c0_104, %c0_105], %239 {strides = array<i32>} : memref<8x128xf32, #tpu.memory_space<vmem>>, vector<8x128xf32>,
    %244 = arith.truncf %241 : vector<8x128xf32> to vector<8x128xbf16>
    %245 = arith.index_cast %c5_i32 : i32 to index
    %c0_106 = arith.constant 0 : index
    %c0_107 = arith.constant 0 : index
    %246 = vector.load %arg4[%245, %c0_106, %c0_107] : memref<8x8x128xbf16, #tpu.memory_space<vmem>>, vector<1x8x128xbf16>
    %247 = vector.shape_cast %246 : vector<1x8x128xbf16> to vector<8x128xbf16>
    %248 = vector.shape_cast %244 : vector<8x128xbf16> to vector<1x8x128xbf16>
    tpu.vector_store %arg4[%245, %c0_106, %c0_107], %248 {strides = array<i32>} : memref<8x8x128xbf16, #tpu.memory_space<vmem>>, vector<1x8x128xbf16>,
    %c6_i32 = arith.constant 6 : i32
    %249 = arith.index_cast %c6_i32 : i32 to index
    %c0_108 = arith.constant 0 : index
    %c0_109 = arith.constant 0 : index
    %250 = vector.load %arg2[%249, %c0_108, %c0_109] : memref<8x8x512xf32, #tpu.memory_space<vmem>>, vector<1x8x512xf32>
    %251 = vector.shape_cast %250 : vector<1x8x512xf32> to vector<8x512xf32>
    %c0_110 = arith.constant 0 : index
    %c0_111 = arith.constant 0 : index
    %252 = vector.load %arg5[%c0_110, %c0_111] : memref<8x128xf32, #tpu.memory_space<vmem>>, vector<8x128xf32>
    %c0_112 = arith.constant 0 : index
    %c0_113 = arith.constant 0 : index
    %253 = vector.load %arg6[%c0_112, %c0_113] : memref<8x128xf32, #tpu.memory_space<vmem>>, vector<8x128xf32>
    %254 = arith.truncf %252 : vector<8x128xf32> to vector<8x128xbf16>
    %c0_114 = arith.constant 0 : index
    %c0_115 = arith.constant 0 : index
    %255 = vector.load %arg3[%c0_114, %c0_115] : memref<128x512xbf16, #tpu.memory_space<vmem>>, vector<128x512xbf16>
    %cst_116 = arith.constant dense<0.000000e+00> : vector<8x512xf32>
    %256 = tpu.matmul %254, %255, %cst_116 {dimension_numbers = #tpu.dot_dimension_numbers<[1], [0], [0], [1], [0, 0, 1, 1], [], []>} : vector<8x128xbf16>, vector<128x512xbf16>, vector<8x512xf32> -> vector<8x512xf32>
    %257 = arith.addf %251, %256 : vector<8x512xf32>
    %258 = vector.extract_strided_slice %257 {offsets = [0, 0], sizes = [8, 128], strides = [1, 1]} : vector<8x512xf32> to vector<8x128xf32>
    %259 = arith.negf %258 : vector<8x128xf32>
    %260 = math.exp %259 : vector<8x128xf32>
    %cst_117 = arith.constant 1.000000e+00 : f32
    %261 = vector.broadcast %cst_117 : f32 to vector<8x128xf32>
    %262 = arith.addf %261, %260 : vector<8x128xf32>
    %263 = arith.divf %261, %262 : vector<8x128xf32>
    %264 = vector.extract_strided_slice %257 {offsets = [0, 128], sizes = [8, 128], strides = [1, 1]} : vector<8x512xf32> to vector<8x128xf32>
    %265 = arith.negf %264 : vector<8x128xf32>
    %266 = math.exp %265 : vector<8x128xf32>
    %cst_118 = arith.constant 1.000000e+00 : f32
    %267 = vector.broadcast %cst_118 : f32 to vector<8x128xf32>
    %268 = arith.addf %267, %266 : vector<8x128xf32>
    %269 = arith.divf %267, %268 : vector<8x128xf32>
    %270 = vector.extract_strided_slice %257 {offsets = [0, 256], sizes = [8, 128], strides = [1, 1]} : vector<8x512xf32> to vector<8x128xf32>
    %271 = math.tanh %270 : vector<8x128xf32>
    %272 = vector.extract_strided_slice %257 {offsets = [0, 384], sizes = [8, 128], strides = [1, 1]} : vector<8x512xf32> to vector<8x128xf32>
    %273 = arith.negf %272 : vector<8x128xf32>
    %274 = math.exp %273 : vector<8x128xf32>
    %cst_119 = arith.constant 1.000000e+00 : f32
    %275 = vector.broadcast %cst_119 : f32 to vector<8x128xf32>
    %276 = arith.addf %275, %274 : vector<8x128xf32>
    %277 = arith.divf %275, %276 : vector<8x128xf32>
    %278 = arith.mulf %269, %253 : vector<8x128xf32>
    %279 = arith.mulf %263, %271 : vector<8x128xf32>
    %280 = arith.addf %278, %279 : vector<8x128xf32>
    %281 = math.tanh %280 : vector<8x128xf32>
    %282 = arith.mulf %277, %281 : vector<8x128xf32>
    %c0_120 = arith.constant 0 : index
    %c0_121 = arith.constant 0 : index
    %283 = vector.load %arg5[%c0_120, %c0_121] : memref<8x128xf32, #tpu.memory_space<vmem>>, vector<8x128xf32>
    tpu.vector_store %arg5[%c0_120, %c0_121], %282 {strides = array<i32>} : memref<8x128xf32, #tpu.memory_space<vmem>>, vector<8x128xf32>,
    %c0_122 = arith.constant 0 : index
    %c0_123 = arith.constant 0 : index
    %284 = vector.load %arg6[%c0_122, %c0_123] : memref<8x128xf32, #tpu.memory_space<vmem>>, vector<8x128xf32>
    tpu.vector_store %arg6[%c0_122, %c0_123], %280 {strides = array<i32>} : memref<8x128xf32, #tpu.memory_space<vmem>>, vector<8x128xf32>,
    %285 = arith.truncf %282 : vector<8x128xf32> to vector<8x128xbf16>
    %286 = arith.index_cast %c6_i32 : i32 to index
    %c0_124 = arith.constant 0 : index
    %c0_125 = arith.constant 0 : index
    %287 = vector.load %arg4[%286, %c0_124, %c0_125] : memref<8x8x128xbf16, #tpu.memory_space<vmem>>, vector<1x8x128xbf16>
    %288 = vector.shape_cast %287 : vector<1x8x128xbf16> to vector<8x128xbf16>
    %289 = vector.shape_cast %285 : vector<8x128xbf16> to vector<1x8x128xbf16>
    tpu.vector_store %arg4[%286, %c0_124, %c0_125], %289 {strides = array<i32>} : memref<8x8x128xbf16, #tpu.memory_space<vmem>>, vector<1x8x128xbf16>,
    %c7_i32 = arith.constant 7 : i32
    %290 = arith.index_cast %c7_i32 : i32 to index
    %c0_126 = arith.constant 0 : index
    %c0_127 = arith.constant 0 : index
    %291 = vector.load %arg2[%290, %c0_126, %c0_127] : memref<8x8x512xf32, #tpu.memory_space<vmem>>, vector<1x8x512xf32>
    %292 = vector.shape_cast %291 : vector<1x8x512xf32> to vector<8x512xf32>
    %c0_128 = arith.constant 0 : index
    %c0_129 = arith.constant 0 : index
    %293 = vector.load %arg5[%c0_128, %c0_129] : memref<8x128xf32, #tpu.memory_space<vmem>>, vector<8x128xf32>
    %c0_130 = arith.constant 0 : index
    %c0_131 = arith.constant 0 : index
    %294 = vector.load %arg6[%c0_130, %c0_131] : memref<8x128xf32, #tpu.memory_space<vmem>>, vector<8x128xf32>
    %295 = arith.truncf %293 : vector<8x128xf32> to vector<8x128xbf16>
    %c0_132 = arith.constant 0 : index
    %c0_133 = arith.constant 0 : index
    %296 = vector.load %arg3[%c0_132, %c0_133] : memref<128x512xbf16, #tpu.memory_space<vmem>>, vector<128x512xbf16>
    %cst_134 = arith.constant dense<0.000000e+00> : vector<8x512xf32>
    %297 = tpu.matmul %295, %296, %cst_134 {dimension_numbers = #tpu.dot_dimension_numbers<[1], [0], [0], [1], [0, 0, 1, 1], [], []>} : vector<8x128xbf16>, vector<128x512xbf16>, vector<8x512xf32> -> vector<8x512xf32>
    %298 = arith.addf %292, %297 : vector<8x512xf32>
    %299 = vector.extract_strided_slice %298 {offsets = [0, 0], sizes = [8, 128], strides = [1, 1]} : vector<8x512xf32> to vector<8x128xf32>
    %300 = arith.negf %299 : vector<8x128xf32>
    %301 = math.exp %300 : vector<8x128xf32>
    %cst_135 = arith.constant 1.000000e+00 : f32
    %302 = vector.broadcast %cst_135 : f32 to vector<8x128xf32>
    %303 = arith.addf %302, %301 : vector<8x128xf32>
    %304 = arith.divf %302, %303 : vector<8x128xf32>
    %305 = vector.extract_strided_slice %298 {offsets = [0, 128], sizes = [8, 128], strides = [1, 1]} : vector<8x512xf32> to vector<8x128xf32>
    %306 = arith.negf %305 : vector<8x128xf32>
    %307 = math.exp %306 : vector<8x128xf32>
    %cst_136 = arith.constant 1.000000e+00 : f32
    %308 = vector.broadcast %cst_136 : f32 to vector<8x128xf32>
    %309 = arith.addf %308, %307 : vector<8x128xf32>
    %310 = arith.divf %308, %309 : vector<8x128xf32>
    %311 = vector.extract_strided_slice %298 {offsets = [0, 256], sizes = [8, 128], strides = [1, 1]} : vector<8x512xf32> to vector<8x128xf32>
    %312 = math.tanh %311 : vector<8x128xf32>
    %313 = vector.extract_strided_slice %298 {offsets = [0, 384], sizes = [8, 128], strides = [1, 1]} : vector<8x512xf32> to vector<8x128xf32>
    %314 = arith.negf %313 : vector<8x128xf32>
    %315 = math.exp %314 : vector<8x128xf32>
    %cst_137 = arith.constant 1.000000e+00 : f32
    %316 = vector.broadcast %cst_137 : f32 to vector<8x128xf32>
    %317 = arith.addf %316, %315 : vector<8x128xf32>
    %318 = arith.divf %316, %317 : vector<8x128xf32>
    %319 = arith.mulf %310, %294 : vector<8x128xf32>
    %320 = arith.mulf %304, %312 : vector<8x128xf32>
    %321 = arith.addf %319, %320 : vector<8x128xf32>
    %322 = math.tanh %321 : vector<8x128xf32>
    %323 = arith.mulf %318, %322 : vector<8x128xf32>
    %c0_138 = arith.constant 0 : index
    %c0_139 = arith.constant 0 : index
    %324 = vector.load %arg5[%c0_138, %c0_139] : memref<8x128xf32, #tpu.memory_space<vmem>>, vector<8x128xf32>
    tpu.vector_store %arg5[%c0_138, %c0_139], %323 {strides = array<i32>} : memref<8x128xf32, #tpu.memory_space<vmem>>, vector<8x128xf32>,
    %c0_140 = arith.constant 0 : index
    %c0_141 = arith.constant 0 : index
    %325 = vector.load %arg6[%c0_140, %c0_141] : memref<8x128xf32, #tpu.memory_space<vmem>>, vector<8x128xf32>
    tpu.vector_store %arg6[%c0_140, %c0_141], %321 {strides = array<i32>} : memref<8x128xf32, #tpu.memory_space<vmem>>, vector<8x128xf32>,
    %326 = arith.truncf %323 : vector<8x128xf32> to vector<8x128xbf16>
    %327 = arith.index_cast %c7_i32 : i32 to index
    %c0_142 = arith.constant 0 : index
    %c0_143 = arith.constant 0 : index
    %328 = vector.load %arg4[%327, %c0_142, %c0_143] : memref<8x8x128xbf16, #tpu.memory_space<vmem>>, vector<1x8x128xbf16>
    %329 = vector.shape_cast %328 : vector<1x8x128xbf16> to vector<8x128xbf16>
    %330 = vector.shape_cast %326 : vector<8x128xbf16> to vector<1x8x128xbf16>
    tpu.vector_store %arg4[%327, %c0_142, %c0_143], %330 {strides = array<i32>} : memref<8x8x128xbf16, #tpu.memory_space<vmem>>, vector<1x8x128xbf16>,
    %c8_i32 = arith.constant 8 : i32
    return
  }
  func.func @transform_0(%arg0: i32, %arg1: i32) -> (i32, i32, i32) {
    %c0_i32 = arith.constant 0 : i32
    %c0_i32_0 = arith.constant 0 : i32
    return %arg1, %arg0, %c0_i32 : i32, i32, i32
  }
  func.func @transform_1(%arg0: i32, %arg1: i32) -> (i32, i32) {
    %c0_i32 = arith.constant 0 : i32
    %c0_i32_0 = arith.constant 0 : i32
    %c0_i32_1 = arith.constant 0 : i32
    return %c0_i32, %c0_i32_0 : i32, i32
  }
  func.func @transform_2(%arg0: i32, %arg1: i32) -> (i32, i32, i32) {
    %c0_i32 = arith.constant 0 : i32
    %c0_i32_0 = arith.constant 0 : i32
    return %arg1, %arg0, %c0_i32 : i32, i32, i32
  }
}

module attributes {stable_mosaic.version = 11 : i64} {
  func.func @_lstm_last_kernel(%arg0: i32, %arg1: i32, %arg2: memref<8x8x512xf32, #tpu.memory_space<vmem>>, %arg3: memref<128x512xbf16, #tpu.memory_space<vmem>>, %arg4: memref<128x4xbf16, #tpu.memory_space<vmem>>, %arg5: memref<1x4xf32, #tpu.memory_space<vmem>>, %arg6: memref<8x4xf32, #tpu.memory_space<vmem>>, %arg7: memref<8x128xf32, #tpu.memory_space<vmem>>, %arg8: memref<8x128xf32, #tpu.memory_space<vmem>>) attributes {dimension_semantics = [#tpu.dimension_semantics<parallel>, #tpu.dimension_semantics<arbitrary>], iteration_bounds = array<i64: 1, 1>, scalar_prefetch = 0 : i64, scratch_operands = 2 : i64, tpu.core_type = #tpu.core_type<tc>, window_params = [{transform_indices = @transform_0, window_bounds = array<i64: 8, 8, 512>}, {pipeline_mode = #tpu.pipeline_mode<synchronous>, transform_indices = @transform_1, window_bounds = array<i64: 128, 512>}, {pipeline_mode = #tpu.pipeline_mode<synchronous>, transform_indices = @transform_2, window_bounds = array<i64: 128, 4>}, {pipeline_mode = #tpu.pipeline_mode<synchronous>, transform_indices = @transform_3, window_bounds = array<i64: 1, 4>}, {transform_indices = @transform_4, window_bounds = array<i64: 8, 4>}]} {
    %c0_i32 = arith.constant 0 : i32
    %0 = arith.cmpi eq, %arg1, %c0_i32 : i32
    %1 = arith.extui %0 : i1 to i32
    %c0_i32_0 = arith.constant 0 : i32
    %2 = arith.cmpi ne, %1, %c0_i32_0 : i32
    scf.if %2 {
      %cst_130 = arith.constant 0.000000e+00 : f32
      %294 = vector.broadcast %cst_130 : f32 to vector<8x128xf32>
      %c0_131 = arith.constant 0 : index
      %c0_132 = arith.constant 0 : index
      %295 = vector.load %arg7[%c0_131, %c0_132] : memref<8x128xf32, #tpu.memory_space<vmem>>, vector<8x128xf32>
      tpu.vector_store %arg7[%c0_131, %c0_132], %294 {strides = array<i32>} : memref<8x128xf32, #tpu.memory_space<vmem>>, vector<8x128xf32>,
      %cst_133 = arith.constant 0.000000e+00 : f32
      %296 = vector.broadcast %cst_133 : f32 to vector<8x128xf32>
      %c0_134 = arith.constant 0 : index
      %c0_135 = arith.constant 0 : index
      %297 = vector.load %arg8[%c0_134, %c0_135] : memref<8x128xf32, #tpu.memory_space<vmem>>, vector<8x128xf32>
      tpu.vector_store %arg8[%c0_134, %c0_135], %296 {strides = array<i32>} : memref<8x128xf32, #tpu.memory_space<vmem>>, vector<8x128xf32>,
    } else {
    }
    %c0_i32_1 = arith.constant 0 : i32
    %3 = arith.index_cast %c0_i32_1 : i32 to index
    %c0 = arith.constant 0 : index
    %c0_2 = arith.constant 0 : index
    %4 = vector.load %arg2[%3, %c0, %c0_2] : memref<8x8x512xf32, #tpu.memory_space<vmem>>, vector<1x8x512xf32>
    %5 = vector.shape_cast %4 : vector<1x8x512xf32> to vector<8x512xf32>
    %c0_3 = arith.constant 0 : index
    %c0_4 = arith.constant 0 : index
    %6 = vector.load %arg7[%c0_3, %c0_4] : memref<8x128xf32, #tpu.memory_space<vmem>>, vector<8x128xf32>
    %c0_5 = arith.constant 0 : index
    %c0_6 = arith.constant 0 : index
    %7 = vector.load %arg8[%c0_5, %c0_6] : memref<8x128xf32, #tpu.memory_space<vmem>>, vector<8x128xf32>
    %8 = arith.truncf %6 : vector<8x128xf32> to vector<8x128xbf16>
    %c0_7 = arith.constant 0 : index
    %c0_8 = arith.constant 0 : index
    %9 = vector.load %arg3[%c0_7, %c0_8] : memref<128x512xbf16, #tpu.memory_space<vmem>>, vector<128x512xbf16>
    %cst = arith.constant dense<0.000000e+00> : vector<8x512xf32>
    %10 = tpu.matmul %8, %9, %cst {dimension_numbers = #tpu.dot_dimension_numbers<[1], [0], [0], [1], [0, 0, 1, 1], [], []>} : vector<8x128xbf16>, vector<128x512xbf16>, vector<8x512xf32> -> vector<8x512xf32>
    %11 = arith.addf %5, %10 : vector<8x512xf32>
    %12 = vector.extract_strided_slice %11 {offsets = [0, 0], sizes = [8, 128], strides = [1, 1]} : vector<8x512xf32> to vector<8x128xf32>
    %13 = arith.negf %12 : vector<8x128xf32>
    %14 = math.exp %13 : vector<8x128xf32>
    %cst_9 = arith.constant 1.000000e+00 : f32
    %15 = vector.broadcast %cst_9 : f32 to vector<8x128xf32>
    %16 = arith.addf %15, %14 : vector<8x128xf32>
    %17 = arith.divf %15, %16 : vector<8x128xf32>
    %18 = vector.extract_strided_slice %11 {offsets = [0, 128], sizes = [8, 128], strides = [1, 1]} : vector<8x512xf32> to vector<8x128xf32>
    %19 = arith.negf %18 : vector<8x128xf32>
    %20 = math.exp %19 : vector<8x128xf32>
    %cst_10 = arith.constant 1.000000e+00 : f32
    %21 = vector.broadcast %cst_10 : f32 to vector<8x128xf32>
    %22 = arith.addf %21, %20 : vector<8x128xf32>
    %23 = arith.divf %21, %22 : vector<8x128xf32>
    %24 = vector.extract_strided_slice %11 {offsets = [0, 256], sizes = [8, 128], strides = [1, 1]} : vector<8x512xf32> to vector<8x128xf32>
    %25 = math.tanh %24 : vector<8x128xf32>
    %26 = vector.extract_strided_slice %11 {offsets = [0, 384], sizes = [8, 128], strides = [1, 1]} : vector<8x512xf32> to vector<8x128xf32>
    %27 = arith.negf %26 : vector<8x128xf32>
    %28 = math.exp %27 : vector<8x128xf32>
    %cst_11 = arith.constant 1.000000e+00 : f32
    %29 = vector.broadcast %cst_11 : f32 to vector<8x128xf32>
    %30 = arith.addf %29, %28 : vector<8x128xf32>
    %31 = arith.divf %29, %30 : vector<8x128xf32>
    %32 = arith.mulf %23, %7 : vector<8x128xf32>
    %33 = arith.mulf %17, %25 : vector<8x128xf32>
    %34 = arith.addf %32, %33 : vector<8x128xf32>
    %35 = math.tanh %34 : vector<8x128xf32>
    %36 = arith.mulf %31, %35 : vector<8x128xf32>
    %c0_12 = arith.constant 0 : index
    %c0_13 = arith.constant 0 : index
    %37 = vector.load %arg7[%c0_12, %c0_13] : memref<8x128xf32, #tpu.memory_space<vmem>>, vector<8x128xf32>
    tpu.vector_store %arg7[%c0_12, %c0_13], %36 {strides = array<i32>} : memref<8x128xf32, #tpu.memory_space<vmem>>, vector<8x128xf32>,
    %c0_14 = arith.constant 0 : index
    %c0_15 = arith.constant 0 : index
    %38 = vector.load %arg8[%c0_14, %c0_15] : memref<8x128xf32, #tpu.memory_space<vmem>>, vector<8x128xf32>
    tpu.vector_store %arg8[%c0_14, %c0_15], %34 {strides = array<i32>} : memref<8x128xf32, #tpu.memory_space<vmem>>, vector<8x128xf32>,
    %c1_i32 = arith.constant 1 : i32
    %39 = arith.index_cast %c1_i32 : i32 to index
    %c0_16 = arith.constant 0 : index
    %c0_17 = arith.constant 0 : index
    %40 = vector.load %arg2[%39, %c0_16, %c0_17] : memref<8x8x512xf32, #tpu.memory_space<vmem>>, vector<1x8x512xf32>
    %41 = vector.shape_cast %40 : vector<1x8x512xf32> to vector<8x512xf32>
    %c0_18 = arith.constant 0 : index
    %c0_19 = arith.constant 0 : index
    %42 = vector.load %arg7[%c0_18, %c0_19] : memref<8x128xf32, #tpu.memory_space<vmem>>, vector<8x128xf32>
    %c0_20 = arith.constant 0 : index
    %c0_21 = arith.constant 0 : index
    %43 = vector.load %arg8[%c0_20, %c0_21] : memref<8x128xf32, #tpu.memory_space<vmem>>, vector<8x128xf32>
    %44 = arith.truncf %42 : vector<8x128xf32> to vector<8x128xbf16>
    %c0_22 = arith.constant 0 : index
    %c0_23 = arith.constant 0 : index
    %45 = vector.load %arg3[%c0_22, %c0_23] : memref<128x512xbf16, #tpu.memory_space<vmem>>, vector<128x512xbf16>
    %cst_24 = arith.constant dense<0.000000e+00> : vector<8x512xf32>
    %46 = tpu.matmul %44, %45, %cst_24 {dimension_numbers = #tpu.dot_dimension_numbers<[1], [0], [0], [1], [0, 0, 1, 1], [], []>} : vector<8x128xbf16>, vector<128x512xbf16>, vector<8x512xf32> -> vector<8x512xf32>
    %47 = arith.addf %41, %46 : vector<8x512xf32>
    %48 = vector.extract_strided_slice %47 {offsets = [0, 0], sizes = [8, 128], strides = [1, 1]} : vector<8x512xf32> to vector<8x128xf32>
    %49 = arith.negf %48 : vector<8x128xf32>
    %50 = math.exp %49 : vector<8x128xf32>
    %cst_25 = arith.constant 1.000000e+00 : f32
    %51 = vector.broadcast %cst_25 : f32 to vector<8x128xf32>
    %52 = arith.addf %51, %50 : vector<8x128xf32>
    %53 = arith.divf %51, %52 : vector<8x128xf32>
    %54 = vector.extract_strided_slice %47 {offsets = [0, 128], sizes = [8, 128], strides = [1, 1]} : vector<8x512xf32> to vector<8x128xf32>
    %55 = arith.negf %54 : vector<8x128xf32>
    %56 = math.exp %55 : vector<8x128xf32>
    %cst_26 = arith.constant 1.000000e+00 : f32
    %57 = vector.broadcast %cst_26 : f32 to vector<8x128xf32>
    %58 = arith.addf %57, %56 : vector<8x128xf32>
    %59 = arith.divf %57, %58 : vector<8x128xf32>
    %60 = vector.extract_strided_slice %47 {offsets = [0, 256], sizes = [8, 128], strides = [1, 1]} : vector<8x512xf32> to vector<8x128xf32>
    %61 = math.tanh %60 : vector<8x128xf32>
    %62 = vector.extract_strided_slice %47 {offsets = [0, 384], sizes = [8, 128], strides = [1, 1]} : vector<8x512xf32> to vector<8x128xf32>
    %63 = arith.negf %62 : vector<8x128xf32>
    %64 = math.exp %63 : vector<8x128xf32>
    %cst_27 = arith.constant 1.000000e+00 : f32
    %65 = vector.broadcast %cst_27 : f32 to vector<8x128xf32>
    %66 = arith.addf %65, %64 : vector<8x128xf32>
    %67 = arith.divf %65, %66 : vector<8x128xf32>
    %68 = arith.mulf %59, %43 : vector<8x128xf32>
    %69 = arith.mulf %53, %61 : vector<8x128xf32>
    %70 = arith.addf %68, %69 : vector<8x128xf32>
    %71 = math.tanh %70 : vector<8x128xf32>
    %72 = arith.mulf %67, %71 : vector<8x128xf32>
    %c0_28 = arith.constant 0 : index
    %c0_29 = arith.constant 0 : index
    %73 = vector.load %arg7[%c0_28, %c0_29] : memref<8x128xf32, #tpu.memory_space<vmem>>, vector<8x128xf32>
    tpu.vector_store %arg7[%c0_28, %c0_29], %72 {strides = array<i32>} : memref<8x128xf32, #tpu.memory_space<vmem>>, vector<8x128xf32>,
    %c0_30 = arith.constant 0 : index
    %c0_31 = arith.constant 0 : index
    %74 = vector.load %arg8[%c0_30, %c0_31] : memref<8x128xf32, #tpu.memory_space<vmem>>, vector<8x128xf32>
    tpu.vector_store %arg8[%c0_30, %c0_31], %70 {strides = array<i32>} : memref<8x128xf32, #tpu.memory_space<vmem>>, vector<8x128xf32>,
    %c2_i32 = arith.constant 2 : i32
    %75 = arith.index_cast %c2_i32 : i32 to index
    %c0_32 = arith.constant 0 : index
    %c0_33 = arith.constant 0 : index
    %76 = vector.load %arg2[%75, %c0_32, %c0_33] : memref<8x8x512xf32, #tpu.memory_space<vmem>>, vector<1x8x512xf32>
    %77 = vector.shape_cast %76 : vector<1x8x512xf32> to vector<8x512xf32>
    %c0_34 = arith.constant 0 : index
    %c0_35 = arith.constant 0 : index
    %78 = vector.load %arg7[%c0_34, %c0_35] : memref<8x128xf32, #tpu.memory_space<vmem>>, vector<8x128xf32>
    %c0_36 = arith.constant 0 : index
    %c0_37 = arith.constant 0 : index
    %79 = vector.load %arg8[%c0_36, %c0_37] : memref<8x128xf32, #tpu.memory_space<vmem>>, vector<8x128xf32>
    %80 = arith.truncf %78 : vector<8x128xf32> to vector<8x128xbf16>
    %c0_38 = arith.constant 0 : index
    %c0_39 = arith.constant 0 : index
    %81 = vector.load %arg3[%c0_38, %c0_39] : memref<128x512xbf16, #tpu.memory_space<vmem>>, vector<128x512xbf16>
    %cst_40 = arith.constant dense<0.000000e+00> : vector<8x512xf32>
    %82 = tpu.matmul %80, %81, %cst_40 {dimension_numbers = #tpu.dot_dimension_numbers<[1], [0], [0], [1], [0, 0, 1, 1], [], []>} : vector<8x128xbf16>, vector<128x512xbf16>, vector<8x512xf32> -> vector<8x512xf32>
    %83 = arith.addf %77, %82 : vector<8x512xf32>
    %84 = vector.extract_strided_slice %83 {offsets = [0, 0], sizes = [8, 128], strides = [1, 1]} : vector<8x512xf32> to vector<8x128xf32>
    %85 = arith.negf %84 : vector<8x128xf32>
    %86 = math.exp %85 : vector<8x128xf32>
    %cst_41 = arith.constant 1.000000e+00 : f32
    %87 = vector.broadcast %cst_41 : f32 to vector<8x128xf32>
    %88 = arith.addf %87, %86 : vector<8x128xf32>
    %89 = arith.divf %87, %88 : vector<8x128xf32>
    %90 = vector.extract_strided_slice %83 {offsets = [0, 128], sizes = [8, 128], strides = [1, 1]} : vector<8x512xf32> to vector<8x128xf32>
    %91 = arith.negf %90 : vector<8x128xf32>
    %92 = math.exp %91 : vector<8x128xf32>
    %cst_42 = arith.constant 1.000000e+00 : f32
    %93 = vector.broadcast %cst_42 : f32 to vector<8x128xf32>
    %94 = arith.addf %93, %92 : vector<8x128xf32>
    %95 = arith.divf %93, %94 : vector<8x128xf32>
    %96 = vector.extract_strided_slice %83 {offsets = [0, 256], sizes = [8, 128], strides = [1, 1]} : vector<8x512xf32> to vector<8x128xf32>
    %97 = math.tanh %96 : vector<8x128xf32>
    %98 = vector.extract_strided_slice %83 {offsets = [0, 384], sizes = [8, 128], strides = [1, 1]} : vector<8x512xf32> to vector<8x128xf32>
    %99 = arith.negf %98 : vector<8x128xf32>
    %100 = math.exp %99 : vector<8x128xf32>
    %cst_43 = arith.constant 1.000000e+00 : f32
    %101 = vector.broadcast %cst_43 : f32 to vector<8x128xf32>
    %102 = arith.addf %101, %100 : vector<8x128xf32>
    %103 = arith.divf %101, %102 : vector<8x128xf32>
    %104 = arith.mulf %95, %79 : vector<8x128xf32>
    %105 = arith.mulf %89, %97 : vector<8x128xf32>
    %106 = arith.addf %104, %105 : vector<8x128xf32>
    %107 = math.tanh %106 : vector<8x128xf32>
    %108 = arith.mulf %103, %107 : vector<8x128xf32>
    %c0_44 = arith.constant 0 : index
    %c0_45 = arith.constant 0 : index
    %109 = vector.load %arg7[%c0_44, %c0_45] : memref<8x128xf32, #tpu.memory_space<vmem>>, vector<8x128xf32>
    tpu.vector_store %arg7[%c0_44, %c0_45], %108 {strides = array<i32>} : memref<8x128xf32, #tpu.memory_space<vmem>>, vector<8x128xf32>,
    %c0_46 = arith.constant 0 : index
    %c0_47 = arith.constant 0 : index
    %110 = vector.load %arg8[%c0_46, %c0_47] : memref<8x128xf32, #tpu.memory_space<vmem>>, vector<8x128xf32>
    tpu.vector_store %arg8[%c0_46, %c0_47], %106 {strides = array<i32>} : memref<8x128xf32, #tpu.memory_space<vmem>>, vector<8x128xf32>,
    %c3_i32 = arith.constant 3 : i32
    %111 = arith.index_cast %c3_i32 : i32 to index
    %c0_48 = arith.constant 0 : index
    %c0_49 = arith.constant 0 : index
    %112 = vector.load %arg2[%111, %c0_48, %c0_49] : memref<8x8x512xf32, #tpu.memory_space<vmem>>, vector<1x8x512xf32>
    %113 = vector.shape_cast %112 : vector<1x8x512xf32> to vector<8x512xf32>
    %c0_50 = arith.constant 0 : index
    %c0_51 = arith.constant 0 : index
    %114 = vector.load %arg7[%c0_50, %c0_51] : memref<8x128xf32, #tpu.memory_space<vmem>>, vector<8x128xf32>
    %c0_52 = arith.constant 0 : index
    %c0_53 = arith.constant 0 : index
    %115 = vector.load %arg8[%c0_52, %c0_53] : memref<8x128xf32, #tpu.memory_space<vmem>>, vector<8x128xf32>
    %116 = arith.truncf %114 : vector<8x128xf32> to vector<8x128xbf16>
    %c0_54 = arith.constant 0 : index
    %c0_55 = arith.constant 0 : index
    %117 = vector.load %arg3[%c0_54, %c0_55] : memref<128x512xbf16, #tpu.memory_space<vmem>>, vector<128x512xbf16>
    %cst_56 = arith.constant dense<0.000000e+00> : vector<8x512xf32>
    %118 = tpu.matmul %116, %117, %cst_56 {dimension_numbers = #tpu.dot_dimension_numbers<[1], [0], [0], [1], [0, 0, 1, 1], [], []>} : vector<8x128xbf16>, vector<128x512xbf16>, vector<8x512xf32> -> vector<8x512xf32>
    %119 = arith.addf %113, %118 : vector<8x512xf32>
    %120 = vector.extract_strided_slice %119 {offsets = [0, 0], sizes = [8, 128], strides = [1, 1]} : vector<8x512xf32> to vector<8x128xf32>
    %121 = arith.negf %120 : vector<8x128xf32>
    %122 = math.exp %121 : vector<8x128xf32>
    %cst_57 = arith.constant 1.000000e+00 : f32
    %123 = vector.broadcast %cst_57 : f32 to vector<8x128xf32>
    %124 = arith.addf %123, %122 : vector<8x128xf32>
    %125 = arith.divf %123, %124 : vector<8x128xf32>
    %126 = vector.extract_strided_slice %119 {offsets = [0, 128], sizes = [8, 128], strides = [1, 1]} : vector<8x512xf32> to vector<8x128xf32>
    %127 = arith.negf %126 : vector<8x128xf32>
    %128 = math.exp %127 : vector<8x128xf32>
    %cst_58 = arith.constant 1.000000e+00 : f32
    %129 = vector.broadcast %cst_58 : f32 to vector<8x128xf32>
    %130 = arith.addf %129, %128 : vector<8x128xf32>
    %131 = arith.divf %129, %130 : vector<8x128xf32>
    %132 = vector.extract_strided_slice %119 {offsets = [0, 256], sizes = [8, 128], strides = [1, 1]} : vector<8x512xf32> to vector<8x128xf32>
    %133 = math.tanh %132 : vector<8x128xf32>
    %134 = vector.extract_strided_slice %119 {offsets = [0, 384], sizes = [8, 128], strides = [1, 1]} : vector<8x512xf32> to vector<8x128xf32>
    %135 = arith.negf %134 : vector<8x128xf32>
    %136 = math.exp %135 : vector<8x128xf32>
    %cst_59 = arith.constant 1.000000e+00 : f32
    %137 = vector.broadcast %cst_59 : f32 to vector<8x128xf32>
    %138 = arith.addf %137, %136 : vector<8x128xf32>
    %139 = arith.divf %137, %138 : vector<8x128xf32>
    %140 = arith.mulf %131, %115 : vector<8x128xf32>
    %141 = arith.mulf %125, %133 : vector<8x128xf32>
    %142 = arith.addf %140, %141 : vector<8x128xf32>
    %143 = math.tanh %142 : vector<8x128xf32>
    %144 = arith.mulf %139, %143 : vector<8x128xf32>
    %c0_60 = arith.constant 0 : index
    %c0_61 = arith.constant 0 : index
    %145 = vector.load %arg7[%c0_60, %c0_61] : memref<8x128xf32, #tpu.memory_space<vmem>>, vector<8x128xf32>
    tpu.vector_store %arg7[%c0_60, %c0_61], %144 {strides = array<i32>} : memref<8x128xf32, #tpu.memory_space<vmem>>, vector<8x128xf32>,
    %c0_62 = arith.constant 0 : index
    %c0_63 = arith.constant 0 : index
    %146 = vector.load %arg8[%c0_62, %c0_63] : memref<8x128xf32, #tpu.memory_space<vmem>>, vector<8x128xf32>
    tpu.vector_store %arg8[%c0_62, %c0_63], %142 {strides = array<i32>} : memref<8x128xf32, #tpu.memory_space<vmem>>, vector<8x128xf32>,
    %c4_i32 = arith.constant 4 : i32
    %147 = arith.index_cast %c4_i32 : i32 to index
    %c0_64 = arith.constant 0 : index
    %c0_65 = arith.constant 0 : index
    %148 = vector.load %arg2[%147, %c0_64, %c0_65] : memref<8x8x512xf32, #tpu.memory_space<vmem>>, vector<1x8x512xf32>
    %149 = vector.shape_cast %148 : vector<1x8x512xf32> to vector<8x512xf32>
    %c0_66 = arith.constant 0 : index
    %c0_67 = arith.constant 0 : index
    %150 = vector.load %arg7[%c0_66, %c0_67] : memref<8x128xf32, #tpu.memory_space<vmem>>, vector<8x128xf32>
    %c0_68 = arith.constant 0 : index
    %c0_69 = arith.constant 0 : index
    %151 = vector.load %arg8[%c0_68, %c0_69] : memref<8x128xf32, #tpu.memory_space<vmem>>, vector<8x128xf32>
    %152 = arith.truncf %150 : vector<8x128xf32> to vector<8x128xbf16>
    %c0_70 = arith.constant 0 : index
    %c0_71 = arith.constant 0 : index
    %153 = vector.load %arg3[%c0_70, %c0_71] : memref<128x512xbf16, #tpu.memory_space<vmem>>, vector<128x512xbf16>
    %cst_72 = arith.constant dense<0.000000e+00> : vector<8x512xf32>
    %154 = tpu.matmul %152, %153, %cst_72 {dimension_numbers = #tpu.dot_dimension_numbers<[1], [0], [0], [1], [0, 0, 1, 1], [], []>} : vector<8x128xbf16>, vector<128x512xbf16>, vector<8x512xf32> -> vector<8x512xf32>
    %155 = arith.addf %149, %154 : vector<8x512xf32>
    %156 = vector.extract_strided_slice %155 {offsets = [0, 0], sizes = [8, 128], strides = [1, 1]} : vector<8x512xf32> to vector<8x128xf32>
    %157 = arith.negf %156 : vector<8x128xf32>
    %158 = math.exp %157 : vector<8x128xf32>
    %cst_73 = arith.constant 1.000000e+00 : f32
    %159 = vector.broadcast %cst_73 : f32 to vector<8x128xf32>
    %160 = arith.addf %159, %158 : vector<8x128xf32>
    %161 = arith.divf %159, %160 : vector<8x128xf32>
    %162 = vector.extract_strided_slice %155 {offsets = [0, 128], sizes = [8, 128], strides = [1, 1]} : vector<8x512xf32> to vector<8x128xf32>
    %163 = arith.negf %162 : vector<8x128xf32>
    %164 = math.exp %163 : vector<8x128xf32>
    %cst_74 = arith.constant 1.000000e+00 : f32
    %165 = vector.broadcast %cst_74 : f32 to vector<8x128xf32>
    %166 = arith.addf %165, %164 : vector<8x128xf32>
    %167 = arith.divf %165, %166 : vector<8x128xf32>
    %168 = vector.extract_strided_slice %155 {offsets = [0, 256], sizes = [8, 128], strides = [1, 1]} : vector<8x512xf32> to vector<8x128xf32>
    %169 = math.tanh %168 : vector<8x128xf32>
    %170 = vector.extract_strided_slice %155 {offsets = [0, 384], sizes = [8, 128], strides = [1, 1]} : vector<8x512xf32> to vector<8x128xf32>
    %171 = arith.negf %170 : vector<8x128xf32>
    %172 = math.exp %171 : vector<8x128xf32>
    %cst_75 = arith.constant 1.000000e+00 : f32
    %173 = vector.broadcast %cst_75 : f32 to vector<8x128xf32>
    %174 = arith.addf %173, %172 : vector<8x128xf32>
    %175 = arith.divf %173, %174 : vector<8x128xf32>
    %176 = arith.mulf %167, %151 : vector<8x128xf32>
    %177 = arith.mulf %161, %169 : vector<8x128xf32>
    %178 = arith.addf %176, %177 : vector<8x128xf32>
    %179 = math.tanh %178 : vector<8x128xf32>
    %180 = arith.mulf %175, %179 : vector<8x128xf32>
    %c0_76 = arith.constant 0 : index
    %c0_77 = arith.constant 0 : index
    %181 = vector.load %arg7[%c0_76, %c0_77] : memref<8x128xf32, #tpu.memory_space<vmem>>, vector<8x128xf32>
    tpu.vector_store %arg7[%c0_76, %c0_77], %180 {strides = array<i32>} : memref<8x128xf32, #tpu.memory_space<vmem>>, vector<8x128xf32>,
    %c0_78 = arith.constant 0 : index
    %c0_79 = arith.constant 0 : index
    %182 = vector.load %arg8[%c0_78, %c0_79] : memref<8x128xf32, #tpu.memory_space<vmem>>, vector<8x128xf32>
    tpu.vector_store %arg8[%c0_78, %c0_79], %178 {strides = array<i32>} : memref<8x128xf32, #tpu.memory_space<vmem>>, vector<8x128xf32>,
    %c5_i32 = arith.constant 5 : i32
    %183 = arith.index_cast %c5_i32 : i32 to index
    %c0_80 = arith.constant 0 : index
    %c0_81 = arith.constant 0 : index
    %184 = vector.load %arg2[%183, %c0_80, %c0_81] : memref<8x8x512xf32, #tpu.memory_space<vmem>>, vector<1x8x512xf32>
    %185 = vector.shape_cast %184 : vector<1x8x512xf32> to vector<8x512xf32>
    %c0_82 = arith.constant 0 : index
    %c0_83 = arith.constant 0 : index
    %186 = vector.load %arg7[%c0_82, %c0_83] : memref<8x128xf32, #tpu.memory_space<vmem>>, vector<8x128xf32>
    %c0_84 = arith.constant 0 : index
    %c0_85 = arith.constant 0 : index
    %187 = vector.load %arg8[%c0_84, %c0_85] : memref<8x128xf32, #tpu.memory_space<vmem>>, vector<8x128xf32>
    %188 = arith.truncf %186 : vector<8x128xf32> to vector<8x128xbf16>
    %c0_86 = arith.constant 0 : index
    %c0_87 = arith.constant 0 : index
    %189 = vector.load %arg3[%c0_86, %c0_87] : memref<128x512xbf16, #tpu.memory_space<vmem>>, vector<128x512xbf16>
    %cst_88 = arith.constant dense<0.000000e+00> : vector<8x512xf32>
    %190 = tpu.matmul %188, %189, %cst_88 {dimension_numbers = #tpu.dot_dimension_numbers<[1], [0], [0], [1], [0, 0, 1, 1], [], []>} : vector<8x128xbf16>, vector<128x512xbf16>, vector<8x512xf32> -> vector<8x512xf32>
    %191 = arith.addf %185, %190 : vector<8x512xf32>
    %192 = vector.extract_strided_slice %191 {offsets = [0, 0], sizes = [8, 128], strides = [1, 1]} : vector<8x512xf32> to vector<8x128xf32>
    %193 = arith.negf %192 : vector<8x128xf32>
    %194 = math.exp %193 : vector<8x128xf32>
    %cst_89 = arith.constant 1.000000e+00 : f32
    %195 = vector.broadcast %cst_89 : f32 to vector<8x128xf32>
    %196 = arith.addf %195, %194 : vector<8x128xf32>
    %197 = arith.divf %195, %196 : vector<8x128xf32>
    %198 = vector.extract_strided_slice %191 {offsets = [0, 128], sizes = [8, 128], strides = [1, 1]} : vector<8x512xf32> to vector<8x128xf32>
    %199 = arith.negf %198 : vector<8x128xf32>
    %200 = math.exp %199 : vector<8x128xf32>
    %cst_90 = arith.constant 1.000000e+00 : f32
    %201 = vector.broadcast %cst_90 : f32 to vector<8x128xf32>
    %202 = arith.addf %201, %200 : vector<8x128xf32>
    %203 = arith.divf %201, %202 : vector<8x128xf32>
    %204 = vector.extract_strided_slice %191 {offsets = [0, 256], sizes = [8, 128], strides = [1, 1]} : vector<8x512xf32> to vector<8x128xf32>
    %205 = math.tanh %204 : vector<8x128xf32>
    %206 = vector.extract_strided_slice %191 {offsets = [0, 384], sizes = [8, 128], strides = [1, 1]} : vector<8x512xf32> to vector<8x128xf32>
    %207 = arith.negf %206 : vector<8x128xf32>
    %208 = math.exp %207 : vector<8x128xf32>
    %cst_91 = arith.constant 1.000000e+00 : f32
    %209 = vector.broadcast %cst_91 : f32 to vector<8x128xf32>
    %210 = arith.addf %209, %208 : vector<8x128xf32>
    %211 = arith.divf %209, %210 : vector<8x128xf32>
    %212 = arith.mulf %203, %187 : vector<8x128xf32>
    %213 = arith.mulf %197, %205 : vector<8x128xf32>
    %214 = arith.addf %212, %213 : vector<8x128xf32>
    %215 = math.tanh %214 : vector<8x128xf32>
    %216 = arith.mulf %211, %215 : vector<8x128xf32>
    %c0_92 = arith.constant 0 : index
    %c0_93 = arith.constant 0 : index
    %217 = vector.load %arg7[%c0_92, %c0_93] : memref<8x128xf32, #tpu.memory_space<vmem>>, vector<8x128xf32>
    tpu.vector_store %arg7[%c0_92, %c0_93], %216 {strides = array<i32>} : memref<8x128xf32, #tpu.memory_space<vmem>>, vector<8x128xf32>,
    %c0_94 = arith.constant 0 : index
    %c0_95 = arith.constant 0 : index
    %218 = vector.load %arg8[%c0_94, %c0_95] : memref<8x128xf32, #tpu.memory_space<vmem>>, vector<8x128xf32>
    tpu.vector_store %arg8[%c0_94, %c0_95], %214 {strides = array<i32>} : memref<8x128xf32, #tpu.memory_space<vmem>>, vector<8x128xf32>,
    %c6_i32 = arith.constant 6 : i32
    %219 = arith.index_cast %c6_i32 : i32 to index
    %c0_96 = arith.constant 0 : index
    %c0_97 = arith.constant 0 : index
    %220 = vector.load %arg2[%219, %c0_96, %c0_97] : memref<8x8x512xf32, #tpu.memory_space<vmem>>, vector<1x8x512xf32>
    %221 = vector.shape_cast %220 : vector<1x8x512xf32> to vector<8x512xf32>
    %c0_98 = arith.constant 0 : index
    %c0_99 = arith.constant 0 : index
    %222 = vector.load %arg7[%c0_98, %c0_99] : memref<8x128xf32, #tpu.memory_space<vmem>>, vector<8x128xf32>
    %c0_100 = arith.constant 0 : index
    %c0_101 = arith.constant 0 : index
    %223 = vector.load %arg8[%c0_100, %c0_101] : memref<8x128xf32, #tpu.memory_space<vmem>>, vector<8x128xf32>
    %224 = arith.truncf %222 : vector<8x128xf32> to vector<8x128xbf16>
    %c0_102 = arith.constant 0 : index
    %c0_103 = arith.constant 0 : index
    %225 = vector.load %arg3[%c0_102, %c0_103] : memref<128x512xbf16, #tpu.memory_space<vmem>>, vector<128x512xbf16>
    %cst_104 = arith.constant dense<0.000000e+00> : vector<8x512xf32>
    %226 = tpu.matmul %224, %225, %cst_104 {dimension_numbers = #tpu.dot_dimension_numbers<[1], [0], [0], [1], [0, 0, 1, 1], [], []>} : vector<8x128xbf16>, vector<128x512xbf16>, vector<8x512xf32> -> vector<8x512xf32>
    %227 = arith.addf %221, %226 : vector<8x512xf32>
    %228 = vector.extract_strided_slice %227 {offsets = [0, 0], sizes = [8, 128], strides = [1, 1]} : vector<8x512xf32> to vector<8x128xf32>
    %229 = arith.negf %228 : vector<8x128xf32>
    %230 = math.exp %229 : vector<8x128xf32>
    %cst_105 = arith.constant 1.000000e+00 : f32
    %231 = vector.broadcast %cst_105 : f32 to vector<8x128xf32>
    %232 = arith.addf %231, %230 : vector<8x128xf32>
    %233 = arith.divf %231, %232 : vector<8x128xf32>
    %234 = vector.extract_strided_slice %227 {offsets = [0, 128], sizes = [8, 128], strides = [1, 1]} : vector<8x512xf32> to vector<8x128xf32>
    %235 = arith.negf %234 : vector<8x128xf32>
    %236 = math.exp %235 : vector<8x128xf32>
    %cst_106 = arith.constant 1.000000e+00 : f32
    %237 = vector.broadcast %cst_106 : f32 to vector<8x128xf32>
    %238 = arith.addf %237, %236 : vector<8x128xf32>
    %239 = arith.divf %237, %238 : vector<8x128xf32>
    %240 = vector.extract_strided_slice %227 {offsets = [0, 256], sizes = [8, 128], strides = [1, 1]} : vector<8x512xf32> to vector<8x128xf32>
    %241 = math.tanh %240 : vector<8x128xf32>
    %242 = vector.extract_strided_slice %227 {offsets = [0, 384], sizes = [8, 128], strides = [1, 1]} : vector<8x512xf32> to vector<8x128xf32>
    %243 = arith.negf %242 : vector<8x128xf32>
    %244 = math.exp %243 : vector<8x128xf32>
    %cst_107 = arith.constant 1.000000e+00 : f32
    %245 = vector.broadcast %cst_107 : f32 to vector<8x128xf32>
    %246 = arith.addf %245, %244 : vector<8x128xf32>
    %247 = arith.divf %245, %246 : vector<8x128xf32>
    %248 = arith.mulf %239, %223 : vector<8x128xf32>
    %249 = arith.mulf %233, %241 : vector<8x128xf32>
    %250 = arith.addf %248, %249 : vector<8x128xf32>
    %251 = math.tanh %250 : vector<8x128xf32>
    %252 = arith.mulf %247, %251 : vector<8x128xf32>
    %c0_108 = arith.constant 0 : index
    %c0_109 = arith.constant 0 : index
    %253 = vector.load %arg7[%c0_108, %c0_109] : memref<8x128xf32, #tpu.memory_space<vmem>>, vector<8x128xf32>
    tpu.vector_store %arg7[%c0_108, %c0_109], %252 {strides = array<i32>} : memref<8x128xf32, #tpu.memory_space<vmem>>, vector<8x128xf32>,
    %c0_110 = arith.constant 0 : index
    %c0_111 = arith.constant 0 : index
    %254 = vector.load %arg8[%c0_110, %c0_111] : memref<8x128xf32, #tpu.memory_space<vmem>>, vector<8x128xf32>
    tpu.vector_store %arg8[%c0_110, %c0_111], %250 {strides = array<i32>} : memref<8x128xf32, #tpu.memory_space<vmem>>, vector<8x128xf32>,
    %c7_i32 = arith.constant 7 : i32
    %255 = arith.index_cast %c7_i32 : i32 to index
    %c0_112 = arith.constant 0 : index
    %c0_113 = arith.constant 0 : index
    %256 = vector.load %arg2[%255, %c0_112, %c0_113] : memref<8x8x512xf32, #tpu.memory_space<vmem>>, vector<1x8x512xf32>
    %257 = vector.shape_cast %256 : vector<1x8x512xf32> to vector<8x512xf32>
    %c0_114 = arith.constant 0 : index
    %c0_115 = arith.constant 0 : index
    %258 = vector.load %arg7[%c0_114, %c0_115] : memref<8x128xf32, #tpu.memory_space<vmem>>, vector<8x128xf32>
    %c0_116 = arith.constant 0 : index
    %c0_117 = arith.constant 0 : index
    %259 = vector.load %arg8[%c0_116, %c0_117] : memref<8x128xf32, #tpu.memory_space<vmem>>, vector<8x128xf32>
    %260 = arith.truncf %258 : vector<8x128xf32> to vector<8x128xbf16>
    %c0_118 = arith.constant 0 : index
    %c0_119 = arith.constant 0 : index
    %261 = vector.load %arg3[%c0_118, %c0_119] : memref<128x512xbf16, #tpu.memory_space<vmem>>, vector<128x512xbf16>
    %cst_120 = arith.constant dense<0.000000e+00> : vector<8x512xf32>
    %262 = tpu.matmul %260, %261, %cst_120 {dimension_numbers = #tpu.dot_dimension_numbers<[1], [0], [0], [1], [0, 0, 1, 1], [], []>} : vector<8x128xbf16>, vector<128x512xbf16>, vector<8x512xf32> -> vector<8x512xf32>
    %263 = arith.addf %257, %262 : vector<8x512xf32>
    %264 = vector.extract_strided_slice %263 {offsets = [0, 0], sizes = [8, 128], strides = [1, 1]} : vector<8x512xf32> to vector<8x128xf32>
    %265 = arith.negf %264 : vector<8x128xf32>
    %266 = math.exp %265 : vector<8x128xf32>
    %cst_121 = arith.constant 1.000000e+00 : f32
    %267 = vector.broadcast %cst_121 : f32 to vector<8x128xf32>
    %268 = arith.addf %267, %266 : vector<8x128xf32>
    %269 = arith.divf %267, %268 : vector<8x128xf32>
    %270 = vector.extract_strided_slice %263 {offsets = [0, 128], sizes = [8, 128], strides = [1, 1]} : vector<8x512xf32> to vector<8x128xf32>
    %271 = arith.negf %270 : vector<8x128xf32>
    %272 = math.exp %271 : vector<8x128xf32>
    %cst_122 = arith.constant 1.000000e+00 : f32
    %273 = vector.broadcast %cst_122 : f32 to vector<8x128xf32>
    %274 = arith.addf %273, %272 : vector<8x128xf32>
    %275 = arith.divf %273, %274 : vector<8x128xf32>
    %276 = vector.extract_strided_slice %263 {offsets = [0, 256], sizes = [8, 128], strides = [1, 1]} : vector<8x512xf32> to vector<8x128xf32>
    %277 = math.tanh %276 : vector<8x128xf32>
    %278 = vector.extract_strided_slice %263 {offsets = [0, 384], sizes = [8, 128], strides = [1, 1]} : vector<8x512xf32> to vector<8x128xf32>
    %279 = arith.negf %278 : vector<8x128xf32>
    %280 = math.exp %279 : vector<8x128xf32>
    %cst_123 = arith.constant 1.000000e+00 : f32
    %281 = vector.broadcast %cst_123 : f32 to vector<8x128xf32>
    %282 = arith.addf %281, %280 : vector<8x128xf32>
    %283 = arith.divf %281, %282 : vector<8x128xf32>
    %284 = arith.mulf %275, %259 : vector<8x128xf32>
    %285 = arith.mulf %269, %277 : vector<8x128xf32>
    %286 = arith.addf %284, %285 : vector<8x128xf32>
    %287 = math.tanh %286 : vector<8x128xf32>
    %288 = arith.mulf %283, %287 : vector<8x128xf32>
    %c0_124 = arith.constant 0 : index
    %c0_125 = arith.constant 0 : index
    %289 = vector.load %arg7[%c0_124, %c0_125] : memref<8x128xf32, #tpu.memory_space<vmem>>, vector<8x128xf32>
    tpu.vector_store %arg7[%c0_124, %c0_125], %288 {strides = array<i32>} : memref<8x128xf32, #tpu.memory_space<vmem>>, vector<8x128xf32>,
    %c0_126 = arith.constant 0 : index
    %c0_127 = arith.constant 0 : index
    %290 = vector.load %arg8[%c0_126, %c0_127] : memref<8x128xf32, #tpu.memory_space<vmem>>, vector<8x128xf32>
    tpu.vector_store %arg8[%c0_126, %c0_127], %286 {strides = array<i32>} : memref<8x128xf32, #tpu.memory_space<vmem>>, vector<8x128xf32>,
    %c8_i32 = arith.constant 8 : i32
    %c0_i32_128 = arith.constant 0 : i32
    %291 = arith.cmpi eq, %arg1, %c0_i32_128 : i32
    %292 = arith.extui %291 : i1 to i32
    %c0_i32_129 = arith.constant 0 : i32
    %293 = arith.cmpi ne, %292, %c0_i32_129 : i32
    scf.if %293 {
      %c0_130 = arith.constant 0 : index
      %c0_131 = arith.constant 0 : index
      %294 = vector.load %arg7[%c0_130, %c0_131] : memref<8x128xf32, #tpu.memory_space<vmem>>, vector<8x128xf32>
      %295 = arith.truncf %294 : vector<8x128xf32> to vector<8x128xbf16>
      %c0_132 = arith.constant 0 : index
      %c0_133 = arith.constant 0 : index
      %296 = vector.load %arg4[%c0_132, %c0_133] : memref<128x4xbf16, #tpu.memory_space<vmem>>, vector<128x4xbf16>
      %cst_134 = arith.constant dense<0.000000e+00> : vector<8x4xf32>
      %297 = tpu.matmul %295, %296, %cst_134 {dimension_numbers = #tpu.dot_dimension_numbers<[1], [0], [0], [1], [0, 0, 1, 1], [], []>} : vector<8x128xbf16>, vector<128x4xbf16>, vector<8x4xf32> -> vector<8x4xf32>
      %c0_135 = arith.constant 0 : index
      %c0_136 = arith.constant 0 : index
      %298 = vector.load %arg5[%c0_135, %c0_136] : memref<1x4xf32, #tpu.memory_space<vmem>>, vector<1x4xf32>
      %299 = vector.broadcast %298 : vector<1x4xf32> to vector<8x4xf32>
      %300 = arith.addf %297, %299 : vector<8x4xf32>
      %c0_137 = arith.constant 0 : index
      %c0_138 = arith.constant 0 : index
      %301 = vector.load %arg6[%c0_137, %c0_138] : memref<8x4xf32, #tpu.memory_space<vmem>>, vector<8x4xf32>
      tpu.vector_store %arg6[%c0_137, %c0_138], %300 {strides = array<i32>} : memref<8x4xf32, #tpu.memory_space<vmem>>, vector<8x4xf32>,
    } else {
    }
    return
  }
  func.func @transform_0(%arg0: i32, %arg1: i32) -> (i32, i32, i32) {
    %c0_i32 = arith.constant 0 : i32
    %c0_i32_0 = arith.constant 0 : i32
    return %arg1, %arg0, %c0_i32 : i32, i32, i32
  }
  func.func @transform_1(%arg0: i32, %arg1: i32) -> (i32, i32) {
    %c0_i32 = arith.constant 0 : i32
    %c0_i32_0 = arith.constant 0 : i32
    %c0_i32_1 = arith.constant 0 : i32
    return %c0_i32, %c0_i32_0 : i32, i32
  }
  func.func @transform_2(%arg0: i32, %arg1: i32) -> (i32, i32) {
    %c0_i32 = arith.constant 0 : i32
    %c0_i32_0 = arith.constant 0 : i32
    %c0_i32_1 = arith.constant 0 : i32
    return %c0_i32, %c0_i32_0 : i32, i32
  }
  func.func @transform_3(%arg0: i32, %arg1: i32) -> (i32, i32) {
    %c0_i32 = arith.constant 0 : i32
    %c0_i32_0 = arith.constant 0 : i32
    %c0_i32_1 = arith.constant 0 : i32
    return %c0_i32, %c0_i32_0 : i32, i32
  }
  func.func @transform_4(%arg0: i32, %arg1: i32) -> (i32, i32) {
    %c0_i32 = arith.constant 0 : i32
    %c0_i32_0 = arith.constant 0 : i32
    return %arg0, %c0_i32 : i32, i32
  }
}

module attributes {stable_mosaic.version = 11 : i64} {
  func.func @_proj_kernel(%arg0: i32, %arg1: memref<64x16xbf16, #tpu.memory_space<vmem>>, %arg2: memref<16x512xbf16, #tpu.memory_space<vmem>>, %arg3: memref<1x512xf32, #tpu.memory_space<vmem>>, %arg4: memref<64x512xf32, #tpu.memory_space<vmem>>) attributes {dimension_semantics = [#tpu.dimension_semantics<parallel>], iteration_bounds = array<i64: 1>, scalar_prefetch = 0 : i64, scratch_operands = 0 : i64, tpu.core_type = #tpu.core_type<tc>, window_params = [{transform_indices = @transform_0, window_bounds = array<i64: 64, 16>}, {pipeline_mode = #tpu.pipeline_mode<synchronous>, transform_indices = @transform_1, window_bounds = array<i64: 16, 512>}, {pipeline_mode = #tpu.pipeline_mode<synchronous>, transform_indices = @transform_2, window_bounds = array<i64: 1, 512>}, {transform_indices = @transform_3, window_bounds = array<i64: 64, 512>}]} {
    %c0 = arith.constant 0 : index
    %c0_0 = arith.constant 0 : index
    %0 = vector.load %arg1[%c0, %c0_0] : memref<64x16xbf16, #tpu.memory_space<vmem>>, vector<64x16xbf16>
    %c0_1 = arith.constant 0 : index
    %c0_2 = arith.constant 0 : index
    %1 = vector.load %arg2[%c0_1, %c0_2] : memref<16x512xbf16, #tpu.memory_space<vmem>>, vector<16x512xbf16>
    %cst = arith.constant dense<0.000000e+00> : vector<64x512xf32>
    %2 = tpu.matmul %0, %1, %cst {dimension_numbers = #tpu.dot_dimension_numbers<[1], [0], [0], [1], [0, 0, 1, 1], [], []>} : vector<64x16xbf16>, vector<16x512xbf16>, vector<64x512xf32> -> vector<64x512xf32>
    %c0_3 = arith.constant 0 : index
    %c0_4 = arith.constant 0 : index
    %3 = vector.load %arg3[%c0_3, %c0_4] : memref<1x512xf32, #tpu.memory_space<vmem>>, vector<1x512xf32>
    %4 = vector.broadcast %3 : vector<1x512xf32> to vector<64x512xf32>
    %5 = arith.addf %2, %4 : vector<64x512xf32>
    %c0_5 = arith.constant 0 : index
    %c0_6 = arith.constant 0 : index
    %6 = vector.load %arg4[%c0_5, %c0_6] : memref<64x512xf32, #tpu.memory_space<vmem>>, vector<64x512xf32>
    tpu.vector_store %arg4[%c0_5, %c0_6], %5 {strides = array<i32>} : memref<64x512xf32, #tpu.memory_space<vmem>>, vector<64x512xf32>,
    return
  }
  func.func @transform_0(%arg0: i32) -> (i32, i32) {
    %c0_i32 = arith.constant 0 : i32
    %c0_i32_0 = arith.constant 0 : i32
    return %arg0, %c0_i32 : i32, i32
  }
  func.func @transform_1(%arg0: i32) -> (i32, i32) {
    %c0_i32 = arith.constant 0 : i32
    %c0_i32_0 = arith.constant 0 : i32
    %c0_i32_1 = arith.constant 0 : i32
    return %c0_i32, %c0_i32_0 : i32, i32
  }
  func.func @transform_2(%arg0: i32) -> (i32, i32) {
    %c0_i32 = arith.constant 0 : i32
    %c0_i32_0 = arith.constant 0 : i32
    %c0_i32_1 = arith.constant 0 : i32
    return %c0_i32, %c0_i32_0 : i32, i32
  }
  func.func @transform_3(%arg0: i32) -> (i32, i32) {
    %c0_i32 = arith.constant 0 : i32
    %c0_i32_0 = arith.constant 0 : i32
    return %arg0, %c0_i32 : i32, i32
  }
}

module attributes {stable_mosaic.version = 11 : i64} {
  func.func @_proj_kernel(%arg0: i32, %arg1: memref<64x128xbf16, #tpu.memory_space<vmem>>, %arg2: memref<128x512xbf16, #tpu.memory_space<vmem>>, %arg3: memref<1x512xf32, #tpu.memory_space<vmem>>, %arg4: memref<64x512xf32, #tpu.memory_space<vmem>>) attributes {dimension_semantics = [#tpu.dimension_semantics<parallel>], iteration_bounds = array<i64: 1>, scalar_prefetch = 0 : i64, scratch_operands = 0 : i64, tpu.core_type = #tpu.core_type<tc>, window_params = [{transform_indices = @transform_0, window_bounds = array<i64: 64, 128>}, {pipeline_mode = #tpu.pipeline_mode<synchronous>, transform_indices = @transform_1, window_bounds = array<i64: 128, 512>}, {pipeline_mode = #tpu.pipeline_mode<synchronous>, transform_indices = @transform_2, window_bounds = array<i64: 1, 512>}, {transform_indices = @transform_3, window_bounds = array<i64: 64, 512>}]} {
    %c0 = arith.constant 0 : index
    %c0_0 = arith.constant 0 : index
    %0 = vector.load %arg1[%c0, %c0_0] : memref<64x128xbf16, #tpu.memory_space<vmem>>, vector<64x128xbf16>
    %c0_1 = arith.constant 0 : index
    %c0_2 = arith.constant 0 : index
    %1 = vector.load %arg2[%c0_1, %c0_2] : memref<128x512xbf16, #tpu.memory_space<vmem>>, vector<128x512xbf16>
    %cst = arith.constant dense<0.000000e+00> : vector<64x512xf32>
    %2 = tpu.matmul %0, %1, %cst {dimension_numbers = #tpu.dot_dimension_numbers<[1], [0], [0], [1], [0, 0, 1, 1], [], []>} : vector<64x128xbf16>, vector<128x512xbf16>, vector<64x512xf32> -> vector<64x512xf32>
    %c0_3 = arith.constant 0 : index
    %c0_4 = arith.constant 0 : index
    %3 = vector.load %arg3[%c0_3, %c0_4] : memref<1x512xf32, #tpu.memory_space<vmem>>, vector<1x512xf32>
    %4 = vector.broadcast %3 : vector<1x512xf32> to vector<64x512xf32>
    %5 = arith.addf %2, %4 : vector<64x512xf32>
    %c0_5 = arith.constant 0 : index
    %c0_6 = arith.constant 0 : index
    %6 = vector.load %arg4[%c0_5, %c0_6] : memref<64x512xf32, #tpu.memory_space<vmem>>, vector<64x512xf32>
    tpu.vector_store %arg4[%c0_5, %c0_6], %5 {strides = array<i32>} : memref<64x512xf32, #tpu.memory_space<vmem>>, vector<64x512xf32>,
    return
  }
  func.func @transform_0(%arg0: i32) -> (i32, i32) {
    %c0_i32 = arith.constant 0 : i32
    %c0_i32_0 = arith.constant 0 : i32
    return %arg0, %c0_i32 : i32, i32
  }
  func.func @transform_1(%arg0: i32) -> (i32, i32) {
    %c0_i32 = arith.constant 0 : i32
    %c0_i32_0 = arith.constant 0 : i32
    %c0_i32_1 = arith.constant 0 : i32
    return %c0_i32, %c0_i32_0 : i32, i32
  }
  func.func @transform_2(%arg0: i32) -> (i32, i32) {
    %c0_i32 = arith.constant 0 : i32
    %c0_i32_0 = arith.constant 0 : i32
    %c0_i32_1 = arith.constant 0 : i32
    return %c0_i32, %c0_i32_0 : i32, i32
  }
  func.func @transform_3(%arg0: i32) -> (i32, i32) {
    %c0_i32 = arith.constant 0 : i32
    %c0_i32_0 = arith.constant 0 : i32
    return %arg0, %c0_i32 : i32, i32
  }
}

</mosaic_0001>

<bundles_post_ra>
// kernel: basic_lstm_forward.4
= control target key start
LH: loop header
LB: loop body
LE: loop exit
PB: predicated region body
PF: predicated region fallthrough
CT: control target
= control target key end

     0   :  { %v311_v1 = vmov 0   ;;  %vm89_vm0 = vcmask 130048   ;;  %v29_v9 = vlaneseq  ;;  %s503_s1 = inlined_call_operand.vmem [shape: bf16[16,512], index: 1, kind: input, shape index: {}]   ;;  %s504_s0 = inlined_call_operand.vmem [shape: bf16[64,16], index: 0, kind: input, shape index: {}]   ;;  %s505_s2 = inlined_call_operand.vmem [shape: f32[1,512], index: 2, kind: input, shape index: {}]   ;;  %s506_s3 = inlined_call_operand.vmem [shape: f32[64,512], index: 3, kind: output, shape index: {}]  }
   0x1   :  { %v301_v0 = vld [vmem:[%s503_s1 + $0x4] ss:$16 sps:$4 sm:$0xff]   ;;  %134 = vmatprep.mubr.bf16.mxu0 %v311_v1  ;;  %207 = vmatprep.mubr.bf16.mxu1 %v311_v1  ;;  %v303_v2 = vld [vmem:[%s503_s1 + $0xc] ss:$16 sps:$4 sm:$0xff]   ;;  %v305_v3 = vld [vmem:[%s503_s1] ss:$16 sps:$4 sm:$0xff]  }
   0x2   :  { %116 = vmatprep.subr.bf16.mxu0 %v301_v0  ;;  %v306_v4 = vld [vmem:[%s503_s1 + $0x8] ss:$16 sps:$4 sm:$0xff]   ;;  %189 = vmatprep.subr.bf16.mxu1 %v303_v2  ;;  %v307_v5 = vld [vmem:[%s504_s0] sm:$0xff]   ;;  %v309_v7 = vld [vmem:[%s504_s0 + $0x10] sm:$0xff]   ;;  %v30_v10 = vshrl.u32 %v29_v9, 7 }
   0x3   :  { %117 = vmatpush1.bf16.msra.mxu0 %v305_v3  ;;  %190 = vmatpush1.bf16.msra.mxu1 %v306_v4  ;;  %v308_v6 = vld [vmem:[%s504_s0 + $0x8] sm:$0xff]   ;;  %v310_v8 = vld [vmem:[%s504_s0 + $0x18] sm:$0xff]   ;;  %v27_v13 = vld [vmem:[%s505_s2] sm:$0xf] }
   0x4   :  { %v31_v11 = vsub.s32 0, %v30_v10  ;;  %v39_v12 = vsub.s32 2, %v30_v10  ;;  %v35_v14 = vsub.s32 1, %v30_v10  ;;  %v43_v15 = vsub.s32 3, %v30_v10 }
   0x6   :  { %292 = vmatmul.mubr.msk.bf16.vlgmr.msra.gmra.mxu0 %vm89_vm0, %v307_v5  ;;  %296 = vmatmul.mubr.msk.bf16.vlgmr.msra.gmra.mxu1 %vm89_vm0, %v307_v5  ;;  %v367_v16 = vrot.slane %v27_v13, %v31_v11  ;;  %v369_v17 = vrot.slane %v27_v13, %v39_v12  ;;  %v371_v18 = vrot.slane %v27_v13, %v35_v14 }
   0x7   :  { %144 = vmatprep.mubr.bf16.mxu0 %v311_v1  ;;  %217 = vmatprep.mubr.bf16.mxu1 %v311_v1  ;;  %v373_v19 = vrot.slane %v27_v13, %v43_v15 }
   0xe   :  { %293 = vmatmul.mubr.msk.bf16.gmra.mxu0 %vm89_vm0, %v308_v6  ;;  %297 = vmatmul.mubr.msk.bf16.gmra.mxu1 %vm89_vm0, %v308_v6 }
   0xf   :  { %154 = vmatprep.mubr.bf16.mxu0 %v311_v1  ;;  %227 = vmatprep.mubr.bf16.mxu1 %v311_v1 }
  0x16   :  { %294 = vmatmul.mubr.msk.bf16.gmra.mxu0 %vm89_vm0, %v309_v7  ;;  %298 = vmatmul.mubr.msk.bf16.gmra.mxu1 %vm89_vm0, %v309_v7 }
  0x17   :  { %164 = vmatprep.mubr.bf16.mxu0 %v311_v1  ;;  %237 = vmatprep.mubr.bf16.mxu1 %v311_v1 }
  0x1e   :  { %295 = vmatmul.mubr.msk.bf16.gmra.mxu0 %vm89_vm0, %v310_v8  ;;  %299 = vmatmul.mubr.msk.bf16.gmra.mxu1 %vm89_vm0, %v310_v8 }
  0xc6   :  { %v136_v20 = vpop.f32.mrf.mxu0  ;;  %v209_v21 = vpop.f32.mrf.mxu1 }
  0xc7   :  { %v137_v22 = vadd.f32 %v136_v20, %v367_v16  ;;  %v210_v23 = vadd.f32 %v209_v21, %v369_v17 }
  0xc8   :  { %v138_v24 = vpop.f32.mrf.mxu0  ;;  %v211_v25 = vpop.f32.mrf.mxu1 }
  0xc9   :  { %248 = vst [vmem:[%s506_s3] sm:$0xff] %v137_v22  ;;  %250 = vst [vmem:[%s506_s3 + $0x10] sm:$0xff] %v210_v23  ;;  %v139_v26 = vadd.f32 %v138_v24, %v371_v18  ;;  %v212_v27 = vadd.f32 %v211_v25, %v373_v19 }
  0xca   :  { %v140_v28 = vpop.f32.mrf.mxu0  ;;  %v213_v29 = vpop.f32.mrf.mxu1 }
  0xcb   :  { %249 = vst [vmem:[%s506_s3 + $0x8] sm:$0xff] %v139_v26  ;;  %251 = vst [vmem:[%s506_s3 + $0x18] sm:$0xff] %v212_v27  ;;  %v141_v30 = vadd.f32 %v140_v28, %v367_v16  ;;  %v214_v31 = vadd.f32 %v213_v29, %v369_v17 }
  0xcc   :  { %v142_v32 = vpop.f32.mrf.mxu0  ;;  %v215_v33 = vpop.f32.mrf.mxu1 }
  0xcd   :  { %252 = vst [vmem:[%s506_s3 + $0x20] sm:$0xff] %v141_v30  ;;  %254 = vst [vmem:[%s506_s3 + $0x30] sm:$0xff] %v214_v31  ;;  %v143_v34 = vadd.f32 %v142_v32, %v371_v18  ;;  %v216_v35 = vadd.f32 %v215_v33, %v373_v19 }
  0xce   :  { %v146_v36 = vpop.f32.mrf.mxu0  ;;  %v219_v37 = vpop.f32.mrf.mxu1 }
  0xcf   :  { %253 = vst [vmem:[%s506_s3 + $0x28] sm:$0xff] %v143_v34  ;;  %255 = vst [vmem:[%s506_s3 + $0x38] sm:$0xff] %v216_v35  ;;  %v147_v38 = vadd.f32 %v146_v36, %v367_v16  ;;  %v220_v39 = vadd.f32 %v219_v37, %v369_v17 }
  0xd0   :  { %v148_v40 = vpop.f32.mrf.mxu0  ;;  %v221_v41 = vpop.f32.mrf.mxu1 }
  0xd1   :  { %256 = vst [vmem:[%s506_s3 + $0x40] sm:$0xff] %v147_v38  ;;  %258 = vst [vmem:[%s506_s3 + $0x50] sm:$0xff] %v220_v39  ;;  %v149_v42 = vadd.f32 %v148_v40, %v371_v18  ;;  %v222_v43 = vadd.f32 %v221_v41, %v373_v19 }
  0xd2   :  { %v150_v44 = vpop.f32.mrf.mxu0  ;;  %v223_v45 = vpop.f32.mrf.mxu1 }
  0xd3   :  { %257 = vst [vmem:[%s506_s3 + $0x48] sm:$0xff] %v149_v42  ;;  %259 = vst [vmem:[%s506_s3 + $0x58] sm:$0xff] %v222_v43  ;;  %v151_v46 = vadd.f32 %v150_v44, %v367_v16  ;;  %v224_v47 = vadd.f32 %v223_v45, %v369_v17 }
  0xd4   :  { %v152_v48 = vpop.f32.mrf.mxu0  ;;  %v225_v49 = vpop.f32.mrf.mxu1 }
  0xd5   :  { %260 = vst [vmem:[%s506_s3 + $0x60] sm:$0xff] %v151_v46  ;;  %262 = vst [vmem:[%s506_s3 + $0x70] sm:$0xff] %v224_v47  ;;  %v153_v50 = vadd.f32 %v152_v48, %v371_v18  ;;  %v226_v51 = vadd.f32 %v225_v49, %v373_v19 }
  0xd6   :  { %v156_v52 = vpop.f32.mrf.mxu0  ;;  %v229_v53 = vpop.f32.mrf.mxu1 }
  0xd7   :  { %261 = vst [vmem:[%s506_s3 + $0x68] sm:$0xff] %v153_v50  ;;  %263 = vst [vmem:[%s506_s3 + $0x78] sm:$0xff] %v226_v51  ;;  %v157_v54 = vadd.f32 %v156_v52, %v367_v16  ;;  %v230_v55 = vadd.f32 %v229_v53, %v369_v17 }
  0xd8   :  { %v158_v56 = vpop.f32.mrf.mxu0  ;;  %v231_v57 = vpop.f32.mrf.mxu1 }
  0xd9   :  { %264 = vst [vmem:[%s506_s3 + $0x80] sm:$0xff] %v157_v54  ;;  %266 = vst [vmem:[%s506_s3 + $0x90] sm:$0xff] %v230_v55  ;;  %v159_v58 = vadd.f32 %v158_v56, %v371_v18  ;;  %v232_v59 = vadd.f32 %v231_v57, %v373_v19 }
  0xda   :  { %v160_v60 = vpop.f32.mrf.mxu0  ;;  %v233_v61 = vpop.f32.mrf.mxu1 }
  0xdb   :  { %265 = vst [vmem:[%s506_s3 + $0x88] sm:$0xff] %v159_v58  ;;  %267 = vst [vmem:[%s506_s3 + $0x98] sm:$0xff] %v232_v59  ;;  %v161_v62 = vadd.f32 %v160_v60, %v367_v16  ;;  %v234_v63 = vadd.f32 %v233_v61, %v369_v17 }
  0xdc   :  { %v162_v0 = vpop.f32.mrf.mxu0  ;;  %v235_v1 = vpop.f32.mrf.mxu1 }
  0xdd   :  { %268 = vst [vmem:[%s506_s3 + $0xa0] sm:$0xff] %v161_v62  ;;  %270 = vst [vmem:[%s506_s3 + $0xb0] sm:$0xff] %v234_v63  ;;  %v163_v2 = vadd.f32 %v162_v0, %v371_v18  ;;  %v236_v3 = vadd.f32 %v235_v1, %v373_v19 }
  0xde   :  { %v166_v4 = vpop.f32.mrf.mxu0  ;;  %v239_v5 = vpop.f32.mrf.mxu1 }
  0xdf   :  { %269 = vst [vmem:[%s506_s3 + $0xa8] sm:$0xff] %v163_v2  ;;  %271 = vst [vmem:[%s506_s3 + $0xb8] sm:$0xff] %v236_v3  ;;  %v167_v6 = vadd.f32 %v166_v4, %v367_v16  ;;  %v240_v7 = vadd.f32 %v239_v5, %v369_v17 }
  0xe0   :  { %v168_v8 = vpop.f32.mrf.mxu0  ;;  %v241_v9 = vpop.f32.mrf.mxu1 }
  0xe1   :  { %272 = vst [vmem:[%s506_s3 + $0xc0] sm:$0xff] %v167_v6  ;;  %274 = vst [vmem:[%s506_s3 + $0xd0] sm:$0xff] %v240_v7  ;;  %v169_v10 = vadd.f32 %v168_v8, %v371_v18  ;;  %v242_v11 = vadd.f32 %v241_v9, %v373_v19 }
  0xe2   :  { %v170_v12 = vpop.f32.mrf.mxu0  ;;  %v243_v13 = vpop.f32.mrf.mxu1 }
  0xe3   :  { %273 = vst [vmem:[%s506_s3 + $0xc8] sm:$0xff] %v169_v10  ;;  %275 = vst [vmem:[%s506_s3 + $0xd8] sm:$0xff] %v242_v11  ;;  %v171_v14 = vadd.f32 %v170_v12, %v367_v16  ;;  %v244_v15 = vadd.f32 %v243_v13, %v369_v17 }
  0xe4   :  { %v172_v20 = vpop.f32.mrf.mxu0  ;;  %v245_v21 = vpop.f32.mrf.mxu1 }
  0xe5   :  { %276 = vst [vmem:[%s506_s3 + $0xe0] sm:$0xff] %v171_v14  ;;  %278 = vst [vmem:[%s506_s3 + $0xf0] sm:$0xff] %v244_v15  ;;  %v173_v22 = vadd.f32 %v172_v20, %v371_v18  ;;  %v246_v23 = vadd.f32 %v245_v21, %v373_v19 }
  0xe7   :  { %277 = vst [vmem:[%s506_s3 + $0xe8] sm:$0xff] %v173_v22  ;;  %279 = vst [vmem:[%s506_s3 + $0xf8] sm:$0xff] %v246_v23 }

// kernel: basic_lstm_forward.6
= control target key start
LH: loop header
LB: loop body
LE: loop exit
PB: predicated region body
PF: predicated region fallthrough
CT: control target
= control target key end

     0   :  { %v532_v1 = vmov 0   ;;  %v57_v37 = vlaneseq  ;;  %s808_s1 = inlined_call_operand.vmem [shape: bf16[128,512], index: 1, kind: input, shape index: {}]   ;;  %s809_s0 = inlined_call_operand.vmem [shape: bf16[64,128], index: 0, kind: input, shape index: {}]   ;;  %s810_s2 = inlined_call_operand.vmem [shape: f32[1,512], index: 2, kind: input, shape index: {}]   ;;  %s811_s3 = inlined_call_operand.vmem [shape: f32[64,512], index: 3, kind: output, shape index: {}]  }
   0x1   :  { %v480_v0 = vld [vmem:[%s808_s1 + $0xe4] ss:$16 sps:$4 sm:$0xff]   ;;  %293 = vmatprep.mubr.bf16.mxu0 %v532_v1  ;;  %366 = vmatprep.mubr.bf16.mxu1 %v532_v1  ;;  %v482_v2 = vld [vmem:[%s808_s1 + $0xec] ss:$16 sps:$4 sm:$0xff]   ;;  %v484_v3 = vld [vmem:[%s808_s1 + $0xe0] ss:$16 sps:$4 sm:$0xff]  }
   0x2   :  { %261 = vmatprep.subr.bf16.mxu0 %v480_v0  ;;  %v485_v4 = vld [vmem:[%s808_s1 + $0xe8] ss:$16 sps:$4 sm:$0xff]   ;;  %334 = vmatprep.subr.bf16.mxu1 %v482_v2  ;;  %v486_v5 = vld [vmem:[%s808_s1 + $0xc4] ss:$16 sps:$4 sm:$0xff]   ;;  %v488_v6 = vld [vmem:[%s808_s1 + $0xcc] ss:$16 sps:$4 sm:$0xff]  }
   0x3   :  { %262 = vmatpush1.bf16.msra.mxu0 %v484_v3  ;;  %335 = vmatpush1.bf16.msra.mxu1 %v485_v4  ;;  %v490_v7 = vld [vmem:[%s808_s1 + $0xc0] ss:$16 sps:$4 sm:$0xff]   ;;  %v491_v8 = vld [vmem:[%s808_s1 + $0xc8] ss:$16 sps:$4 sm:$0xff]   ;;  %v492_v9 = vld [vmem:[%s808_s1 + $0xa4] ss:$16 sps:$4 sm:$0xff]  }
   0x4   :  { %263 = vmatprep.subr.bf16.mxu0 %v486_v5  ;;  %336 = vmatprep.subr.bf16.mxu1 %v488_v6  ;;  %v494_v10 = vld [vmem:[%s808_s1 + $0xac] ss:$16 sps:$4 sm:$0xff]   ;;  %v496_v11 = vld [vmem:[%s808_s1 + $0xa0] ss:$16 sps:$4 sm:$0xff]   ;;  %v497_v12 = vld [vmem:[%s808_s1 + $0xa8] ss:$16 sps:$4 sm:$0xff]  }
   0x5   :  { %v498_v13 = vld [vmem:[%s808_s1 + $0x84] ss:$16 sps:$4 sm:$0xff]   ;;  %v500_v14 = vld [vmem:[%s808_s1 + $0x8c] ss:$16 sps:$4 sm:$0xff]   ;;  %v502_v15 = vld [vmem:[%s808_s1 + $0x80] ss:$16 sps:$4 sm:$0xff]  }
   0x6   :  { %v503_v16 = vld [vmem:[%s808_s1 + $0x88] ss:$16 sps:$4 sm:$0xff]   ;;  %v504_v17 = vld [vmem:[%s808_s1 + $0x64] ss:$16 sps:$4 sm:$0xff]   ;;  %v506_v18 = vld [vmem:[%s808_s1 + $0x6c] ss:$16 sps:$4 sm:$0xff]  }
   0x7   :  { %264 = vmatpush1.bf16.msra.mxu0 %v490_v7  ;;  %337 = vmatpush1.bf16.msra.mxu1 %v491_v8  ;;  %v508_v19 = vld [vmem:[%s808_s1 + $0x60] ss:$16 sps:$4 sm:$0xff]   ;;  %v509_v20 = vld [vmem:[%s808_s1 + $0x68] ss:$16 sps:$4 sm:$0xff]   ;;  %v510_v21 = vld [vmem:[%s808_s1 + $0x44] ss:$16 sps:$4 sm:$0xff]  }
   0x8   :  { %265 = vmatprep.subr.bf16.mxu0 %v492_v9  ;;  %338 = vmatprep.subr.bf16.mxu1 %v494_v10  ;;  %v512_v22 = vld [vmem:[%s808_s1 + $0x4c] ss:$16 sps:$4 sm:$0xff]   ;;  %v514_v23 = vld [vmem:[%s808_s1 + $0x40] ss:$16 sps:$4 sm:$0xff]   ;;  %v515_v24 = vld [vmem:[%s808_s1 + $0x48] ss:$16 sps:$4 sm:$0xff]  }
   0x9   :  { %v516_v25 = vld [vmem:[%s808_s1 + $0x24] ss:$16 sps:$4 sm:$0xff]   ;;  %v518_v26 = vld [vmem:[%s808_s1 + $0x2c] ss:$16 sps:$4 sm:$0xff]   ;;  %v520_v27 = vld [vmem:[%s808_s1 + $0x20] ss:$16 sps:$4 sm:$0xff]  }
   0xa   :  { %v521_v28 = vld [vmem:[%s808_s1 + $0x28] ss:$16 sps:$4 sm:$0xff]   ;;  %v522_v29 = vld [vmem:[%s808_s1 + $0x4] ss:$16 sps:$4 sm:$0xff]   ;;  %v524_v30 = vld [vmem:[%s808_s1 + $0xc] ss:$16 sps:$4 sm:$0xff]  }
   0xb   :  { %266 = vmatpush1.bf16.msra.mxu0 %v496_v11  ;;  %339 = vmatpush1.bf16.msra.mxu1 %v497_v12  ;;  %v526_v31 = vld [vmem:[%s808_s1] ss:$16 sps:$4 sm:$0xff]   ;;  %v527_v32 = vld [vmem:[%s808_s1 + $0x8] ss:$16 sps:$4 sm:$0xff]   ;;  %v58_v38 = vshrl.u32 %v57_v37, 7 }
   0xc   :  { %267 = vmatprep.subr.bf16.mxu0 %v498_v13  ;;  %340 = vmatprep.subr.bf16.mxu1 %v500_v14  ;;  %v528_v33 = vld [vmem:[%s809_s0] sm:$0xff]   ;;  %v529_v34 = vld [vmem:[%s809_s0 + $0x8] sm:$0xff]   ;;  %v530_v35 = vld [vmem:[%s809_s0 + $0x10] sm:$0xff]  }
   0xd   :  { %v531_v36 = vld [vmem:[%s809_s0 + $0x18] sm:$0xff]   ;;  %v59_v39 = vsub.s32 0, %v58_v38  ;;  %v67_v40 = vsub.s32 2, %v58_v38  ;;  %v55_v41 = vld [vmem:[%s810_s2] sm:$0xf]  ;;  %v63_v42 = vsub.s32 1, %v58_v38 }
   0xe   :  { %v71_v43 = vsub.s32 3, %v58_v38 }
   0xf   :  { %268 = vmatpush1.bf16.msra.mxu0 %v502_v15  ;;  %341 = vmatpush1.bf16.msra.mxu1 %v503_v16  ;;  %v672_v44 = vrot.slane %v55_v41, %v59_v39  ;;  %v674_v45 = vrot.slane %v55_v41, %v67_v40  ;;  %v676_v46 = vrot.slane %v55_v41, %v63_v42 }
  0x10   :  { %269 = vmatprep.subr.bf16.mxu0 %v504_v17  ;;  %342 = vmatprep.subr.bf16.mxu1 %v506_v18  ;;  %v678_v47 = vrot.slane %v55_v41, %v71_v43 }
  0x13   :  { %270 = vmatpush1.bf16.msra.mxu0 %v508_v19  ;;  %343 = vmatpush1.bf16.msra.mxu1 %v509_v20 }
  0x14   :  { %271 = vmatprep.subr.bf16.mxu0 %v510_v21  ;;  %344 = vmatprep.subr.bf16.mxu1 %v512_v22 }
  0x17   :  { %272 = vmatpush1.bf16.msra.mxu0 %v514_v23  ;;  %345 = vmatpush1.bf16.msra.mxu1 %v515_v24 }
  0x18   :  { %273 = vmatprep.subr.bf16.mxu0 %v516_v25  ;;  %346 = vmatprep.subr.bf16.mxu1 %v518_v26 }
  0x1b   :  { %274 = vmatpush1.bf16.msra.mxu0 %v520_v27  ;;  %347 = vmatpush1.bf16.msra.mxu1 %v521_v28 }
  0x1c   :  { %275 = vmatprep.subr.bf16.mxu0 %v522_v29  ;;  %348 = vmatprep.subr.bf16.mxu1 %v524_v30 }
  0x1f   :  { %276 = vmatpush1.bf16.msra.mxu0 %v526_v31  ;;  %349 = vmatpush1.bf16.msra.mxu1 %v527_v32 }
  0x22   :  { %294 = vmatmul.mubr.bf16.vlgmr.msra.gmra.mxu0 %v528_v33  ;;  %367 = vmatmul.mubr.bf16.vlgmr.msra.gmra.mxu1 %v528_v33 }
  0x23   :  { %303 = vmatprep.mubr.bf16.mxu0 %v532_v1  ;;  %376 = vmatprep.mubr.bf16.mxu1 %v532_v1 }
  0x2a   :  { %304 = vmatmul.mubr.bf16.gmra.mxu0 %v529_v34  ;;  %377 = vmatmul.mubr.bf16.gmra.mxu1 %v529_v34 }
  0x2b   :  { %313 = vmatprep.mubr.bf16.mxu0 %v532_v1  ;;  %386 = vmatprep.mubr.bf16.mxu1 %v532_v1 }
  0x32   :  { %314 = vmatmul.mubr.bf16.gmra.mxu0 %v530_v35  ;;  %387 = vmatmul.mubr.bf16.gmra.mxu1 %v530_v35 }
  0x33   :  { %323 = vmatprep.mubr.bf16.mxu0 %v532_v1  ;;  %396 = vmatprep.mubr.bf16.mxu1 %v532_v1 }
  0x3a   :  { %324 = vmatmul.mubr.bf16.gmra.mxu0 %v531_v36  ;;  %397 = vmatmul.mubr.bf16.gmra.mxu1 %v531_v36 }
  0xe2   :  { %v295_v48 = vpop.f32.mrf.mxu0  ;;  %v368_v49 = vpop.f32.mrf.mxu1 }
  0xe3   :  { %v296_v50 = vadd.f32 %v295_v48, %v672_v44  ;;  %v369_v51 = vadd.f32 %v368_v49, %v674_v45 }
  0xe4   :  { %v297_v52 = vpop.f32.mrf.mxu0  ;;  %v370_v53 = vpop.f32.mrf.mxu1 }
  0xe5   :  { %407 = vst [vmem:[%s811_s3] sm:$0xff] %v296_v50  ;;  %409 = vst [vmem:[%s811_s3 + $0x10] sm:$0xff] %v369_v51  ;;  %v298_v54 = vadd.f32 %v297_v52, %v676_v46  ;;  %v371_v55 = vadd.f32 %v370_v53, %v678_v47 }
  0xe6   :  { %v299_v56 = vpop.f32.mrf.mxu0  ;;  %v372_v57 = vpop.f32.mrf.mxu1 }
  0xe7   :  { %408 = vst [vmem:[%s811_s3 + $0x8] sm:$0xff] %v298_v54  ;;  %410 = vst [vmem:[%s811_s3 + $0x18] sm:$0xff] %v371_v55  ;;  %v300_v58 = vadd.f32 %v299_v56, %v672_v44  ;;  %v373_v59 = vadd.f32 %v372_v57, %v674_v45 }
  0xe8   :  { %v301_v60 = vpop.f32.mrf.mxu0  ;;  %v374_v61 = vpop.f32.mrf.mxu1 }
  0xe9   :  { %411 = vst [vmem:[%s811_s3 + $0x20] sm:$0xff] %v300_v58  ;;  %413 = vst [vmem:[%s811_s3 + $0x30] sm:$0xff] %v373_v59  ;;  %v302_v62 = vadd.f32 %v301_v60, %v676_v46  ;;  %v375_v63 = vadd.f32 %v374_v61, %v678_v47 }
  0xea   :  { %v305_v0 = vpop.f32.mrf.mxu0  ;;  %v378_v1 = vpop.f32.mrf.mxu1 }
  0xeb   :  { %412 = vst [vmem:[%s811_s3 + $0x28] sm:$0xff] %v302_v62  ;;  %414 = vst [vmem:[%s811_s3 + $0x38] sm:$0xff] %v375_v63  ;;  %v306_v2 = vadd.f32 %v305_v0, %v672_v44  ;;  %v379_v3 = vadd.f32 %v378_v1, %v674_v45 }
  0xec   :  { %v307_v4 = vpop.f32.mrf.mxu0  ;;  %v380_v5 = vpop.f32.mrf.mxu1 }
  0xed   :  { %415 = vst [vmem:[%s811_s3 + $0x40] sm:$0xff] %v306_v2  ;;  %417 = vst [vmem:[%s811_s3 + $0x50] sm:$0xff] %v379_v3  ;;  %v308_v6 = vadd.f32 %v307_v4, %v676_v46  ;;  %v381_v7 = vadd.f32 %v380_v5, %v678_v47 }
  0xee   :  { %v309_v8 = vpop.f32.mrf.mxu0  ;;  %v382_v9 = vpop.f32.mrf.mxu1 }
  0xef   :  { %416 = vst [vmem:[%s811_s3 + $0x48] sm:$0xff] %v308_v6  ;;  %418 = vst [vmem:[%s811_s3 + $0x58] sm:$0xff] %v381_v7  ;;  %v310_v10 = vadd.f32 %v309_v8, %v672_v44  ;;  %v383_v11 = vadd.f32 %v382_v9, %v674_v45 }
  0xf0   :  { %v311_v12 = vpop.f32.mrf.mxu0  ;;  %v384_v13 = vpop.f32.mrf.mxu1 }
  0xf1   :  { %419 = vst [vmem:[%s811_s3 + $0x60] sm:$0xff] %v310_v10  ;;  %421 = vst [vmem:[%s811_s3 + $0x70] sm:$0xff] %v383_v11  ;;  %v312_v14 = vadd.f32 %v311_v12, %v676_v46  ;;  %v385_v15 = vadd.f32 %v384_v13, %v678_v47 }
  0xf2   :  { %v315_v16 = vpop.f32.mrf.mxu0  ;;  %v388_v17 = vpop.f32.mrf.mxu1 }
  0xf3   :  { %420 = vst [vmem:[%s811_s3 + $0x68] sm:$0xff] %v312_v14  ;;  %422 = vst [vmem:[%s811_s3 + $0x78] sm:$0xff] %v385_v15  ;;  %v316_v18 = vadd.f32 %v315_v16, %v672_v44  ;;  %v389_v19 = vadd.f32 %v388_v17, %v674_v45 }
  0xf4   :  { %v317_v20 = vpop.f32.mrf.mxu0  ;;  %v390_v21 = vpop.f32.mrf.mxu1 }
  0xf5   :  { %423 = vst [vmem:[%s811_s3 + $0x80] sm:$0xff] %v316_v18  ;;  %425 = vst [vmem:[%s811_s3 + $0x90] sm:$0xff] %v389_v19  ;;  %v318_v22 = vadd.f32 %v317_v20, %v676_v46  ;;  %v391_v23 = vadd.f32 %v390_v21, %v678_v47 }
  0xf6   :  { %v319_v24 = vpop.f32.mrf.mxu0  ;;  %v392_v25 = vpop.f32.mrf.mxu1 }
  0xf7   :  { %424 = vst [vmem:[%s811_s3 + $0x88] sm:$0xff] %v318_v22  ;;  %426 = vst [vmem:[%s811_s3 + $0x98] sm:$0xff] %v391_v23  ;;  %v320_v26 = vadd.f32 %v319_v24, %v672_v44  ;;  %v393_v27 = vadd.f32 %v392_v25, %v674_v45 }
  0xf8   :  { %v321_v28 = vpop.f32.mrf.mxu0  ;;  %v394_v29 = vpop.f32.mrf.mxu1 }
  0xf9   :  { %427 = vst [vmem:[%s811_s3 + $0xa0] sm:$0xff] %v320_v26  ;;  %429 = vst [vmem:[%s811_s3 + $0xb0] sm:$0xff] %v393_v27  ;;  %v322_v30 = vadd.f32 %v321_v28, %v676_v46  ;;  %v395_v31 = vadd.f32 %v394_v29, %v678_v47 }
  0xfa   :  { %v325_v32 = vpop.f32.mrf.mxu0  ;;  %v398_v33 = vpop.f32.mrf.mxu1 }
  0xfb   :  { %428 = vst [vmem:[%s811_s3 + $0xa8] sm:$0xff] %v322_v30  ;;  %430 = vst [vmem:[%s811_s3 + $0xb8] sm:$0xff] %v395_v31  ;;  %v326_v34 = vadd.f32 %v325_v32, %v672_v44  ;;  %v399_v35 = vadd.f32 %v398_v33, %v674_v45 }
  0xfc   :  { %v327_v36 = vpop.f32.mrf.mxu0  ;;  %v400_v37 = vpop.f32.mrf.mxu1 }
  0xfd   :  { %431 = vst [vmem:[%s811_s3 + $0xc0] sm:$0xff] %v326_v34  ;;  %433 = vst [vmem:[%s811_s3 + $0xd0] sm:$0xff] %v399_v35  ;;  %v328_v38 = vadd.f32 %v327_v36, %v676_v46  ;;  %v401_v39 = vadd.f32 %v400_v37, %v678_v47 }
  0xfe   :  { %v329_v40 = vpop.f32.mrf.mxu0  ;;  %v402_v41 = vpop.f32.mrf.mxu1 }
  0xff   :  { %432 = vst [vmem:[%s811_s3 + $0xc8] sm:$0xff] %v328_v38  ;;  %434 = vst [vmem:[%s811_s3 + $0xd8] sm:$0xff] %v401_v39  ;;  %v330_v42 = vadd.f32 %v329_v40, %v672_v44  ;;  %v403_v43 = vadd.f32 %v402_v41, %v674_v45 }
 0x100   :  { %v331_v48 = vpop.f32.mrf.mxu0  ;;  %v404_v49 = vpop.f32.mrf.mxu1 }
 0x101   :  { %435 = vst [vmem:[%s811_s3 + $0xe0] sm:$0xff] %v330_v42  ;;  %437 = vst [vmem:[%s811_s3 + $0xf0] sm:$0xff] %v403_v43  ;;  %v332_v50 = vadd.f32 %v331_v48, %v676_v46  ;;  %v405_v51 = vadd.f32 %v404_v49, %v678_v47 }
 0x103   :  { %436 = vst [vmem:[%s811_s3 + $0xe8] sm:$0xff] %v332_v50  ;;  %438 = vst [vmem:[%s811_s3 + $0xf8] sm:$0xff] %v405_v51 }

// kernel: basic_lstm_forward.5
= control target key start
LH: loop header
LB: loop body
LE: loop exit
PB: predicated region body
PF: predicated region fallthrough
CT: control target
= control target key end

     0   :  { %v3081_v1 = vmov 0   ;;  %v3082_v33 = vmov 0.0|0.0   ;;  %s3834_s1 = inlined_call_operand.vmem [shape: bf16[128,512], index: 1, kind: input, shape index: {}]   ;;  %s3835_s0 = inlined_call_operand.vmem [shape: f32[8,8,512], index: 0, kind: input, shape index: {}]   ;;  %s3836_s2 = inlined_call_operand.vmem [shape: bf16[8,8,128], index: 2, kind: output, shape index: {}]  }
   0x1   :  { %v3101_v0 = vld [vmem:[%s3834_s1 + $0xe4] ss:$16 sps:$4 sm:$0xff]   ;;  %249 = vmatprep.mubr.bf16.mxu0 %v3081_v1  ;;  %290 = vmatprep.mubr.bf16.mxu1 %v3081_v1  ;;  %v3108_v2 = vld [vmem:[%s3834_s1 + $0xe0] ss:$16 sps:$4 sm:$0xff]   ;;  %v3131_v6 = vld [vmem:[%s3834_s1 + $0xec] ss:$16 sps:$4 sm:$0xff]  }
   0x2   :  { %217 = vmatprep.subr.bf16.mxu0 %v3101_v0  ;;  %v3114_v3 = vld [vmem:[%s3834_s1 + $0xc4] ss:$16 sps:$4 sm:$0xff]   ;;  %v3120_v4 = vld [vmem:[%s3834_s1 + $0xc0] ss:$16 sps:$4 sm:$0xff]   ;;  %v3136_v7 = vld [vmem:[%s3834_s1 + $0xe8] ss:$16 sps:$4 sm:$0xff]   ;;  %258 = vmatprep.subr.bf16.mxu1 %v3131_v6 }
   0x3   :  { %218 = vmatpush1.bf16.msra.mxu0 %v3108_v2  ;;  %v3126_v5 = vld [vmem:[%s3834_s1 + $0xa4] ss:$16 sps:$4 sm:$0xff]   ;;  %v3142_v8 = vld [vmem:[%s3834_s1 + $0xa0] ss:$16 sps:$4 sm:$0xff]   ;;  %259 = vmatpush1.bf16.msra.mxu1 %v3136_v7  ;;  %v3155_v10 = vld [vmem:[%s3834_s1 + $0xcc] ss:$16 sps:$4 sm:$0xff]  }
   0x4   :  { %219 = vmatprep.subr.bf16.mxu0 %v3114_v3  ;;  %v3149_v9 = vld [vmem:[%s3834_s1 + $0x84] ss:$16 sps:$4 sm:$0xff]   ;;  %v3160_v11 = vld [vmem:[%s3834_s1 + $0xc8] ss:$16 sps:$4 sm:$0xff]   ;;  %260 = vmatprep.subr.bf16.mxu1 %v3155_v10  ;;  %v3167_v12 = vld [vmem:[%s3834_s1 + $0x80] ss:$16 sps:$4 sm:$0xff]  }
   0x5   :  { %v3172_v13 = vld [vmem:[%s3834_s1 + $0x64] ss:$16 sps:$4 sm:$0xff]   ;;  %v3177_v14 = vld [vmem:[%s3834_s1 + $0xac] ss:$16 sps:$4 sm:$0xff]   ;;  %v3184_v15 = vld [vmem:[%s3834_s1 + $0xa8] ss:$16 sps:$4 sm:$0xff]  }
   0x6   :  { %v3190_v16 = vld [vmem:[%s3834_s1 + $0x8c] ss:$16 sps:$4 sm:$0xff]   ;;  %v3196_v17 = vld [vmem:[%s3834_s1 + $0x60] ss:$16 sps:$4 sm:$0xff]   ;;  %v3202_v18 = vld [vmem:[%s3834_s1 + $0x44] ss:$16 sps:$4 sm:$0xff]  }
   0x7   :  { %220 = vmatpush1.bf16.msra.mxu0 %v3120_v4  ;;  %261 = vmatpush1.bf16.msra.mxu1 %v3160_v11  ;;  %v3208_v19 = vld [vmem:[%s3834_s1 + $0x88] ss:$16 sps:$4 sm:$0xff]   ;;  %v3214_v20 = vld [vmem:[%s3834_s1 + $0x6c] ss:$16 sps:$4 sm:$0xff]   ;;  %v3220_v21 = vld [vmem:[%s3834_s1 + $0x40] ss:$16 sps:$4 sm:$0xff]  }
   0x8   :  { %221 = vmatprep.subr.bf16.mxu0 %v3126_v5  ;;  %262 = vmatprep.subr.bf16.mxu1 %v3177_v14  ;;  %v3225_v22 = vld [vmem:[%s3834_s1 + $0x24] ss:$16 sps:$4 sm:$0xff]   ;;  %v3232_v23 = vld [vmem:[%s3834_s1 + $0x68] ss:$16 sps:$4 sm:$0xff]   ;;  %v3237_v24 = vld [vmem:[%s3834_s1 + $0x20] ss:$16 sps:$4 sm:$0xff]  }
   0x9   :  { %v3243_v25 = vld [vmem:[%s3834_s1 + $0x4c] ss:$16 sps:$4 sm:$0xff]   ;;  %v3248_v26 = vld [vmem:[%s3834_s1 + $0x4] ss:$16 sps:$4 sm:$0xff]   ;;  %v3253_v27 = vld [vmem:[%s3834_s1 + $0x48] ss:$16 sps:$4 sm:$0xff]  }
   0xa   :  { %v3259_v28 = vld [vmem:[%s3834_s1 + $0x2c] ss:$16 sps:$4 sm:$0xff]   ;;  %v3266_v29 = vld [vmem:[%s3834_s1] ss:$16 sps:$4 sm:$0xff]   ;;  %v3272_v30 = vld [vmem:[%s3834_s1 + $0x28] ss:$16 sps:$4 sm:$0xff]  }
   0xb   :  { %222 = vmatpush1.bf16.msra.mxu0 %v3142_v8  ;;  %263 = vmatpush1.bf16.msra.mxu1 %v3184_v15  ;;  %v3278_v31 = vld [vmem:[%s3834_s1 + $0xc] ss:$16 sps:$4 sm:$0xff]   ;;  %v3288_v32 = vld [vmem:[%s3834_s1 + $0x8] ss:$16 sps:$4 sm:$0xff]   ;;  %v18_v34 = vld [vmem:[%s3835_s0] sm:$0xff] }
   0xc   :  { %223 = vmatprep.subr.bf16.mxu0 %v3149_v9  ;;  %264 = vmatprep.subr.bf16.mxu1 %v3190_v16  ;;  %v19_v36 = vld [vmem:[%s3835_s0 + $0x8] sm:$0xff]  ;;  %v21_v46 = vld [vmem:[%s3835_s0 + $0x18] sm:$0xff]  ;;  %v20_v49 = vld [vmem:[%s3835_s0 + $0x10] sm:$0xff] }
   0xf   :  { %224 = vmatpush1.bf16.msra.mxu0 %v3167_v12  ;;  %265 = vmatpush1.bf16.msra.mxu1 %v3208_v19 }
  0x10   :  { %225 = vmatprep.subr.bf16.mxu0 %v3172_v13  ;;  %266 = vmatprep.subr.bf16.mxu1 %v3214_v20 }
  0x13   :  { %226 = vmatpush1.bf16.msra.mxu0 %v3196_v17  ;;  %267 = vmatpush1.bf16.msra.mxu1 %v3232_v23 }
  0x14   :  { %227 = vmatprep.subr.bf16.mxu0 %v3202_v18  ;;  %268 = vmatprep.subr.bf16.mxu1 %v3243_v25 }
  0x17   :  { %228 = vmatpush1.bf16.msra.mxu0 %v3220_v21  ;;  %269 = vmatpush1.bf16.msra.mxu1 %v3253_v27 }
  0x18   :  { %229 = vmatprep.subr.bf16.mxu0 %v3225_v22  ;;  %270 = vmatprep.subr.bf16.mxu1 %v3259_v28 }
  0x1b   :  { %230 = vmatpush1.bf16.msra.mxu0 %v3237_v24  ;;  %271 = vmatpush1.bf16.msra.mxu1 %v3272_v30 }
  0x1c   :  { %231 = vmatprep.subr.bf16.mxu0 %v3248_v26  ;;  %272 = vmatprep.subr.bf16.mxu1 %v3278_v31 }
  0x1f   :  { %232 = vmatpush1.bf16.msra.mxu0 %v3266_v29  ;;  %273 = vmatpush1.bf16.msra.mxu1 %v3288_v32 }
  0x20   :  { %531 = vmatprep.subr.bf16.mxu0 %v3101_v0  ;;  %572 = vmatprep.subr.bf16.mxu1 %v3131_v6 }
  0x22   :  { %250 = vmatmul.mubr.bf16.vlgmr.msra.gmra.mxu0 %v3082_v33  ;;  %291 = vmatmul.mubr.bf16.vlgmr.msra.gmra.mxu1 %v3082_v33 }
  0x23   :  { %532 = vmatpush1.bf16.msra.mxu0 %v3108_v2  ;;  %563 = vmatprep.mubr.bf16.mxu0 %v3081_v1 }
  0x24   :  { %533 = vmatprep.subr.bf16.mxu0 %v3114_v3  ;;  %573 = vmatpush1.bf16.msra.mxu1 %v3136_v7 }
  0x25   :  { %574 = vmatprep.subr.bf16.mxu1 %v3155_v10  ;;  %604 = vmatprep.mubr.bf16.mxu1 %v3081_v1 }
  0x27   :  { %534 = vmatpush1.bf16.msra.mxu0 %v3120_v4 }
  0x28   :  { %535 = vmatprep.subr.bf16.mxu0 %v3126_v5  ;;  %575 = vmatpush1.bf16.msra.mxu1 %v3160_v11 }
  0x29   :  { %576 = vmatprep.subr.bf16.mxu1 %v3177_v14 }
  0x2b   :  { %536 = vmatpush1.bf16.msra.mxu0 %v3142_v8 }
  0x2c   :  { %537 = vmatprep.subr.bf16.mxu0 %v3149_v9  ;;  %577 = vmatpush1.bf16.msra.mxu1 %v3184_v15 }
  0x2d   :  { %578 = vmatprep.subr.bf16.mxu1 %v3190_v16 }
  0x2f   :  { %538 = vmatpush1.bf16.msra.mxu0 %v3167_v12 }
  0x30   :  { %539 = vmatprep.subr.bf16.mxu0 %v3172_v13  ;;  %579 = vmatpush1.bf16.msra.mxu1 %v3208_v19 }
  0x31   :  { %580 = vmatprep.subr.bf16.mxu1 %v3214_v20 }
  0x33   :  { %540 = vmatpush1.bf16.msra.mxu0 %v3196_v17 }
  0x34   :  { %541 = vmatprep.subr.bf16.mxu0 %v3202_v18  ;;  %581 = vmatpush1.bf16.msra.mxu1 %v3232_v23 }
  0x35   :  { %582 = vmatprep.subr.bf16.mxu1 %v3243_v25 }
  0x37   :  { %542 = vmatpush1.bf16.msra.mxu0 %v3220_v21 }
  0x38   :  { %543 = vmatprep.subr.bf16.mxu0 %v3225_v22  ;;  %583 = vmatpush1.bf16.msra.mxu1 %v3253_v27 }
  0x39   :  { %584 = vmatprep.subr.bf16.mxu1 %v3259_v28 }
  0x3b   :  { %544 = vmatpush1.bf16.msra.mxu0 %v3237_v24 }
  0x3c   :  { %545 = vmatprep.subr.bf16.mxu0 %v3248_v26  ;;  %585 = vmatpush1.bf16.msra.mxu1 %v3272_v30 }
  0x3d   :  { %586 = vmatprep.subr.bf16.mxu1 %v3278_v31 }
  0x3f   :  { %546 = vmatpush1.bf16.msra.mxu0 %v3266_v29 }
  0x40   :  { %846 = vmatprep.subr.bf16.mxu0 %v3101_v0  ;;  %587 = vmatpush1.bf16.msra.mxu1 %v3288_v32 }
  0x41   :  { %887 = vmatprep.subr.bf16.mxu1 %v3131_v6 }
  0xe2   :  { %v251_v35 = vpop.f32.mrf.mxu0  ;;  %v292_v43 = vpop.f32.mrf.mxu1 }
  0xe3   :  { %v299_v37 = vadd.f32 %v251_v35, %v18_v34  ;;  %v301_v51 = vadd.f32 %v292_v43, %v20_v49 }
  0xe4   :  { %v253_v38 = vpop.f32.mrf.mxu0  ;;  %v294_v45 = vpop.f32.mrf.mxu1 }
  0xe5   :  { %v2572_v39 = vmul.f32 -1.442695, %v299_v37  ;;  %v300_v40 = vadd.f32 %v253_v38, %v19_v36  ;;  %v302_v50 = vadd.f32 %v294_v45, %v21_v46  ;;  %v2575_v38 = vld [vmem:[%s3835_s0 + $0x20] sm:$0xff] }
  0xe6   :  { %v255_v41 = vpop.f32.mrf.mxu0  ;;  %v296_v47 = vpop.f32.mrf.mxu1 }
  0xe7   :  { %2953 = vpow2.f32 %v2572_v39  ;;  %v2573_v42 = vmul.f32 -1.442695, %v300_v40  ;;  %v2574_v52 = vmul.f32 -1.442695, %v302_v50  ;;  %v2576_v41 = vld [vmem:[%s3835_s0 + $0x28] sm:$0xff]  ;;  %v2578_v50 = vld [vmem:[%s3835_s0 + $0x38] sm:$0xff] }
  0xe8   :  { %v256_v44 = vpop.f32.mrf.mxu0  ;;  %v297_v48 = vpop.f32.mrf.mxu1 }
  0xe9   :  { %2955 = vpow2.f32 %v2573_v42 }
  0xea   :  { %2957 = vtanh.f32 %v301_v51 }
  0xeb   :  { %2959 = vpow2.f32 %v2574_v52  ;;  %v2577_v52 = vld [vmem:[%s3835_s0 + $0x30] sm:$0xff] }
  0xf4   :  { %v2954_v53 = vpop.eup %2953 }
  0xf5   :  { %v306_v54 = vadd.f32 1.0, %v2954_v53 }
  0xf6   :  { %v2956_v55 = vpop.eup %2955 }
  0xf7   :  { %2961 = vrcp.f32 %v306_v54  ;;  %v312_v56 = vadd.f32 1.0, %v2956_v55  ;;  %v2958_v57 = vpop.eup %2957 }
  0xf8   :  { %v2960_v58 = vpop.eup %2959 }
  0xf9   :  { %2963 = vrcp.f32 %v312_v56  ;;  %v319_v61 = vadd.f32 1.0, %v2960_v58 }
  0xfb   :  { %2965 = vrcp.f32 %v319_v61 }
 0x104   :  { %v2962_v59 = vpop.eup %2961 }
 0x105   :  { %v323_v63 = vmul.f32 %v2962_v59, %v2958_v57 }
 0x106   :  { %v2964_v60 = vpop.eup %2963 }
 0x107   :  { %v322_v62 = vmul.f32 0.0, %v2964_v60 }
 0x108   :  { %v2966_v34 = vpop.eup %2965 }
 0x109   :  { %v3340_v33 = vadd.f32 %v323_v63, %v322_v62 }
 0x10b   :  { %2967 = vtanh.f32 %v3340_v33 }
 0x118   :  { %v2968_v35 = vpop.eup %2967 }
 0x119   :  { %v326_v36 = vmul.f32 %v2968_v35, %v2966_v34 }
 0x11b   :  { %v329_v37 = vpack.c.bf16 %v326_v36, %v326_v36 }
 0x11d   :  { %330 = vst [vmem:[%s3836_s2] sm:$0xf] %v329_v37  ;;  %564 = vmatmul.mubr.bf16.vlgmr.msra.gmra.mxu0 %v329_v37  ;;  %605 = vmatmul.mubr.bf16.vlgmr.msra.gmra.mxu1 %v329_v37 }
 0x11e   :  { %847 = vmatpush1.bf16.msra.mxu0 %v3108_v2  ;;  %888 = vmatpush1.bf16.msra.mxu1 %v3136_v7 }
 0x11f   :  { %848 = vmatprep.subr.bf16.mxu0 %v3114_v3  ;;  %889 = vmatprep.subr.bf16.mxu1 %v3155_v10 }
 0x120   :  { %878 = vmatprep.mubr.bf16.mxu0 %v3081_v1  ;;  %919 = vmatprep.mubr.bf16.mxu1 %v3081_v1 }
 0x122   :  { %849 = vmatpush1.bf16.msra.mxu0 %v3120_v4  ;;  %890 = vmatpush1.bf16.msra.mxu1 %v3160_v11 }
 0x123   :  { %850 = vmatprep.subr.bf16.mxu0 %v3126_v5  ;;  %891 = vmatprep.subr.bf16.mxu1 %v3177_v14 }
 0x126   :  { %851 = vmatpush1.bf16.msra.mxu0 %v3142_v8  ;;  %892 = vmatpush1.bf16.msra.mxu1 %v3184_v15 }
 0x127   :  { %852 = vmatprep.subr.bf16.mxu0 %v3149_v9  ;;  %893 = vmatprep.subr.bf16.mxu1 %v3190_v16 }
 0x12a   :  { %853 = vmatpush1.bf16.msra.mxu0 %v3167_v12  ;;  %894 = vmatpush1.bf16.msra.mxu1 %v3208_v19 }
 0x12b   :  { %854 = vmatprep.subr.bf16.mxu0 %v3172_v13  ;;  %895 = vmatprep.subr.bf16.mxu1 %v3214_v20 }
 0x12e   :  { %855 = vmatpush1.bf16.msra.mxu0 %v3196_v17  ;;  %896 = vmatpush1.bf16.msra.mxu1 %v3232_v23 }
 0x12f   :  { %856 = vmatprep.subr.bf16.mxu0 %v3202_v18  ;;  %897 = vmatprep.subr.bf16.mxu1 %v3243_v25 }
 0x132   :  { %857 = vmatpush1.bf16.msra.mxu0 %v3220_v21  ;;  %898 = vmatpush1.bf16.msra.mxu1 %v3253_v27 }
 0x133   :  { %858 = vmatprep.subr.bf16.mxu0 %v3225_v22  ;;  %899 = vmatprep.subr.bf16.mxu1 %v3259_v28 }
 0x136   :  { %859 = vmatpush1.bf16.msra.mxu0 %v3237_v24  ;;  %900 = vmatpush1.bf16.msra.mxu1 %v3272_v30 }
 0x137   :  { %860 = vmatprep.subr.bf16.mxu0 %v3248_v26  ;;  %901 = vmatprep.subr.bf16.mxu1 %v3278_v31 }
 0x13a   :  { %861 = vmatpush1.bf16.msra.mxu0 %v3266_v29  ;;  %902 = vmatpush1.bf16.msra.mxu1 %v3288_v32 }
 0x13b   :  { %1161 = vmatprep.subr.bf16.mxu0 %v3101_v0  ;;  %1202 = vmatprep.subr.bf16.mxu1 %v3131_v6 }
 0x1dd   :  { %v565_v39 = vpop.f32.mrf.mxu0  ;;  %v606_v40 = vpop.f32.mrf.mxu1 }
 0x1de   :  { %v613_v42 = vadd.f32 %v2575_v38, %v565_v39  ;;  %v615_v55 = vadd.f32 %v2577_v52, %v606_v40  ;;  %v3508_v52 = vld [vmem:[%s3834_s1 + $0xac] ss:$16 sps:$4 sm:$0xff]  }
 0x1df   :  { %v567_v43 = vpop.f32.mrf.mxu0  ;;  %v608_v44 = vpop.f32.mrf.mxu1 }
 0x1e0   :  { %v2611_v45 = vmul.f32 -1.442695, %v613_v42  ;;  %v614_v46 = vadd.f32 %v2576_v41, %v567_v43  ;;  %v616_v51 = vadd.f32 %v2578_v50, %v608_v44  ;;  %v3494_v50 = vld [vmem:[%s3834_s1 + $0xc8] ss:$16 sps:$4 sm:$0xff]  }
 0x1e1   :  { %v569_v47 = vpop.f32.mrf.mxu0  ;;  %v610_v48 = vpop.f32.mrf.mxu1 }
 0x1e2   :  { %2969 = vpow2.f32 %v2611_v45  ;;  %v2612_v0 = vmul.f32 -1.442695, %v614_v46  ;;  %v2613_v53 = vmul.f32 -1.442695, %v616_v51  ;;  %v3455_v45 = vld [vmem:[%s3834_s1 + $0xe4] ss:$16 sps:$4 sm:$0xff]  }
 0x1e3   :  { %v570_v6 = vpop.f32.mrf.mxu0  ;;  %v611_v49 = vpop.f32.mrf.mxu1  ;;  %v3460_v46 = vld [vmem:[%s3834_s1 + $0xec] ss:$16 sps:$4 sm:$0xff]   ;;  %v3465_v47 = vld [vmem:[%s3834_s1 + $0xe0] ss:$16 sps:$4 sm:$0xff]   ;;  %v3470_v48 = vld [vmem:[%s3834_s1 + $0xe8] ss:$16 sps:$4 sm:$0xff]  }
 0x1e4   :  { %2971 = vpow2.f32 %v2612_v0  ;;  %v3479_v0 = vld [vmem:[%s3834_s1 + $0xc4] ss:$16 sps:$4 sm:$0xff]   ;;  %v3484_v6 = vld [vmem:[%s3834_s1 + $0xcc] ss:$16 sps:$4 sm:$0xff]   ;;  %v3489_v49 = vld [vmem:[%s3834_s1 + $0xc0] ss:$16 sps:$4 sm:$0xff]  }
 0x1e5   :  { %2973 = vpow2.f32 %v2613_v53  ;;  %v3503_v51 = vld [vmem:[%s3834_s1 + $0xa4] ss:$16 sps:$4 sm:$0xff]   ;;  %v3513_v53 = vld [vmem:[%s3834_s1 + $0xa0] ss:$16 sps:$4 sm:$0xff]  }
 0x1ef   :  { %v2970_v54 = vpop.eup %2969 }
 0x1f0   :  { %v620_v56 = vadd.f32 1.0, %v2970_v54  ;;  %v3518_v54 = vld [vmem:[%s3834_s1 + $0xa8] ss:$16 sps:$4 sm:$0xff]  }
 0x1f1   :  { %v2972_v57 = vpop.eup %2971 }
 0x1f2   :  { %2975 = vrcp.f32 %v620_v56  ;;  %v626_v58 = vadd.f32 1.0, %v2972_v57  ;;  %v2974_v59 = vpop.eup %2973  ;;  %v3532_v56 = vld [vmem:[%s3834_s1 + $0x8c] ss:$16 sps:$4 sm:$0xff]   ;;  %v3537_v57 = vld [vmem:[%s3834_s1 + $0x80] ss:$16 sps:$4 sm:$0xff]  }
 0x1f3   :  { %2977 = vtanh.f32 %v615_v55  ;;  %v633_v63 = vadd.f32 1.0, %v2974_v59  ;;  %v3527_v55 = vld [vmem:[%s3834_s1 + $0x84] ss:$16 sps:$4 sm:$0xff]  }
 0x1f4   :  { %2979 = vrcp.f32 %v626_v58  ;;  %v3542_v58 = vld [vmem:[%s3834_s1 + $0x88] ss:$16 sps:$4 sm:$0xff]   ;;  %v3549_v59 = vld [vmem:[%s3834_s1 + $0x64] ss:$16 sps:$4 sm:$0xff]  }
 0x1f5   :  { %2981 = vrcp.f32 %v633_v63  ;;  %v3573_v63 = vld [vmem:[%s3834_s1 + $0x44] ss:$16 sps:$4 sm:$0xff]  }
 0x1ff   :  { %v2976_v60 = vpop.eup %2975 }
 0x200   :  { %v2978_v61 = vpop.eup %2977 }
 0x201   :  { %v2980_v62 = vpop.eup %2979  ;;  %v637_v34 = vmul.f32 %v2978_v61, %v2976_v60  ;;  %v3554_v60 = vld [vmem:[%s3834_s1 + $0x6c] ss:$16 sps:$4 sm:$0xff]   ;;  %v3561_v61 = vld [vmem:[%s3834_s1 + $0x60] ss:$16 sps:$4 sm:$0xff]  }
 0x202   :  { %v636_v35 = vmul.f32 %v2980_v62, %v3340_v33  ;;  %v2982_v37 = vpop.eup %2981  ;;  %v3566_v62 = vld [vmem:[%s3834_s1 + $0x68] ss:$16 sps:$4 sm:$0xff]  }
 0x204   :  { %v3393_v36 = vadd.f32 %v637_v34, %v636_v35  ;;  %v3578_v34 = vld [vmem:[%s3834_s1 + $0x4c] ss:$16 sps:$4 sm:$0xff]   ;;  %v3585_v35 = vld [vmem:[%s3834_s1 + $0x40] ss:$16 sps:$4 sm:$0xff]  }
 0x206   :  { %2983 = vtanh.f32 %v3393_v36 }
 0x213   :  { %v2984_v38 = vpop.eup %2983 }
 0x214   :  { %v640_v39 = vmul.f32 %v2984_v38, %v2982_v37  ;;  %v3597_v37 = vld [vmem:[%s3834_s1 + $0x24] ss:$16 sps:$4 sm:$0xff]   ;;  %v3602_v38 = vld [vmem:[%s3834_s1 + $0x2c] ss:$16 sps:$4 sm:$0xff]  }
 0x216   :  { %v643_v40 = vpack.c.bf16 %v640_v39, %v640_v39  ;;  %v3609_v39 = vld [vmem:[%s3834_s1 + $0x20] ss:$16 sps:$4 sm:$0xff]  }
 0x218   :  { %2614 = vst [vmem:[%s3836_s2 + $0x4] sm:$0xf] %v643_v40  ;;  %879 = vmatmul.mubr.bf16.vlgmr.msra.gmra.mxu0 %v643_v40  ;;  %920 = vmatmul.mubr.bf16.vlgmr.msra.gmra.mxu1 %v643_v40  ;;  %v3614_v40 = vld [vmem:[%s3834_s1 + $0x28] ss:$16 sps:$4 sm:$0xff]  }
 0x219   :  { %1162 = vmatpush1.bf16.msra.mxu0 %v3108_v2  ;;  %1203 = vmatpush1.bf16.msra.mxu1 %v3136_v7  ;;  %v2615_v2 = vld [vmem:[%s3835_s0 + $0x40] sm:$0xff] }
 0x21a   :  { %1163 = vmatprep.subr.bf16.mxu0 %v3114_v3  ;;  %1204 = vmatprep.subr.bf16.mxu1 %v3155_v10 }
 0x21b   :  { %1193 = vmatprep.mubr.bf16.mxu0 %v3081_v1  ;;  %1234 = vmatprep.mubr.bf16.mxu1 %v3081_v1 }
 0x21d   :  { %1164 = vmatpush1.bf16.msra.mxu0 %v3120_v4  ;;  %1205 = vmatpush1.bf16.msra.mxu1 %v3160_v11 }
 0x21e   :  { %1165 = vmatprep.subr.bf16.mxu0 %v3126_v5  ;;  %1206 = vmatprep.subr.bf16.mxu1 %v3177_v14  ;;  %v2616_v5 = vld [vmem:[%s3835_s0 + $0x48] sm:$0xff] }
 0x221   :  { %1166 = vmatpush1.bf16.msra.mxu0 %v3142_v8  ;;  %1207 = vmatpush1.bf16.msra.mxu1 %v3184_v15 }
 0x222   :  { %1167 = vmatprep.subr.bf16.mxu0 %v3149_v9  ;;  %1208 = vmatprep.subr.bf16.mxu1 %v3190_v16 }
 0x225   :  { %1168 = vmatpush1.bf16.msra.mxu0 %v3167_v12  ;;  %1209 = vmatpush1.bf16.msra.mxu1 %v3208_v19  ;;  %v2617_v19 = vld [vmem:[%s3835_s0 + $0x50] sm:$0xff] }
 0x226   :  { %1169 = vmatprep.subr.bf16.mxu0 %v3172_v13  ;;  %1210 = vmatprep.subr.bf16.mxu1 %v3214_v20 }
 0x229   :  { %1170 = vmatpush1.bf16.msra.mxu0 %v3196_v17  ;;  %1211 = vmatpush1.bf16.msra.mxu1 %v3232_v23  ;;  %v2618_v17 = vld [vmem:[%s3835_s0 + $0x58] sm:$0xff] }
 0x22a   :  { %1171 = vmatprep.subr.bf16.mxu0 %v3202_v18  ;;  %1212 = vmatprep.subr.bf16.mxu1 %v3243_v25 }
 0x22d   :  { %1172 = vmatpush1.bf16.msra.mxu0 %v3220_v21  ;;  %1213 = vmatpush1.bf16.msra.mxu1 %v3253_v27 }
 0x22e   :  { %1173 = vmatprep.subr.bf16.mxu0 %v3225_v22  ;;  %1214 = vmatprep.subr.bf16.mxu1 %v3259_v28 }
 0x231   :  { %1174 = vmatpush1.bf16.msra.mxu0 %v3237_v24  ;;  %1215 = vmatpush1.bf16.msra.mxu1 %v3272_v30 }
 0x232   :  { %1175 = vmatprep.subr.bf16.mxu0 %v3248_v26  ;;  %1216 = vmatprep.subr.bf16.mxu1 %v3278_v31 }
 0x235   :  { %1176 = vmatpush1.bf16.msra.mxu0 %v3266_v29  ;;  %1217 = vmatpush1.bf16.msra.mxu1 %v3288_v32 }
 0x236   :  { %1476 = vmatprep.subr.bf16.mxu0 %v3455_v45  ;;  %1517 = vmatprep.subr.bf16.mxu1 %v3460_v46 }
 0x2d8   :  { %v880_v3 = vpop.f32.mrf.mxu0  ;;  %v921_v4 = vpop.f32.mrf.mxu1 }
 0x2d9   :  { %v928_v7 = vadd.f32 %v2615_v2, %v880_v3  ;;  %v930_v22 = vadd.f32 %v2617_v19, %v921_v4  ;;  %v3621_v2 = vld [vmem:[%s3834_s1 + $0x4] ss:$16 sps:$4 sm:$0xff]   ;;  %v3626_v3 = vld [vmem:[%s3834_s1 + $0xc] ss:$16 sps:$4 sm:$0xff]   ;;  %v3633_v4 = vld [vmem:[%s3834_s1] ss:$16 sps:$4 sm:$0xff]  }
 0x2da   :  { %v882_v8 = vpop.f32.mrf.mxu0  ;;  %v923_v9 = vpop.f32.mrf.mxu1 }
 0x2db   :  { %v2651_v10 = vmul.f32 -1.442695, %v928_v7  ;;  %v929_v11 = vadd.f32 %v2616_v5, %v882_v8  ;;  %v931_v18 = vadd.f32 %v2618_v17, %v923_v9  ;;  %v3638_v5 = vld [vmem:[%s3834_s1 + $0x8] ss:$16 sps:$4 sm:$0xff]   ;;  %v2655_v7 = vld [vmem:[%s3835_s0 + $0x60] sm:$0xff] }
 0x2dc   :  { %v884_v12 = vpop.f32.mrf.mxu0  ;;  %v925_v13 = vpop.f32.mrf.mxu1 }
 0x2dd   :  { %2985 = vpow2.f32 %v2651_v10  ;;  %v2652_v14 = vmul.f32 -1.442695, %v929_v11  ;;  %v2653_v20 = vmul.f32 -1.442695, %v931_v18  ;;  %v2656_v10 = vld [vmem:[%s3835_s0 + $0x68] sm:$0xff] }
 0x2de   :  { %v885_v15 = vpop.f32.mrf.mxu0  ;;  %v926_v16 = vpop.f32.mrf.mxu1 }
 0x2df   :  { %2987 = vpow2.f32 %v2652_v14 }
 0x2e0   :  { %2989 = vpow2.f32 %v2653_v20 }
 0x2ea   :  { %v2986_v21 = vpop.eup %2985 }
 0x2eb   :  { %v935_v23 = vadd.f32 1.0, %v2986_v21  ;;  %v2658_v21 = vld [vmem:[%s3835_s0 + $0x78] sm:$0xff] }
 0x2ec   :  { %v2988_v24 = vpop.eup %2987 }
 0x2ed   :  { %2991 = vrcp.f32 %v935_v23  ;;  %v941_v25 = vadd.f32 1.0, %v2988_v24  ;;  %v2990_v26 = vpop.eup %2989  ;;  %v2657_v23 = vld [vmem:[%s3835_s0 + $0x70] sm:$0xff] }
 0x2ee   :  { %2993 = vtanh.f32 %v930_v22  ;;  %v948_v30 = vadd.f32 1.0, %v2990_v26 }
 0x2ef   :  { %2995 = vrcp.f32 %v941_v25 }
 0x2f0   :  { %2997 = vrcp.f32 %v948_v30 }
 0x2fa   :  { %v2992_v27 = vpop.eup %2991 }
 0x2fb   :  { %v2994_v28 = vpop.eup %2993 }
 0x2fc   :  { %v2996_v29 = vpop.eup %2995  ;;  %v952_v31 = vmul.f32 %v2994_v28, %v2992_v27 }
 0x2fd   :  { %v951_v32 = vmul.f32 %v2996_v29, %v3393_v36  ;;  %v2998_v41 = vpop.eup %2997  ;;  %v3590_v36 = vld [vmem:[%s3834_s1 + $0x48] ss:$16 sps:$4 sm:$0xff]  }
 0x2ff   :  { %v3444_v33 = vadd.f32 %v952_v31, %v951_v32 }
 0x301   :  { %2999 = vtanh.f32 %v3444_v33 }
 0x30e   :  { %v3000_v42 = vpop.eup %2999 }
 0x30f   :  { %v955_v43 = vmul.f32 %v3000_v42, %v2998_v41 }
 0x311   :  { %v958_v44 = vpack.c.bf16 %v955_v43, %v955_v43 }
 0x313   :  { %2654 = vst [vmem:[%s3836_s2 + $0x8] sm:$0xf] %v958_v44  ;;  %1194 = vmatmul.mubr.bf16.vlgmr.msra.gmra.mxu0 %v958_v44  ;;  %1235 = vmatmul.mubr.bf16.vlgmr.msra.gmra.mxu1 %v958_v44 }
 0x314   :  { %1508 = vmatprep.mubr.bf16.mxu0 %v3081_v1  ;;  %1549 = vmatprep.mubr.bf16.mxu1 %v3081_v1 }
 0x315   :  { %1477 = vmatpush1.bf16.msra.mxu0 %v3465_v47  ;;  %1518 = vmatpush1.bf16.msra.mxu1 %v3470_v48 }
 0x316   :  { %1478 = vmatprep.subr.bf16.mxu0 %v3479_v0  ;;  %1519 = vmatprep.subr.bf16.mxu1 %v3484_v6 }
 0x319   :  { %1479 = vmatpush1.bf16.msra.mxu0 %v3489_v49  ;;  %1520 = vmatpush1.bf16.msra.mxu1 %v3494_v50 }
 0x31a   :  { %1480 = vmatprep.subr.bf16.mxu0 %v3503_v51  ;;  %1521 = vmatprep.subr.bf16.mxu1 %v3508_v52 }
 0x31d   :  { %1481 = vmatpush1.bf16.msra.mxu0 %v3513_v53  ;;  %1522 = vmatpush1.bf16.msra.mxu1 %v3518_v54 }
 0x31e   :  { %1482 = vmatprep.subr.bf16.mxu0 %v3527_v55  ;;  %1523 = vmatprep.subr.bf16.mxu1 %v3532_v56 }
 0x321   :  { %1483 = vmatpush1.bf16.msra.mxu0 %v3537_v57  ;;  %1524 = vmatpush1.bf16.msra.mxu1 %v3542_v58 }
 0x322   :  { %1484 = vmatprep.subr.bf16.mxu0 %v3549_v59  ;;  %1525 = vmatprep.subr.bf16.mxu1 %v3554_v60 }
 0x325   :  { %1485 = vmatpush1.bf16.msra.mxu0 %v3561_v61  ;;  %1526 = vmatpush1.bf16.msra.mxu1 %v3566_v62 }
 0x326   :  { %1486 = vmatprep.subr.bf16.mxu0 %v3573_v63  ;;  %1527 = vmatprep.subr.bf16.mxu1 %v3578_v34 }
 0x329   :  { %1487 = vmatpush1.bf16.msra.mxu0 %v3585_v35  ;;  %1528 = vmatpush1.bf16.msra.mxu1 %v3590_v36 }
 0x32a   :  { %1488 = vmatprep.subr.bf16.mxu0 %v3597_v37  ;;  %1529 = vmatprep.subr.bf16.mxu1 %v3602_v38 }
 0x32d   :  { %1489 = vmatpush1.bf16.msra.mxu0 %v3609_v39  ;;  %1530 = vmatpush1.bf16.msra.mxu1 %v3614_v40 }
 0x32e   :  { %1490 = vmatprep.subr.bf16.mxu0 %v3621_v2  ;;  %1531 = vmatprep.subr.bf16.mxu1 %v3626_v3 }
 0x331   :  { %1491 = vmatpush1.bf16.msra.mxu0 %v3633_v4  ;;  %1532 = vmatpush1.bf16.msra.mxu1 %v3638_v5 }
 0x332   :  { %1791 = vmatprep.subr.bf16.mxu0 %v3455_v45  ;;  %1832 = vmatprep.subr.bf16.mxu1 %v3460_v46 }
 0x3d3   :  { %v1195_v8 = vpop.f32.mrf.mxu0  ;;  %v1236_v9 = vpop.f32.mrf.mxu1 }
 0x3d4   :  { %v1243_v11 = vadd.f32 %v2655_v7, %v1195_v8  ;;  %v1245_v26 = vadd.f32 %v2657_v23, %v1236_v9 }
 0x3d5   :  { %v1197_v12 = vpop.f32.mrf.mxu0  ;;  %v1238_v13 = vpop.f32.mrf.mxu1 }
 0x3d6   :  { %v2691_v14 = vmul.f32 -1.442695, %v1243_v11  ;;  %v1244_v15 = vadd.f32 %v2656_v10, %v1197_v12  ;;  %v1246_v22 = vadd.f32 %v2658_v21, %v1238_v13 }
 0x3d7   :  { %v1199_v16 = vpop.f32.mrf.mxu0  ;;  %v1240_v17 = vpop.f32.mrf.mxu1 }
 0x3d8   :  { %3001 = vpow2.f32 %v2691_v14  ;;  %v2692_v18 = vmul.f32 -1.442695, %v1244_v15  ;;  %v2693_v24 = vmul.f32 -1.442695, %v1246_v22  ;;  %v2696_v14 = vld [vmem:[%s3835_s0 + $0x88] sm:$0xff] }
 0x3d9   :  { %v1200_v19 = vpop.f32.mrf.mxu0  ;;  %v1241_v20 = vpop.f32.mrf.mxu1 }
 0x3da   :  { %3003 = vpow2.f32 %v2692_v18 }
 0x3db   :  { %3005 = vpow2.f32 %v2693_v24 }
 0x3e5   :  { %v3002_v25 = vpop.eup %3001 }
 0x3e6   :  { %v1250_v27 = vadd.f32 1.0, %v3002_v25  ;;  %v2698_v25 = vld [vmem:[%s3835_s0 + $0x98] sm:$0xff] }
 0x3e7   :  { %v3004_v28 = vpop.eup %3003 }
 0x3e8   :  { %3007 = vrcp.f32 %v1250_v27  ;;  %v1256_v29 = vadd.f32 1.0, %v3004_v28  ;;  %v3006_v30 = vpop.eup %3005  ;;  %v2697_v27 = vld [vmem:[%s3835_s0 + $0x90] sm:$0xff] }
 0x3e9   :  { %3009 = vtanh.f32 %v1245_v26  ;;  %v1263_v42 = vadd.f32 1.0, %v3006_v30 }
 0x3ea   :  { %3011 = vrcp.f32 %v1256_v29 }
 0x3eb   :  { %3013 = vrcp.f32 %v1263_v42 }
 0x3f5   :  { %v3008_v31 = vpop.eup %3007 }
 0x3f6   :  { %v3010_v32 = vpop.eup %3009 }
 0x3f7   :  { %v3012_v41 = vpop.eup %3011  ;;  %v1267_v43 = vmul.f32 %v3010_v32, %v3008_v31 }
 0x3f8   :  { %v1266_v44 = vmul.f32 %v3012_v41, %v3444_v33  ;;  %v3014_v8 = vpop.eup %3013  ;;  %v2695_v33 = vld [vmem:[%s3835_s0 + $0x80] sm:$0xff] }
 0x3fa   :  { %v3659_v7 = vadd.f32 %v1267_v43, %v1266_v44 }
 0x3fc   :  { %3015 = vtanh.f32 %v3659_v7 }
 0x409   :  { %v3016_v9 = vpop.eup %3015 }
 0x40a   :  { %v1270_v10 = vmul.f32 %v3016_v9, %v3014_v8 }
 0x40c   :  { %v1273_v11 = vpack.c.bf16 %v1270_v10, %v1270_v10 }
 0x40e   :  { %2694 = vst [vmem:[%s3836_s2 + $0xc] sm:$0xf] %v1273_v11  ;;  %1509 = vmatmul.mubr.bf16.vlgmr.msra.gmra.mxu0 %v1273_v11  ;;  %1550 = vmatmul.mubr.bf16.vlgmr.msra.gmra.mxu1 %v1273_v11 }
 0x40f   :  { %1792 = vmatpush1.bf16.msra.mxu0 %v3465_v47  ;;  %1833 = vmatpush1.bf16.msra.mxu1 %v3470_v48 }
 0x410   :  { %1793 = vmatprep.subr.bf16.mxu0 %v3479_v0  ;;  %1834 = vmatprep.subr.bf16.mxu1 %v3484_v6 }
 0x411   :  { %1823 = vmatprep.mubr.bf16.mxu0 %v3081_v1  ;;  %1864 = vmatprep.mubr.bf16.mxu1 %v3081_v1 }
 0x413   :  { %1794 = vmatpush1.bf16.msra.mxu0 %v3489_v49  ;;  %1835 = vmatpush1.bf16.msra.mxu1 %v3494_v50 }
 0x414   :  { %1795 = vmatprep.subr.bf16.mxu0 %v3503_v51  ;;  %1836 = vmatprep.subr.bf16.mxu1 %v3508_v52 }
 0x417   :  { %1796 = vmatpush1.bf16.msra.mxu0 %v3513_v53  ;;  %1837 = vmatpush1.bf16.msra.mxu1 %v3518_v54 }
 0x418   :  { %1797 = vmatprep.subr.bf16.mxu0 %v3527_v55  ;;  %1838 = vmatprep.subr.bf16.mxu1 %v3532_v56 }
 0x41b   :  { %1798 = vmatpush1.bf16.msra.mxu0 %v3537_v57  ;;  %1839 = vmatpush1.bf16.msra.mxu1 %v3542_v58 }
 0x41c   :  { %1799 = vmatprep.subr.bf16.mxu0 %v3549_v59  ;;  %1840 = vmatprep.subr.bf16.mxu1 %v3554_v60 }
 0x41f   :  { %1800 = vmatpush1.bf16.msra.mxu0 %v3561_v61  ;;  %1841 = vmatpush1.bf16.msra.mxu1 %v3566_v62 }
 0x420   :  { %1801 = vmatprep.subr.bf16.mxu0 %v3573_v63  ;;  %1842 = vmatprep.subr.bf16.mxu1 %v3578_v34 }
 0x423   :  { %1802 = vmatpush1.bf16.msra.mxu0 %v3585_v35  ;;  %1843 = vmatpush1.bf16.msra.mxu1 %v3590_v36 }
 0x424   :  { %1803 = vmatprep.subr.bf16.mxu0 %v3597_v37  ;;  %1844 = vmatprep.subr.bf16.mxu1 %v3602_v38 }
 0x427   :  { %1804 = vmatpush1.bf16.msra.mxu0 %v3609_v39  ;;  %1845 = vmatpush1.bf16.msra.mxu1 %v3614_v40 }
 0x428   :  { %1805 = vmatprep.subr.bf16.mxu0 %v3621_v2  ;;  %1846 = vmatprep.subr.bf16.mxu1 %v3626_v3 }
 0x42b   :  { %1806 = vmatpush1.bf16.msra.mxu0 %v3633_v4  ;;  %1847 = vmatpush1.bf16.msra.mxu1 %v3638_v5 }
 0x42c   :  { %2106 = vmatprep.subr.bf16.mxu0 %v3455_v45  ;;  %2147 = vmatprep.subr.bf16.mxu1 %v3460_v46 }
 0x4ce   :  { %v1510_v12 = vpop.f32.mrf.mxu0  ;;  %v1551_v13 = vpop.f32.mrf.mxu1 }
 0x4cf   :  { %v1558_v15 = vadd.f32 %v2695_v33, %v1510_v12  ;;  %v1560_v30 = vadd.f32 %v2697_v27, %v1551_v13  ;;  %v2738_v27 = vld [vmem:[%s3835_s0 + $0xb8] sm:$0xff] }
 0x4d0   :  { %v1512_v16 = vpop.f32.mrf.mxu0  ;;  %v1553_v17 = vpop.f32.mrf.mxu1 }
 0x4d1   :  { %v2731_v18 = vmul.f32 -1.442695, %v1558_v15  ;;  %v1559_v19 = vadd.f32 %v2696_v14, %v1512_v16  ;;  %v1561_v26 = vadd.f32 %v2698_v25, %v1553_v17 }
 0x4d2   :  { %v1514_v20 = vpop.f32.mrf.mxu0  ;;  %v1555_v21 = vpop.f32.mrf.mxu1 }
 0x4d3   :  { %3017 = vpow2.f32 %v2731_v18  ;;  %v2732_v22 = vmul.f32 -1.442695, %v1559_v19  ;;  %v2733_v28 = vmul.f32 -1.442695, %v1561_v26  ;;  %v2736_v18 = vld [vmem:[%s3835_s0 + $0xa8] sm:$0xff] }
 0x4d4   :  { %v1515_v23 = vpop.f32.mrf.mxu0  ;;  %v1556_v24 = vpop.f32.mrf.mxu1 }
 0x4d5   :  { %3019 = vpow2.f32 %v2732_v22 }
 0x4d6   :  { %3021 = vpow2.f32 %v2733_v28 }
 0x4e0   :  { %v3018_v29 = vpop.eup %3017 }
 0x4e1   :  { %v1565_v31 = vadd.f32 1.0, %v3018_v29  ;;  %v2737_v29 = vld [vmem:[%s3835_s0 + $0xb0] sm:$0xff] }
 0x4e2   :  { %v3020_v32 = vpop.eup %3019 }
 0x4e3   :  { %3023 = vrcp.f32 %v1565_v31  ;;  %v1571_v41 = vadd.f32 1.0, %v3020_v32  ;;  %v3022_v42 = vpop.eup %3021 }
 0x4e4   :  { %3025 = vtanh.f32 %v1560_v30  ;;  %v1578_v9 = vadd.f32 1.0, %v3022_v42 }
 0x4e5   :  { %3027 = vrcp.f32 %v1571_v41 }
 0x4e6   :  { %3029 = vrcp.f32 %v1578_v9 }
 0x4f0   :  { %v3024_v43 = vpop.eup %3023 }
 0x4f1   :  { %v3026_v44 = vpop.eup %3025 }
 0x4f2   :  { %v3028_v8 = vpop.eup %3027  ;;  %v1582_v10 = vmul.f32 %v3026_v44, %v3024_v43 }
 0x4f3   :  { %v1581_v11 = vmul.f32 %v3028_v8, %v3659_v7  ;;  %v3030_v12 = vpop.eup %3029  ;;  %v2735_v7 = vld [vmem:[%s3835_s0 + $0xa0] sm:$0xff] }
 0x4f5   :  { %v3712_v33 = vadd.f32 %v1582_v10, %v1581_v11 }
 0x4f7   :  { %3031 = vtanh.f32 %v3712_v33 }
 0x504   :  { %v3032_v13 = vpop.eup %3031 }
 0x505   :  { %v1585_v14 = vmul.f32 %v3032_v13, %v3030_v12 }
 0x507   :  { %v1588_v15 = vpack.c.bf16 %v1585_v14, %v1585_v14 }
 0x509   :  { %2734 = vst [vmem:[%s3836_s2 + $0x10] sm:$0xf] %v1588_v15  ;;  %1824 = vmatmul.mubr.bf16.vlgmr.msra.gmra.mxu0 %v1588_v15  ;;  %1865 = vmatmul.mubr.bf16.vlgmr.msra.gmra.mxu1 %v1588_v15 }
 0x50a   :  { %2107 = vmatpush1.bf16.msra.mxu0 %v3465_v47  ;;  %2148 = vmatpush1.bf16.msra.mxu1 %v3470_v48 }
 0x50b   :  { %2108 = vmatprep.subr.bf16.mxu0 %v3479_v0  ;;  %2149 = vmatprep.subr.bf16.mxu1 %v3484_v6 }
 0x50c   :  { %2138 = vmatprep.mubr.bf16.mxu0 %v3081_v1  ;;  %2179 = vmatprep.mubr.bf16.mxu1 %v3081_v1 }
 0x50e   :  { %2109 = vmatpush1.bf16.msra.mxu0 %v3489_v49  ;;  %2150 = vmatpush1.bf16.msra.mxu1 %v3494_v50 }
 0x50f   :  { %2110 = vmatprep.subr.bf16.mxu0 %v3503_v51  ;;  %2151 = vmatprep.subr.bf16.mxu1 %v3508_v52 }
 0x512   :  { %2111 = vmatpush1.bf16.msra.mxu0 %v3513_v53  ;;  %2152 = vmatpush1.bf16.msra.mxu1 %v3518_v54 }
 0x513   :  { %2112 = vmatprep.subr.bf16.mxu0 %v3527_v55  ;;  %2153 = vmatprep.subr.bf16.mxu1 %v3532_v56 }
 0x516   :  { %2113 = vmatpush1.bf16.msra.mxu0 %v3537_v57  ;;  %2154 = vmatpush1.bf16.msra.mxu1 %v3542_v58 }
 0x517   :  { %2114 = vmatprep.subr.bf16.mxu0 %v3549_v59  ;;  %2155 = vmatprep.subr.bf16.mxu1 %v3554_v60 }
 0x51a   :  { %2115 = vmatpush1.bf16.msra.mxu0 %v3561_v61  ;;  %2156 = vmatpush1.bf16.msra.mxu1 %v3566_v62 }
 0x51b   :  { %2116 = vmatprep.subr.bf16.mxu0 %v3573_v63  ;;  %2157 = vmatprep.subr.bf16.mxu1 %v3578_v34 }
 0x51e   :  { %2117 = vmatpush1.bf16.msra.mxu0 %v3585_v35  ;;  %2158 = vmatpush1.bf16.msra.mxu1 %v3590_v36 }
 0x51f   :  { %2118 = vmatprep.subr.bf16.mxu0 %v3597_v37  ;;  %2159 = vmatprep.subr.bf16.mxu1 %v3602_v38 }
 0x522   :  { %2119 = vmatpush1.bf16.msra.mxu0 %v3609_v39  ;;  %2160 = vmatpush1.bf16.msra.mxu1 %v3614_v40 }
 0x523   :  { %2120 = vmatprep.subr.bf16.mxu0 %v3621_v2  ;;  %2161 = vmatprep.subr.bf16.mxu1 %v3626_v3 }
 0x526   :  { %2121 = vmatpush1.bf16.msra.mxu0 %v3633_v4  ;;  %2162 = vmatpush1.bf16.msra.mxu1 %v3638_v5 }
 0x527   :  { %2421 = vmatprep.subr.bf16.mxu0 %v3455_v45  ;;  %2462 = vmatprep.subr.bf16.mxu1 %v3460_v46 }
 0x5c9   :  { %v1825_v16 = vpop.f32.mrf.mxu0  ;;  %v1866_v17 = vpop.f32.mrf.mxu1 }
 0x5ca   :  { %v1873_v19 = vadd.f32 %v2735_v7, %v1825_v16  ;;  %v1875_v32 = vadd.f32 %v2737_v29, %v1866_v17 }
 0x5cb   :  { %v1827_v20 = vpop.f32.mrf.mxu0  ;;  %v1868_v21 = vpop.f32.mrf.mxu1 }
 0x5cc   :  { %v2771_v22 = vmul.f32 -1.442695, %v1873_v19  ;;  %v1874_v23 = vadd.f32 %v2736_v18, %v1827_v20  ;;  %v1876_v28 = vadd.f32 %v2738_v27, %v1868_v21  ;;  %v2815_v21 = vld [vmem:[%s3835_s0 + $0xe0] sm:$0xff] }
 0x5cd   :  { %v1829_v24 = vpop.f32.mrf.mxu0  ;;  %v1870_v25 = vpop.f32.mrf.mxu1 }
 0x5ce   :  { %3033 = vpow2.f32 %v2771_v22  ;;  %v2772_v45 = vmul.f32 -1.442695, %v1874_v23  ;;  %v2773_v30 = vmul.f32 -1.442695, %v1876_v28  ;;  %v2816_v24 = vld [vmem:[%s3835_s0 + $0xe8] sm:$0xff] }
 0x5cf   :  { %v1830_v46 = vpop.f32.mrf.mxu0  ;;  %v1871_v26 = vpop.f32.mrf.mxu1 }
 0x5d0   :  { %3035 = vpow2.f32 %v2772_v45 }
 0x5d1   :  { %3037 = vpow2.f32 %v2773_v30 }
 0x5db   :  { %v3034_v31 = vpop.eup %3033 }
 0x5dc   :  { %v1880_v41 = vadd.f32 1.0, %v3034_v31 }
 0x5dd   :  { %v3036_v42 = vpop.eup %3035 }
 0x5de   :  { %3039 = vrcp.f32 %v1880_v41  ;;  %v1886_v43 = vadd.f32 1.0, %v3036_v42  ;;  %v3038_v44 = vpop.eup %3037  ;;  %v2818_v41 = vld [vmem:[%s3835_s0 + $0xf8] sm:$0xff] }
 0x5df   :  { %3041 = vtanh.f32 %v1875_v32  ;;  %v1893_v11 = vadd.f32 1.0, %v3038_v44 }
 0x5e0   :  { %3043 = vrcp.f32 %v1886_v43  ;;  %v2817_v43 = vld [vmem:[%s3835_s0 + $0xf0] sm:$0xff] }
 0x5e1   :  { %3045 = vrcp.f32 %v1893_v11 }
 0x5eb   :  { %v3040_v8 = vpop.eup %3039 }
 0x5ec   :  { %v3042_v9 = vpop.eup %3041 }
 0x5ed   :  { %v3044_v10 = vpop.eup %3043  ;;  %v1897_v12 = vmul.f32 %v3042_v9, %v3040_v8 }
 0x5ee   :  { %v1896_v13 = vmul.f32 %v3044_v10, %v3712_v33  ;;  %v3046_v15 = vpop.eup %3045 }
 0x5f0   :  { %v3765_v14 = vadd.f32 %v1897_v12, %v1896_v13 }
 0x5f2   :  { %3047 = vtanh.f32 %v3765_v14 }
 0x5ff   :  { %v3048_v7 = vpop.eup %3047 }
 0x600   :  { %v1900_v16 = vmul.f32 %v3048_v7, %v3046_v15 }
 0x602   :  { %v1903_v17 = vpack.c.bf16 %v1900_v16, %v1900_v16 }
 0x604   :  { %2774 = vst [vmem:[%s3836_s2 + $0x14] sm:$0xf] %v1903_v17  ;;  %2139 = vmatmul.mubr.bf16.vlgmr.msra.gmra.mxu0 %v1903_v17  ;;  %2180 = vmatmul.mubr.bf16.vlgmr.msra.gmra.mxu1 %v1903_v17 }
 0x605   :  { %2422 = vmatpush1.bf16.msra.mxu0 %v3465_v47  ;;  %2463 = vmatpush1.bf16.msra.mxu1 %v3470_v48 }
 0x606   :  { %2423 = vmatprep.subr.bf16.mxu0 %v3479_v0  ;;  %2464 = vmatprep.subr.bf16.mxu1 %v3484_v6  ;;  %v2776_v0 = vld [vmem:[%s3835_s0 + $0xc8] sm:$0xff] }
 0x607   :  { %2453 = vmatprep.mubr.bf16.mxu0 %v3081_v1  ;;  %2494 = vmatprep.mubr.bf16.mxu1 %v3081_v1  ;;  %v2775_v1 = vld [vmem:[%s3835_s0 + $0xc0] sm:$0xff] }
 0x609   :  { %2424 = vmatpush1.bf16.msra.mxu0 %v3489_v49  ;;  %2465 = vmatpush1.bf16.msra.mxu1 %v3494_v50 }
 0x60a   :  { %2425 = vmatprep.subr.bf16.mxu0 %v3503_v51  ;;  %2466 = vmatprep.subr.bf16.mxu1 %v3508_v52 }
 0x60d   :  { %2426 = vmatpush1.bf16.msra.mxu0 %v3513_v53  ;;  %2467 = vmatpush1.bf16.msra.mxu1 %v3518_v54 }
 0x60e   :  { %2427 = vmatprep.subr.bf16.mxu0 %v3527_v55  ;;  %2468 = vmatprep.subr.bf16.mxu1 %v3532_v56 }
 0x611   :  { %2428 = vmatpush1.bf16.msra.mxu0 %v3537_v57  ;;  %2469 = vmatpush1.bf16.msra.mxu1 %v3542_v58  ;;  %v2778_v58 = vld [vmem:[%s3835_s0 + $0xd8] sm:$0xff] }
 0x612   :  { %2429 = vmatprep.subr.bf16.mxu0 %v3549_v59  ;;  %2470 = vmatprep.subr.bf16.mxu1 %v3554_v60  ;;  %v2777_v60 = vld [vmem:[%s3835_s0 + $0xd0] sm:$0xff] }
 0x615   :  { %2430 = vmatpush1.bf16.msra.mxu0 %v3561_v61  ;;  %2471 = vmatpush1.bf16.msra.mxu1 %v3566_v62 }
 0x616   :  { %2431 = vmatprep.subr.bf16.mxu0 %v3573_v63  ;;  %2472 = vmatprep.subr.bf16.mxu1 %v3578_v34 }
 0x619   :  { %2432 = vmatpush1.bf16.msra.mxu0 %v3585_v35  ;;  %2473 = vmatpush1.bf16.msra.mxu1 %v3590_v36 }
 0x61a   :  { %2433 = vmatprep.subr.bf16.mxu0 %v3597_v37  ;;  %2474 = vmatprep.subr.bf16.mxu1 %v3602_v38 }
 0x61d   :  { %2434 = vmatpush1.bf16.msra.mxu0 %v3609_v39  ;;  %2475 = vmatpush1.bf16.msra.mxu1 %v3614_v40 }
 0x61e   :  { %2435 = vmatprep.subr.bf16.mxu0 %v3621_v2  ;;  %2476 = vmatprep.subr.bf16.mxu1 %v3626_v3 }
 0x621   :  { %2436 = vmatpush1.bf16.msra.mxu0 %v3633_v4  ;;  %2477 = vmatpush1.bf16.msra.mxu1 %v3638_v5 }
 0x6c4   :  { %v2140_v47 = vpop.f32.mrf.mxu0  ;;  %v2181_v48 = vpop.f32.mrf.mxu1 }
 0x6c5   :  { %v2188_v6 = vadd.f32 %v2775_v1, %v2140_v47  ;;  %v2190_v63 = vadd.f32 %v2777_v60, %v2181_v48 }
 0x6c6   :  { %v2142_v49 = vpop.f32.mrf.mxu0  ;;  %v2183_v50 = vpop.f32.mrf.mxu1 }
 0x6c7   :  { %v2811_v51 = vmul.f32 -1.442695, %v2188_v6  ;;  %v2189_v52 = vadd.f32 %v2776_v0, %v2142_v49  ;;  %v2191_v59 = vadd.f32 %v2778_v58, %v2183_v50 }
 0x6c8   :  { %v2144_v53 = vpop.f32.mrf.mxu0  ;;  %v2185_v54 = vpop.f32.mrf.mxu1 }
 0x6c9   :  { %3049 = vpow2.f32 %v2811_v51  ;;  %v2812_v55 = vmul.f32 -1.442695, %v2189_v52  ;;  %v2813_v61 = vmul.f32 -1.442695, %v2191_v59 }
 0x6ca   :  { %v2145_v56 = vpop.f32.mrf.mxu0  ;;  %v2186_v57 = vpop.f32.mrf.mxu1 }
 0x6cb   :  { %3051 = vpow2.f32 %v2812_v55 }
 0x6cc   :  { %3053 = vpow2.f32 %v2813_v61 }
 0x6d6   :  { %v3050_v62 = vpop.eup %3049 }
 0x6d7   :  { %v2195_v34 = vadd.f32 1.0, %v3050_v62 }
 0x6d8   :  { %v3052_v35 = vpop.eup %3051 }
 0x6d9   :  { %3055 = vrcp.f32 %v2195_v34  ;;  %v2201_v36 = vadd.f32 1.0, %v3052_v35  ;;  %v3054_v37 = vpop.eup %3053 }
 0x6da   :  { %3057 = vtanh.f32 %v2190_v63  ;;  %v2208_v2 = vadd.f32 1.0, %v3054_v37 }
 0x6db   :  { %3059 = vrcp.f32 %v2201_v36 }
 0x6dc   :  { %3061 = vrcp.f32 %v2208_v2 }
 0x6e6   :  { %v3056_v38 = vpop.eup %3055 }
 0x6e7   :  { %v3058_v39 = vpop.eup %3057 }
 0x6e8   :  { %v3060_v40 = vpop.eup %3059  ;;  %v2212_v3 = vmul.f32 %v3058_v39, %v3056_v38 }
 0x6e9   :  { %v2211_v4 = vmul.f32 %v3060_v40, %v3765_v14  ;;  %v3062_v33 = vpop.eup %3061 }
 0x6eb   :  { %v2213_v5 = vadd.f32 %v2212_v3, %v2211_v4 }
 0x6ed   :  { %3063 = vtanh.f32 %v2213_v5 }
 0x6fa   :  { %v3064_v18 = vpop.eup %3063 }
 0x6fb   :  { %v2215_v19 = vmul.f32 %v3064_v18, %v3062_v33 }
 0x6fd   :  { %v2218_v20 = vpack.c.bf16 %v2215_v19, %v2215_v19 }
 0x6ff   :  { %2814 = vst [vmem:[%s3836_s2 + $0x18] sm:$0xf] %v2218_v20  ;;  %2454 = vmatmul.mubr.bf16.vlgmr.msra.gmra.mxu0 %v2218_v20  ;;  %2495 = vmatmul.mubr.bf16.vlgmr.msra.gmra.mxu1 %v2218_v20 }
 0x7bf   :  { %v2455_v22 = vpop.f32.mrf.mxu0  ;;  %v2496_v23 = vpop.f32.mrf.mxu1 }
 0x7c0   :  { %v2503_v25 = vadd.f32 %v2815_v21, %v2455_v22  ;;  %v2505_v9 = vadd.f32 %v2817_v43, %v2496_v23 }
 0x7c1   :  { %v2457_v45 = vpop.f32.mrf.mxu0  ;;  %v2498_v46 = vpop.f32.mrf.mxu1 }
 0x7c2   :  { %v2851_v26 = vmul.f32 -1.442695, %v2503_v25  ;;  %v2504_v27 = vadd.f32 %v2816_v24, %v2457_v45  ;;  %v2506_v42 = vadd.f32 %v2818_v41, %v2498_v46 }
 0x7c3   :  { %v2459_v28 = vpop.f32.mrf.mxu0  ;;  %v2500_v29 = vpop.f32.mrf.mxu1 }
 0x7c4   :  { %3065 = vpow2.f32 %v2851_v26  ;;  %v2852_v30 = vmul.f32 -1.442695, %v2504_v27  ;;  %v2853_v44 = vmul.f32 -1.442695, %v2506_v42 }
 0x7c5   :  { %v2460_v31 = vpop.f32.mrf.mxu0  ;;  %v2501_v32 = vpop.f32.mrf.mxu1 }
 0x7c6   :  { %3067 = vpow2.f32 %v2852_v30 }
 0x7c7   :  { %3069 = vpow2.f32 %v2853_v44 }
 0x7d1   :  { %v3066_v8 = vpop.eup %3065 }
 0x7d2   :  { %v2510_v10 = vadd.f32 1.0, %v3066_v8 }
 0x7d3   :  { %v3068_v11 = vpop.eup %3067 }
 0x7d4   :  { %3071 = vrcp.f32 %v2510_v10  ;;  %v2516_v12 = vadd.f32 1.0, %v3068_v11  ;;  %v3070_v13 = vpop.eup %3069 }
 0x7d5   :  { %3073 = vtanh.f32 %v2505_v9  ;;  %v2523_v16 = vadd.f32 1.0, %v3070_v13 }
 0x7d6   :  { %3075 = vrcp.f32 %v2516_v12 }
 0x7d7   :  { %3077 = vrcp.f32 %v2523_v16 }
 0x7e1   :  { %v3072_v14 = vpop.eup %3071 }
 0x7e2   :  { %v3074_v15 = vpop.eup %3073 }
 0x7e3   :  { %v3076_v7 = vpop.eup %3075  ;;  %v2527_v17 = vmul.f32 %v3074_v15, %v3072_v14 }
 0x7e4   :  { %v2526_v1 = vmul.f32 %v3076_v7, %v2213_v5  ;;  %v3078_v48 = vpop.eup %3077 }
 0x7e6   :  { %v2528_v47 = vadd.f32 %v2527_v17, %v2526_v1 }
 0x7e8   :  { %3079 = vtanh.f32 %v2528_v47 }
 0x7f5   :  { %v3080_v0 = vpop.eup %3079 }
 0x7f6   :  { %v2530_v6 = vmul.f32 %v3080_v0, %v3078_v48 }
 0x7f8   :  { %v2533_v49 = vpack.c.bf16 %v2530_v6, %v2530_v6 }
 0x7fa   :  { %2854 = vst [vmem:[%s3836_s2 + $0x1c] sm:$0xf] %v2533_v49 }

// kernel: basic_lstm_forward.7
= control target key start
LH: loop header
LB: loop body
LE: loop exit
PB: predicated region body
PF: predicated region fallthrough
CT: control target
= control target key end

     0   :  { %v3223_v1 = vmov 0   ;;  %v3224_v33 = vmov 0.0|0.0   ;;  %vm3226_vm0 = vmmov 0   ;;  %vm2635_vm1 = vcmask 31744   ;;  %s3998_s1 = inlined_call_operand.vmem [shape: bf16[128,512], index: 1, kind: input, shape index: {}]   ;;  %s3999_s0 = inlined_call_operand.vmem [shape: f32[8,8,512], index: 0, kind: input, shape index: {}]   ;;  %s4000_s2 = inlined_call_operand.vmem [shape: bf16[128,4], index: 2, kind: input, shape index: {}]   ;;  %s4001_s3 = inlined_call_operand.vmem [shape: f32[1,4], index: 3, kind: input, shape index: {}]   ;;  %s4002_s4 = inlined_call_operand.vmem [shape: f32[8,4], index: 4, kind: output, shape index: {}]  }
   0x1   :  { %v3255_v0 = vld [vmem:[%s3998_s1 + $0xe4] ss:$16 sps:$4 sm:$0xff]   ;;  %255 = vmatprep.mubr.bf16.mxu0 %v3223_v1  ;;  %296 = vmatprep.mubr.bf16.mxu1 %v3223_v1  ;;  %v3262_v2 = vld [vmem:[%s3998_s1 + $0xe0] ss:$16 sps:$4 sm:$0xff]   ;;  %v3285_v6 = vld [vmem:[%s3998_s1 + $0xec] ss:$16 sps:$4 sm:$0xff]  }
   0x2   :  { %223 = vmatprep.subr.bf16.mxu0 %v3255_v0  ;;  %v3268_v3 = vld [vmem:[%s3998_s1 + $0xc4] ss:$16 sps:$4 sm:$0xff]   ;;  %v3274_v4 = vld [vmem:[%s3998_s1 + $0xc0] ss:$16 sps:$4 sm:$0xff]   ;;  %v3290_v7 = vld [vmem:[%s3998_s1 + $0xe8] ss:$16 sps:$4 sm:$0xff]   ;;  %264 = vmatprep.subr.bf16.mxu1 %v3285_v6 }
   0x3   :  { %224 = vmatpush1.bf16.msra.mxu0 %v3262_v2  ;;  %v3280_v5 = vld [vmem:[%s3998_s1 + $0xa4] ss:$16 sps:$4 sm:$0xff]   ;;  %v3296_v8 = vld [vmem:[%s3998_s1 + $0xa0] ss:$16 sps:$4 sm:$0xff]   ;;  %265 = vmatpush1.bf16.msra.mxu1 %v3290_v7  ;;  %v3309_v10 = vld [vmem:[%s3998_s1 + $0xcc] ss:$16 sps:$4 sm:$0xff]  }
   0x4   :  { %225 = vmatprep.subr.bf16.mxu0 %v3268_v3  ;;  %v3303_v9 = vld [vmem:[%s3998_s1 + $0x84] ss:$16 sps:$4 sm:$0xff]   ;;  %v3314_v11 = vld [vmem:[%s3998_s1 + $0xc8] ss:$16 sps:$4 sm:$0xff]   ;;  %266 = vmatprep.subr.bf16.mxu1 %v3309_v10  ;;  %v3321_v12 = vld [vmem:[%s3998_s1 + $0x80] ss:$16 sps:$4 sm:$0xff]  }
   0x5   :  { %v3326_v13 = vld [vmem:[%s3998_s1 + $0x64] ss:$16 sps:$4 sm:$0xff]   ;;  %v3331_v14 = vld [vmem:[%s3998_s1 + $0xac] ss:$16 sps:$4 sm:$0xff]   ;;  %v3338_v15 = vld [vmem:[%s3998_s1 + $0xa8] ss:$16 sps:$4 sm:$0xff]  }
   0x6   :  { %v3344_v16 = vld [vmem:[%s3998_s1 + $0x8c] ss:$16 sps:$4 sm:$0xff]   ;;  %v3350_v17 = vld [vmem:[%s3998_s1 + $0x60] ss:$16 sps:$4 sm:$0xff]   ;;  %v3356_v18 = vld [vmem:[%s3998_s1 + $0x44] ss:$16 sps:$4 sm:$0xff]  }
   0x7   :  { %226 = vmatpush1.bf16.msra.mxu0 %v3274_v4  ;;  %267 = vmatpush1.bf16.msra.mxu1 %v3314_v11  ;;  %v3362_v19 = vld [vmem:[%s3998_s1 + $0x88] ss:$16 sps:$4 sm:$0xff]   ;;  %v3368_v20 = vld [vmem:[%s3998_s1 + $0x6c] ss:$16 sps:$4 sm:$0xff]   ;;  %v3374_v21 = vld [vmem:[%s3998_s1 + $0x40] ss:$16 sps:$4 sm:$0xff]  }
   0x8   :  { %227 = vmatprep.subr.bf16.mxu0 %v3280_v5  ;;  %268 = vmatprep.subr.bf16.mxu1 %v3331_v14  ;;  %v3379_v22 = vld [vmem:[%s3998_s1 + $0x24] ss:$16 sps:$4 sm:$0xff]   ;;  %v3386_v23 = vld [vmem:[%s3998_s1 + $0x68] ss:$16 sps:$4 sm:$0xff]   ;;  %v3391_v24 = vld [vmem:[%s3998_s1 + $0x20] ss:$16 sps:$4 sm:$0xff]  }
   0x9   :  { %v3397_v25 = vld [vmem:[%s3998_s1 + $0x4c] ss:$16 sps:$4 sm:$0xff]   ;;  %v3402_v26 = vld [vmem:[%s3998_s1 + $0x4] ss:$16 sps:$4 sm:$0xff]   ;;  %v3407_v27 = vld [vmem:[%s3998_s1 + $0x48] ss:$16 sps:$4 sm:$0xff]  }
   0xa   :  { %v3413_v28 = vld [vmem:[%s3998_s1 + $0x2c] ss:$16 sps:$4 sm:$0xff]   ;;  %v3420_v29 = vld [vmem:[%s3998_s1] ss:$16 sps:$4 sm:$0xff]   ;;  %v3426_v30 = vld [vmem:[%s3998_s1 + $0x28] ss:$16 sps:$4 sm:$0xff]  }
   0xb   :  { %228 = vmatpush1.bf16.msra.mxu0 %v3296_v8  ;;  %269 = vmatpush1.bf16.msra.mxu1 %v3338_v15  ;;  %v3432_v31 = vld [vmem:[%s3998_s1 + $0xc] ss:$16 sps:$4 sm:$0xff]   ;;  %v3442_v32 = vld [vmem:[%s3998_s1 + $0x8] ss:$16 sps:$4 sm:$0xff]   ;;  %v24_v34 = vld [vmem:[%s3999_s0] sm:$0xff] }
   0xc   :  { %229 = vmatprep.subr.bf16.mxu0 %v3303_v9  ;;  %270 = vmatprep.subr.bf16.mxu1 %v3344_v16  ;;  %v25_v36 = vld [vmem:[%s3999_s0 + $0x8] sm:$0xff]  ;;  %v27_v46 = vld [vmem:[%s3999_s0 + $0x18] sm:$0xff]  ;;  %v26_v49 = vld [vmem:[%s3999_s0 + $0x10] sm:$0xff] }
   0xf   :  { %230 = vmatpush1.bf16.msra.mxu0 %v3321_v12  ;;  %271 = vmatpush1.bf16.msra.mxu1 %v3362_v19 }
  0x10   :  { %231 = vmatprep.subr.bf16.mxu0 %v3326_v13  ;;  %272 = vmatprep.subr.bf16.mxu1 %v3368_v20 }
  0x13   :  { %232 = vmatpush1.bf16.msra.mxu0 %v3350_v17  ;;  %273 = vmatpush1.bf16.msra.mxu1 %v3386_v23 }
  0x14   :  { %233 = vmatprep.subr.bf16.mxu0 %v3356_v18  ;;  %274 = vmatprep.subr.bf16.mxu1 %v3397_v25 }
  0x17   :  { %234 = vmatpush1.bf16.msra.mxu0 %v3374_v21  ;;  %275 = vmatpush1.bf16.msra.mxu1 %v3407_v27 }
  0x18   :  { %235 = vmatprep.subr.bf16.mxu0 %v3379_v22  ;;  %276 = vmatprep.subr.bf16.mxu1 %v3413_v28 }
  0x1b   :  { %236 = vmatpush1.bf16.msra.mxu0 %v3391_v24  ;;  %277 = vmatpush1.bf16.msra.mxu1 %v3426_v30 }
  0x1c   :  { %237 = vmatprep.subr.bf16.mxu0 %v3402_v26  ;;  %278 = vmatprep.subr.bf16.mxu1 %v3432_v31 }
  0x1f   :  { %238 = vmatpush1.bf16.msra.mxu0 %v3420_v29  ;;  %279 = vmatpush1.bf16.msra.mxu1 %v3442_v32 }
  0x20   :  { %535 = vmatprep.subr.bf16.mxu0 %v3255_v0  ;;  %576 = vmatprep.subr.bf16.mxu1 %v3285_v6 }
  0x22   :  { %256 = vmatmul.mubr.bf16.vlgmr.msra.gmra.mxu0 %v3224_v33  ;;  %297 = vmatmul.mubr.bf16.vlgmr.msra.gmra.mxu1 %v3224_v33 }
  0x23   :  { %536 = vmatpush1.bf16.msra.mxu0 %v3262_v2  ;;  %567 = vmatprep.mubr.bf16.mxu0 %v3223_v1 }
  0x24   :  { %537 = vmatprep.subr.bf16.mxu0 %v3268_v3  ;;  %577 = vmatpush1.bf16.msra.mxu1 %v3290_v7 }
  0x25   :  { %578 = vmatprep.subr.bf16.mxu1 %v3309_v10  ;;  %608 = vmatprep.mubr.bf16.mxu1 %v3223_v1 }
  0x27   :  { %538 = vmatpush1.bf16.msra.mxu0 %v3274_v4 }
  0x28   :  { %539 = vmatprep.subr.bf16.mxu0 %v3280_v5  ;;  %579 = vmatpush1.bf16.msra.mxu1 %v3314_v11 }
  0x29   :  { %580 = vmatprep.subr.bf16.mxu1 %v3331_v14 }
  0x2b   :  { %540 = vmatpush1.bf16.msra.mxu0 %v3296_v8 }
  0x2c   :  { %541 = vmatprep.subr.bf16.mxu0 %v3303_v9  ;;  %581 = vmatpush1.bf16.msra.mxu1 %v3338_v15 }
  0x2d   :  { %582 = vmatprep.subr.bf16.mxu1 %v3344_v16 }
  0x2f   :  { %542 = vmatpush1.bf16.msra.mxu0 %v3321_v12 }
  0x30   :  { %543 = vmatprep.subr.bf16.mxu0 %v3326_v13  ;;  %583 = vmatpush1.bf16.msra.mxu1 %v3362_v19 }
  0x31   :  { %584 = vmatprep.subr.bf16.mxu1 %v3368_v20 }
  0x33   :  { %544 = vmatpush1.bf16.msra.mxu0 %v3350_v17 }
  0x34   :  { %545 = vmatprep.subr.bf16.mxu0 %v3356_v18  ;;  %585 = vmatpush1.bf16.msra.mxu1 %v3386_v23 }
  0x35   :  { %586 = vmatprep.subr.bf16.mxu1 %v3397_v25 }
  0x37   :  { %546 = vmatpush1.bf16.msra.mxu0 %v3374_v21 }
  0x38   :  { %547 = vmatprep.subr.bf16.mxu0 %v3379_v22  ;;  %587 = vmatpush1.bf16.msra.mxu1 %v3407_v27 }
  0x39   :  { %588 = vmatprep.subr.bf16.mxu1 %v3413_v28 }
  0x3b   :  { %548 = vmatpush1.bf16.msra.mxu0 %v3391_v24 }
  0x3c   :  { %549 = vmatprep.subr.bf16.mxu0 %v3402_v26  ;;  %589 = vmatpush1.bf16.msra.mxu1 %v3426_v30 }
  0x3d   :  { %590 = vmatprep.subr.bf16.mxu1 %v3432_v31 }
  0x3f   :  { %550 = vmatpush1.bf16.msra.mxu0 %v3420_v29 }
  0x40   :  { %847 = vmatprep.subr.bf16.mxu0 %v3255_v0  ;;  %591 = vmatpush1.bf16.msra.mxu1 %v3442_v32 }
  0x41   :  { %888 = vmatprep.subr.bf16.mxu1 %v3285_v6 }
  0xe2   :  { %v257_v35 = vpop.f32.mrf.mxu0  ;;  %v298_v43 = vpop.f32.mrf.mxu1 }
  0xe3   :  { %v305_v37 = vadd.f32 %v257_v35, %v24_v34  ;;  %v307_v51 = vadd.f32 %v298_v43, %v26_v49 }
  0xe4   :  { %v259_v38 = vpop.f32.mrf.mxu0  ;;  %v300_v45 = vpop.f32.mrf.mxu1 }
  0xe5   :  { %v2673_v39 = vmul.f32 -1.442695, %v305_v37  ;;  %v306_v40 = vadd.f32 %v259_v38, %v25_v36  ;;  %v308_v50 = vadd.f32 %v300_v45, %v27_v46  ;;  %v2676_v38 = vld [vmem:[%s3999_s0 + $0x20] sm:$0xff] }
  0xe6   :  { %v261_v41 = vpop.f32.mrf.mxu0  ;;  %v302_v47 = vpop.f32.mrf.mxu1 }
  0xe7   :  { %3095 = vpow2.f32 %v2673_v39  ;;  %v2674_v42 = vmul.f32 -1.442695, %v306_v40  ;;  %v2675_v52 = vmul.f32 -1.442695, %v308_v50  ;;  %v2677_v41 = vld [vmem:[%s3999_s0 + $0x28] sm:$0xff]  ;;  %v2679_v50 = vld [vmem:[%s3999_s0 + $0x38] sm:$0xff] }
  0xe8   :  { %v262_v44 = vpop.f32.mrf.mxu0  ;;  %v303_v48 = vpop.f32.mrf.mxu1 }
  0xe9   :  { %3097 = vpow2.f32 %v2674_v42 }
  0xea   :  { %3099 = vtanh.f32 %v307_v51 }
  0xeb   :  { %3101 = vpow2.f32 %v2675_v52  ;;  %v2678_v52 = vld [vmem:[%s3999_s0 + $0x30] sm:$0xff] }
  0xf4   :  { %v3096_v53 = vpop.eup %3095 }
  0xf5   :  { %v312_v54 = vadd.f32 1.0, %v3096_v53 }
  0xf6   :  { %v3098_v55 = vpop.eup %3097 }
  0xf7   :  { %3103 = vrcp.f32 %v312_v54  ;;  %v318_v56 = vadd.f32 1.0, %v3098_v55  ;;  %v3100_v57 = vpop.eup %3099 }
  0xf8   :  { %v3102_v58 = vpop.eup %3101 }
  0xf9   :  { %3105 = vrcp.f32 %v318_v56  ;;  %v325_v61 = vadd.f32 1.0, %v3102_v58 }
  0xfb   :  { %3107 = vrcp.f32 %v325_v61 }
 0x104   :  { %v3104_v59 = vpop.eup %3103 }
 0x105   :  { %v329_v63 = vmul.f32 %v3104_v59, %v3100_v57 }
 0x106   :  { %v3106_v60 = vpop.eup %3105 }
 0x107   :  { %v328_v62 = vmul.f32 0.0, %v3106_v60 }
 0x108   :  { %v3108_v34 = vpop.eup %3107 }
 0x109   :  { %v3494_v33 = vadd.f32 %v329_v63, %v328_v62 }
 0x10b   :  { %3109 = vtanh.f32 %v3494_v33 }
 0x118   :  { %v3110_v35 = vpop.eup %3109 }
 0x119   :  { %v332_v36 = vmul.f32 %v3110_v35, %v3108_v34 }
 0x11b   :  { %v342_v37 = vpack.c.bf16 %v332_v36, %v332_v36 }
 0x11d   :  { %568 = vmatmul.mubr.bf16.vlgmr.msra.gmra.mxu0 %v342_v37  ;;  %609 = vmatmul.mubr.bf16.vlgmr.msra.gmra.mxu1 %v342_v37 }
 0x11e   :  { %848 = vmatpush1.bf16.msra.mxu0 %v3262_v2  ;;  %889 = vmatpush1.bf16.msra.mxu1 %v3290_v7 }
 0x11f   :  { %849 = vmatprep.subr.bf16.mxu0 %v3268_v3  ;;  %890 = vmatprep.subr.bf16.mxu1 %v3309_v10 }
 0x120   :  { %879 = vmatprep.mubr.bf16.mxu0 %v3223_v1  ;;  %920 = vmatprep.mubr.bf16.mxu1 %v3223_v1 }
 0x122   :  { %850 = vmatpush1.bf16.msra.mxu0 %v3274_v4  ;;  %891 = vmatpush1.bf16.msra.mxu1 %v3314_v11 }
 0x123   :  { %851 = vmatprep.subr.bf16.mxu0 %v3280_v5  ;;  %892 = vmatprep.subr.bf16.mxu1 %v3331_v14 }
 0x126   :  { %852 = vmatpush1.bf16.msra.mxu0 %v3296_v8  ;;  %893 = vmatpush1.bf16.msra.mxu1 %v3338_v15 }
 0x127   :  { %853 = vmatprep.subr.bf16.mxu0 %v3303_v9  ;;  %894 = vmatprep.subr.bf16.mxu1 %v3344_v16 }
 0x12a   :  { %854 = vmatpush1.bf16.msra.mxu0 %v3321_v12  ;;  %895 = vmatpush1.bf16.msra.mxu1 %v3362_v19 }
 0x12b   :  { %855 = vmatprep.subr.bf16.mxu0 %v3326_v13  ;;  %896 = vmatprep.subr.bf16.mxu1 %v3368_v20 }
 0x12e   :  { %856 = vmatpush1.bf16.msra.mxu0 %v3350_v17  ;;  %897 = vmatpush1.bf16.msra.mxu1 %v3386_v23 }
 0x12f   :  { %857 = vmatprep.subr.bf16.mxu0 %v3356_v18  ;;  %898 = vmatprep.subr.bf16.mxu1 %v3397_v25 }
 0x132   :  { %858 = vmatpush1.bf16.msra.mxu0 %v3374_v21  ;;  %899 = vmatpush1.bf16.msra.mxu1 %v3407_v27 }
 0x133   :  { %859 = vmatprep.subr.bf16.mxu0 %v3379_v22  ;;  %900 = vmatprep.subr.bf16.mxu1 %v3413_v28 }
 0x136   :  { %860 = vmatpush1.bf16.msra.mxu0 %v3391_v24  ;;  %901 = vmatpush1.bf16.msra.mxu1 %v3426_v30 }
 0x137   :  { %861 = vmatprep.subr.bf16.mxu0 %v3402_v26  ;;  %902 = vmatprep.subr.bf16.mxu1 %v3432_v31 }
 0x13a   :  { %862 = vmatpush1.bf16.msra.mxu0 %v3420_v29  ;;  %903 = vmatpush1.bf16.msra.mxu1 %v3442_v32 }
 0x13b   :  { %1159 = vmatprep.subr.bf16.mxu0 %v3255_v0  ;;  %1200 = vmatprep.subr.bf16.mxu1 %v3285_v6 }
 0x1dd   :  { %v569_v39 = vpop.f32.mrf.mxu0  ;;  %v610_v40 = vpop.f32.mrf.mxu1 }
 0x1de   :  { %v617_v42 = vadd.f32 %v2676_v38, %v569_v39  ;;  %v619_v55 = vadd.f32 %v2678_v52, %v610_v40  ;;  %v3653_v52 = vld [vmem:[%s3998_s1 + $0xac] ss:$16 sps:$4 sm:$0xff]  }
 0x1df   :  { %v571_v43 = vpop.f32.mrf.mxu0  ;;  %v612_v44 = vpop.f32.mrf.mxu1 }
 0x1e0   :  { %v2712_v45 = vmul.f32 -1.442695, %v617_v42  ;;  %v618_v46 = vadd.f32 %v2677_v41, %v571_v43  ;;  %v620_v51 = vadd.f32 %v2679_v50, %v612_v44  ;;  %v3639_v50 = vld [vmem:[%s3998_s1 + $0xc8] ss:$16 sps:$4 sm:$0xff]  }
 0x1e1   :  { %v573_v47 = vpop.f32.mrf.mxu0  ;;  %v614_v48 = vpop.f32.mrf.mxu1 }
 0x1e2   :  { %3111 = vpow2.f32 %v2712_v45  ;;  %v2713_v0 = vmul.f32 -1.442695, %v618_v46  ;;  %v2714_v53 = vmul.f32 -1.442695, %v620_v51  ;;  %v3600_v45 = vld [vmem:[%s3998_s1 + $0xe4] ss:$16 sps:$4 sm:$0xff]  }
 0x1e3   :  { %v574_v6 = vpop.f32.mrf.mxu0  ;;  %v615_v49 = vpop.f32.mrf.mxu1  ;;  %v3605_v46 = vld [vmem:[%s3998_s1 + $0xec] ss:$16 sps:$4 sm:$0xff]   ;;  %v3610_v47 = vld [vmem:[%s3998_s1 + $0xe0] ss:$16 sps:$4 sm:$0xff]   ;;  %v3615_v48 = vld [vmem:[%s3998_s1 + $0xe8] ss:$16 sps:$4 sm:$0xff]  }
 0x1e4   :  { %3113 = vpow2.f32 %v2713_v0  ;;  %v3624_v0 = vld [vmem:[%s3998_s1 + $0xc4] ss:$16 sps:$4 sm:$0xff]   ;;  %v3629_v6 = vld [vmem:[%s3998_s1 + $0xcc] ss:$16 sps:$4 sm:$0xff]   ;;  %v3634_v49 = vld [vmem:[%s3998_s1 + $0xc0] ss:$16 sps:$4 sm:$0xff]  }
 0x1e5   :  { %3115 = vpow2.f32 %v2714_v53  ;;  %v3648_v51 = vld [vmem:[%s3998_s1 + $0xa4] ss:$16 sps:$4 sm:$0xff]   ;;  %v3658_v53 = vld [vmem:[%s3998_s1 + $0xa0] ss:$16 sps:$4 sm:$0xff]  }
 0x1ef   :  { %v3112_v54 = vpop.eup %3111 }
 0x1f0   :  { %v624_v56 = vadd.f32 1.0, %v3112_v54  ;;  %v3663_v54 = vld [vmem:[%s3998_s1 + $0xa8] ss:$16 sps:$4 sm:$0xff]  }
 0x1f1   :  { %v3114_v57 = vpop.eup %3113 }
 0x1f2   :  { %3117 = vrcp.f32 %v624_v56  ;;  %v630_v58 = vadd.f32 1.0, %v3114_v57  ;;  %v3116_v59 = vpop.eup %3115  ;;  %v3677_v56 = vld [vmem:[%s3998_s1 + $0x8c] ss:$16 sps:$4 sm:$0xff]   ;;  %v3682_v57 = vld [vmem:[%s3998_s1 + $0x80] ss:$16 sps:$4 sm:$0xff]  }
 0x1f3   :  { %3119 = vtanh.f32 %v619_v55  ;;  %v637_v63 = vadd.f32 1.0, %v3116_v59  ;;  %v3672_v55 = vld [vmem:[%s3998_s1 + $0x84] ss:$16 sps:$4 sm:$0xff]  }
 0x1f4   :  { %3121 = vrcp.f32 %v630_v58  ;;  %v3687_v58 = vld [vmem:[%s3998_s1 + $0x88] ss:$16 sps:$4 sm:$0xff]   ;;  %v3694_v59 = vld [vmem:[%s3998_s1 + $0x64] ss:$16 sps:$4 sm:$0xff]  }
 0x1f5   :  { %3123 = vrcp.f32 %v637_v63  ;;  %v3718_v63 = vld [vmem:[%s3998_s1 + $0x44] ss:$16 sps:$4 sm:$0xff]  }
 0x1ff   :  { %v3118_v60 = vpop.eup %3117 }
 0x200   :  { %v3120_v61 = vpop.eup %3119 }
 0x201   :  { %v3122_v62 = vpop.eup %3121  ;;  %v641_v34 = vmul.f32 %v3120_v61, %v3118_v60  ;;  %v3699_v60 = vld [vmem:[%s3998_s1 + $0x6c] ss:$16 sps:$4 sm:$0xff]   ;;  %v3706_v61 = vld [vmem:[%s3998_s1 + $0x60] ss:$16 sps:$4 sm:$0xff]  }
 0x202   :  { %v640_v35 = vmul.f32 %v3122_v62, %v3494_v33  ;;  %v3124_v37 = vpop.eup %3123  ;;  %v3711_v62 = vld [vmem:[%s3998_s1 + $0x68] ss:$16 sps:$4 sm:$0xff]  }
 0x204   :  { %v3544_v36 = vadd.f32 %v641_v34, %v640_v35  ;;  %v3723_v34 = vld [vmem:[%s3998_s1 + $0x4c] ss:$16 sps:$4 sm:$0xff]   ;;  %v3730_v35 = vld [vmem:[%s3998_s1 + $0x40] ss:$16 sps:$4 sm:$0xff]  }
 0x206   :  { %3125 = vtanh.f32 %v3544_v36 }
 0x213   :  { %v3126_v38 = vpop.eup %3125 }
 0x214   :  { %v644_v39 = vmul.f32 %v3126_v38, %v3124_v37  ;;  %v3742_v37 = vld [vmem:[%s3998_s1 + $0x24] ss:$16 sps:$4 sm:$0xff]   ;;  %v3747_v38 = vld [vmem:[%s3998_s1 + $0x2c] ss:$16 sps:$4 sm:$0xff]  }
 0x216   :  { %v654_v40 = vpack.c.bf16 %v644_v39, %v644_v39  ;;  %v3754_v39 = vld [vmem:[%s3998_s1 + $0x20] ss:$16 sps:$4 sm:$0xff]  }
 0x218   :  { %880 = vmatmul.mubr.bf16.vlgmr.msra.gmra.mxu0 %v654_v40  ;;  %921 = vmatmul.mubr.bf16.vlgmr.msra.gmra.mxu1 %v654_v40  ;;  %v3759_v40 = vld [vmem:[%s3998_s1 + $0x28] ss:$16 sps:$4 sm:$0xff]  }
 0x219   :  { %1160 = vmatpush1.bf16.msra.mxu0 %v3262_v2  ;;  %1201 = vmatpush1.bf16.msra.mxu1 %v3290_v7  ;;  %v2715_v2 = vld [vmem:[%s3999_s0 + $0x40] sm:$0xff] }
 0x21a   :  { %1161 = vmatprep.subr.bf16.mxu0 %v3268_v3  ;;  %1202 = vmatprep.subr.bf16.mxu1 %v3309_v10 }
 0x21b   :  { %1191 = vmatprep.mubr.bf16.mxu0 %v3223_v1  ;;  %1232 = vmatprep.mubr.bf16.mxu1 %v3223_v1 }
 0x21d   :  { %1162 = vmatpush1.bf16.msra.mxu0 %v3274_v4  ;;  %1203 = vmatpush1.bf16.msra.mxu1 %v3314_v11 }
 0x21e   :  { %1163 = vmatprep.subr.bf16.mxu0 %v3280_v5  ;;  %1204 = vmatprep.subr.bf16.mxu1 %v3331_v14  ;;  %v2716_v5 = vld [vmem:[%s3999_s0 + $0x48] sm:$0xff] }
 0x221   :  { %1164 = vmatpush1.bf16.msra.mxu0 %v3296_v8  ;;  %1205 = vmatpush1.bf16.msra.mxu1 %v3338_v15 }
 0x222   :  { %1165 = vmatprep.subr.bf16.mxu0 %v3303_v9  ;;  %1206 = vmatprep.subr.bf16.mxu1 %v3344_v16 }
 0x225   :  { %1166 = vmatpush1.bf16.msra.mxu0 %v3321_v12  ;;  %1207 = vmatpush1.bf16.msra.mxu1 %v3362_v19  ;;  %v2717_v19 = vld [vmem:[%s3999_s0 + $0x50] sm:$0xff] }
 0x226   :  { %1167 = vmatprep.subr.bf16.mxu0 %v3326_v13  ;;  %1208 = vmatprep.subr.bf16.mxu1 %v3368_v20 }
 0x229   :  { %1168 = vmatpush1.bf16.msra.mxu0 %v3350_v17  ;;  %1209 = vmatpush1.bf16.msra.mxu1 %v3386_v23  ;;  %v2718_v17 = vld [vmem:[%s3999_s0 + $0x58] sm:$0xff] }
 0x22a   :  { %1169 = vmatprep.subr.bf16.mxu0 %v3356_v18  ;;  %1210 = vmatprep.subr.bf16.mxu1 %v3397_v25 }
 0x22d   :  { %1170 = vmatpush1.bf16.msra.mxu0 %v3374_v21  ;;  %1211 = vmatpush1.bf16.msra.mxu1 %v3407_v27 }
 0x22e   :  { %1171 = vmatprep.subr.bf16.mxu0 %v3379_v22  ;;  %1212 = vmatprep.subr.bf16.mxu1 %v3413_v28 }
 0x231   :  { %1172 = vmatpush1.bf16.msra.mxu0 %v3391_v24  ;;  %1213 = vmatpush1.bf16.msra.mxu1 %v3426_v30 }
 0x232   :  { %1173 = vmatprep.subr.bf16.mxu0 %v3402_v26  ;;  %1214 = vmatprep.subr.bf16.mxu1 %v3432_v31 }
 0x235   :  { %1174 = vmatpush1.bf16.msra.mxu0 %v3420_v29  ;;  %1215 = vmatpush1.bf16.msra.mxu1 %v3442_v32 }
 0x236   :  { %1471 = vmatprep.subr.bf16.mxu0 %v3600_v45  ;;  %1512 = vmatprep.subr.bf16.mxu1 %v3605_v46 }
 0x2d8   :  { %v881_v3 = vpop.f32.mrf.mxu0  ;;  %v922_v4 = vpop.f32.mrf.mxu1 }
 0x2d9   :  { %v929_v7 = vadd.f32 %v2715_v2, %v881_v3  ;;  %v931_v22 = vadd.f32 %v2717_v19, %v922_v4  ;;  %v3766_v2 = vld [vmem:[%s3998_s1 + $0x4] ss:$16 sps:$4 sm:$0xff]   ;;  %v3771_v3 = vld [vmem:[%s3998_s1 + $0xc] ss:$16 sps:$4 sm:$0xff]   ;;  %v3778_v4 = vld [vmem:[%s3998_s1] ss:$16 sps:$4 sm:$0xff]  }
 0x2da   :  { %v883_v8 = vpop.f32.mrf.mxu0  ;;  %v924_v9 = vpop.f32.mrf.mxu1 }
 0x2db   :  { %v2751_v10 = vmul.f32 -1.442695, %v929_v7  ;;  %v930_v11 = vadd.f32 %v2716_v5, %v883_v8  ;;  %v932_v18 = vadd.f32 %v2718_v17, %v924_v9  ;;  %v3783_v5 = vld [vmem:[%s3998_s1 + $0x8] ss:$16 sps:$4 sm:$0xff]   ;;  %v2754_v7 = vld [vmem:[%s3999_s0 + $0x60] sm:$0xff] }
 0x2dc   :  { %v885_v12 = vpop.f32.mrf.mxu0  ;;  %v926_v13 = vpop.f32.mrf.mxu1 }
 0x2dd   :  { %3127 = vpow2.f32 %v2751_v10  ;;  %v2752_v14 = vmul.f32 -1.442695, %v930_v11  ;;  %v2753_v20 = vmul.f32 -1.442695, %v932_v18  ;;  %v2755_v10 = vld [vmem:[%s3999_s0 + $0x68] sm:$0xff] }
 0x2de   :  { %v886_v15 = vpop.f32.mrf.mxu0  ;;  %v927_v16 = vpop.f32.mrf.mxu1 }
 0x2df   :  { %3129 = vpow2.f32 %v2752_v14 }
 0x2e0   :  { %3131 = vpow2.f32 %v2753_v20 }
 0x2ea   :  { %v3128_v21 = vpop.eup %3127 }
 0x2eb   :  { %v936_v23 = vadd.f32 1.0, %v3128_v21  ;;  %v2757_v21 = vld [vmem:[%s3999_s0 + $0x78] sm:$0xff] }
 0x2ec   :  { %v3130_v24 = vpop.eup %3129 }
 0x2ed   :  { %3133 = vrcp.f32 %v936_v23  ;;  %v942_v25 = vadd.f32 1.0, %v3130_v24  ;;  %v3132_v26 = vpop.eup %3131  ;;  %v2756_v23 = vld [vmem:[%s3999_s0 + $0x70] sm:$0xff] }
 0x2ee   :  { %3135 = vtanh.f32 %v931_v22  ;;  %v949_v30 = vadd.f32 1.0, %v3132_v26 }
 0x2ef   :  { %3137 = vrcp.f32 %v942_v25 }
 0x2f0   :  { %3139 = vrcp.f32 %v949_v30 }
 0x2fa   :  { %v3134_v27 = vpop.eup %3133 }
 0x2fb   :  { %v3136_v28 = vpop.eup %3135 }
 0x2fc   :  { %v3138_v29 = vpop.eup %3137  ;;  %v953_v31 = vmul.f32 %v3136_v28, %v3134_v27 }
 0x2fd   :  { %v952_v32 = vmul.f32 %v3138_v29, %v3544_v36  ;;  %v3140_v41 = vpop.eup %3139  ;;  %v3735_v36 = vld [vmem:[%s3998_s1 + $0x48] ss:$16 sps:$4 sm:$0xff]  }
 0x2ff   :  { %v3592_v33 = vadd.f32 %v953_v31, %v952_v32 }
 0x301   :  { %3141 = vtanh.f32 %v3592_v33 }
 0x30e   :  { %v3142_v42 = vpop.eup %3141 }
 0x30f   :  { %v956_v43 = vmul.f32 %v3142_v42, %v3140_v41 }
 0x311   :  { %v966_v44 = vpack.c.bf16 %v956_v43, %v956_v43 }
 0x313   :  { %1192 = vmatmul.mubr.bf16.vlgmr.msra.gmra.mxu0 %v966_v44  ;;  %1233 = vmatmul.mubr.bf16.vlgmr.msra.gmra.mxu1 %v966_v44 }
 0x314   :  { %1503 = vmatprep.mubr.bf16.mxu0 %v3223_v1  ;;  %1544 = vmatprep.mubr.bf16.mxu1 %v3223_v1 }
 0x315   :  { %1472 = vmatpush1.bf16.msra.mxu0 %v3610_v47  ;;  %1513 = vmatpush1.bf16.msra.mxu1 %v3615_v48 }
 0x316   :  { %1473 = vmatprep.subr.bf16.mxu0 %v3624_v0  ;;  %1514 = vmatprep.subr.bf16.mxu1 %v3629_v6 }
 0x319   :  { %1474 = vmatpush1.bf16.msra.mxu0 %v3634_v49  ;;  %1515 = vmatpush1.bf16.msra.mxu1 %v3639_v50 }
 0x31a   :  { %1475 = vmatprep.subr.bf16.mxu0 %v3648_v51  ;;  %1516 = vmatprep.subr.bf16.mxu1 %v3653_v52 }
 0x31d   :  { %1476 = vmatpush1.bf16.msra.mxu0 %v3658_v53  ;;  %1517 = vmatpush1.bf16.msra.mxu1 %v3663_v54 }
 0x31e   :  { %1477 = vmatprep.subr.bf16.mxu0 %v3672_v55  ;;  %1518 = vmatprep.subr.bf16.mxu1 %v3677_v56 }
 0x321   :  { %1478 = vmatpush1.bf16.msra.mxu0 %v3682_v57  ;;  %1519 = vmatpush1.bf16.msra.mxu1 %v3687_v58 }
 0x322   :  { %1479 = vmatprep.subr.bf16.mxu0 %v3694_v59  ;;  %1520 = vmatprep.subr.bf16.mxu1 %v3699_v60 }
 0x325   :  { %1480 = vmatpush1.bf16.msra.mxu0 %v3706_v61  ;;  %1521 = vmatpush1.bf16.msra.mxu1 %v3711_v62 }
 0x326   :  { %1481 = vmatprep.subr.bf16.mxu0 %v3718_v63  ;;  %1522 = vmatprep.subr.bf16.mxu1 %v3723_v34 }
 0x329   :  { %1482 = vmatpush1.bf16.msra.mxu0 %v3730_v35  ;;  %1523 = vmatpush1.bf16.msra.mxu1 %v3735_v36 }
 0x32a   :  { %1483 = vmatprep.subr.bf16.mxu0 %v3742_v37  ;;  %1524 = vmatprep.subr.bf16.mxu1 %v3747_v38 }
 0x32d   :  { %1484 = vmatpush1.bf16.msra.mxu0 %v3754_v39  ;;  %1525 = vmatpush1.bf16.msra.mxu1 %v3759_v40 }
 0x32e   :  { %1485 = vmatprep.subr.bf16.mxu0 %v3766_v2  ;;  %1526 = vmatprep.subr.bf16.mxu1 %v3771_v3 }
 0x331   :  { %1486 = vmatpush1.bf16.msra.mxu0 %v3778_v4  ;;  %1527 = vmatpush1.bf16.msra.mxu1 %v3783_v5 }
 0x332   :  { %1783 = vmatprep.subr.bf16.mxu0 %v3600_v45  ;;  %1824 = vmatprep.subr.bf16.mxu1 %v3605_v46 }
 0x3d3   :  { %v1193_v8 = vpop.f32.mrf.mxu0  ;;  %v1234_v9 = vpop.f32.mrf.mxu1 }
 0x3d4   :  { %v1241_v11 = vadd.f32 %v2754_v7, %v1193_v8  ;;  %v1243_v26 = vadd.f32 %v2756_v23, %v1234_v9 }
 0x3d5   :  { %v1195_v12 = vpop.f32.mrf.mxu0  ;;  %v1236_v13 = vpop.f32.mrf.mxu1 }
 0x3d6   :  { %v2790_v14 = vmul.f32 -1.442695, %v1241_v11  ;;  %v1242_v15 = vadd.f32 %v2755_v10, %v1195_v12  ;;  %v1244_v22 = vadd.f32 %v2757_v21, %v1236_v13 }
 0x3d7   :  { %v1197_v16 = vpop.f32.mrf.mxu0  ;;  %v1238_v17 = vpop.f32.mrf.mxu1 }
 0x3d8   :  { %3143 = vpow2.f32 %v2790_v14  ;;  %v2791_v18 = vmul.f32 -1.442695, %v1242_v15  ;;  %v2792_v24 = vmul.f32 -1.442695, %v1244_v22  ;;  %v2794_v14 = vld [vmem:[%s3999_s0 + $0x88] sm:$0xff] }
 0x3d9   :  { %v1198_v19 = vpop.f32.mrf.mxu0  ;;  %v1239_v20 = vpop.f32.mrf.mxu1 }
 0x3da   :  { %3145 = vpow2.f32 %v2791_v18 }
 0x3db   :  { %3147 = vpow2.f32 %v2792_v24 }
 0x3e5   :  { %v3144_v25 = vpop.eup %3143 }
 0x3e6   :  { %v1248_v27 = vadd.f32 1.0, %v3144_v25  ;;  %v2796_v25 = vld [vmem:[%s3999_s0 + $0x98] sm:$0xff] }
 0x3e7   :  { %v3146_v28 = vpop.eup %3145 }
 0x3e8   :  { %3149 = vrcp.f32 %v1248_v27  ;;  %v1254_v29 = vadd.f32 1.0, %v3146_v28  ;;  %v3148_v30 = vpop.eup %3147  ;;  %v2795_v27 = vld [vmem:[%s3999_s0 + $0x90] sm:$0xff] }
 0x3e9   :  { %3151 = vtanh.f32 %v1243_v26  ;;  %v1261_v42 = vadd.f32 1.0, %v3148_v30 }
 0x3ea   :  { %3153 = vrcp.f32 %v1254_v29 }
 0x3eb   :  { %3155 = vrcp.f32 %v1261_v42 }
 0x3f5   :  { %v3150_v31 = vpop.eup %3149 }
 0x3f6   :  { %v3152_v32 = vpop.eup %3151 }
 0x3f7   :  { %v3154_v41 = vpop.eup %3153  ;;  %v1265_v43 = vmul.f32 %v3152_v32, %v3150_v31 }
 0x3f8   :  { %v1264_v44 = vmul.f32 %v3154_v41, %v3592_v33  ;;  %v3156_v8 = vpop.eup %3155  ;;  %v2793_v33 = vld [vmem:[%s3999_s0 + $0x80] sm:$0xff] }
 0x3fa   :  { %v3804_v7 = vadd.f32 %v1265_v43, %v1264_v44 }
 0x3fc   :  { %3157 = vtanh.f32 %v3804_v7 }
 0x409   :  { %v3158_v9 = vpop.eup %3157 }
 0x40a   :  { %v1268_v10 = vmul.f32 %v3158_v9, %v3156_v8 }
 0x40c   :  { %v1278_v11 = vpack.c.bf16 %v1268_v10, %v1268_v10 }
 0x40e   :  { %1504 = vmatmul.mubr.bf16.vlgmr.msra.gmra.mxu0 %v1278_v11  ;;  %1545 = vmatmul.mubr.bf16.vlgmr.msra.gmra.mxu1 %v1278_v11 }
 0x40f   :  { %1784 = vmatpush1.bf16.msra.mxu0 %v3610_v47  ;;  %1825 = vmatpush1.bf16.msra.mxu1 %v3615_v48 }
 0x410   :  { %1785 = vmatprep.subr.bf16.mxu0 %v3624_v0  ;;  %1826 = vmatprep.subr.bf16.mxu1 %v3629_v6 }
 0x411   :  { %1815 = vmatprep.mubr.bf16.mxu0 %v3223_v1  ;;  %1856 = vmatprep.mubr.bf16.mxu1 %v3223_v1 }
 0x413   :  { %1786 = vmatpush1.bf16.msra.mxu0 %v3634_v49  ;;  %1827 = vmatpush1.bf16.msra.mxu1 %v3639_v50 }
 0x414   :  { %1787 = vmatprep.subr.bf16.mxu0 %v3648_v51  ;;  %1828 = vmatprep.subr.bf16.mxu1 %v3653_v52 }
 0x417   :  { %1788 = vmatpush1.bf16.msra.mxu0 %v3658_v53  ;;  %1829 = vmatpush1.bf16.msra.mxu1 %v3663_v54 }
 0x418   :  { %1789 = vmatprep.subr.bf16.mxu0 %v3672_v55  ;;  %1830 = vmatprep.subr.bf16.mxu1 %v3677_v56 }
 0x41b   :  { %1790 = vmatpush1.bf16.msra.mxu0 %v3682_v57  ;;  %1831 = vmatpush1.bf16.msra.mxu1 %v3687_v58 }
 0x41c   :  { %1791 = vmatprep.subr.bf16.mxu0 %v3694_v59  ;;  %1832 = vmatprep.subr.bf16.mxu1 %v3699_v60 }
 0x41f   :  { %1792 = vmatpush1.bf16.msra.mxu0 %v3706_v61  ;;  %1833 = vmatpush1.bf16.msra.mxu1 %v3711_v62 }
 0x420   :  { %1793 = vmatprep.subr.bf16.mxu0 %v3718_v63  ;;  %1834 = vmatprep.subr.bf16.mxu1 %v3723_v34 }
 0x423   :  { %1794 = vmatpush1.bf16.msra.mxu0 %v3730_v35  ;;  %1835 = vmatpush1.bf16.msra.mxu1 %v3735_v36 }
 0x424   :  { %1795 = vmatprep.subr.bf16.mxu0 %v3742_v37  ;;  %1836 = vmatprep.subr.bf16.mxu1 %v3747_v38 }
 0x427   :  { %1796 = vmatpush1.bf16.msra.mxu0 %v3754_v39  ;;  %1837 = vmatpush1.bf16.msra.mxu1 %v3759_v40 }
 0x428   :  { %1797 = vmatprep.subr.bf16.mxu0 %v3766_v2  ;;  %1838 = vmatprep.subr.bf16.mxu1 %v3771_v3 }
 0x42b   :  { %1798 = vmatpush1.bf16.msra.mxu0 %v3778_v4  ;;  %1839 = vmatpush1.bf16.msra.mxu1 %v3783_v5 }
 0x42c   :  { %2095 = vmatprep.subr.bf16.mxu0 %v3600_v45  ;;  %2136 = vmatprep.subr.bf16.mxu1 %v3605_v46 }
 0x4ce   :  { %v1505_v12 = vpop.f32.mrf.mxu0  ;;  %v1546_v13 = vpop.f32.mrf.mxu1 }
 0x4cf   :  { %v1553_v15 = vadd.f32 %v2793_v33, %v1505_v12  ;;  %v1555_v30 = vadd.f32 %v2795_v27, %v1546_v13  ;;  %v2835_v27 = vld [vmem:[%s3999_s0 + $0xb8] sm:$0xff] }
 0x4d0   :  { %v1507_v16 = vpop.f32.mrf.mxu0  ;;  %v1548_v17 = vpop.f32.mrf.mxu1 }
 0x4d1   :  { %v2829_v18 = vmul.f32 -1.442695, %v1553_v15  ;;  %v1554_v19 = vadd.f32 %v2794_v14, %v1507_v16  ;;  %v1556_v26 = vadd.f32 %v2796_v25, %v1548_v17 }
 0x4d2   :  { %v1509_v20 = vpop.f32.mrf.mxu0  ;;  %v1550_v21 = vpop.f32.mrf.mxu1 }
 0x4d3   :  { %3159 = vpow2.f32 %v2829_v18  ;;  %v2830_v22 = vmul.f32 -1.442695, %v1554_v19  ;;  %v2831_v28 = vmul.f32 -1.442695, %v1556_v26  ;;  %v2833_v18 = vld [vmem:[%s3999_s0 + $0xa8] sm:$0xff] }
 0x4d4   :  { %v1510_v23 = vpop.f32.mrf.mxu0  ;;  %v1551_v24 = vpop.f32.mrf.mxu1 }
 0x4d5   :  { %3161 = vpow2.f32 %v2830_v22 }
 0x4d6   :  { %3163 = vpow2.f32 %v2831_v28 }
 0x4e0   :  { %v3160_v29 = vpop.eup %3159 }
 0x4e1   :  { %v1560_v31 = vadd.f32 1.0, %v3160_v29  ;;  %v2834_v29 = vld [vmem:[%s3999_s0 + $0xb0] sm:$0xff] }
 0x4e2   :  { %v3162_v32 = vpop.eup %3161 }
 0x4e3   :  { %3165 = vrcp.f32 %v1560_v31  ;;  %v1566_v41 = vadd.f32 1.0, %v3162_v32  ;;  %v3164_v42 = vpop.eup %3163 }
 0x4e4   :  { %3167 = vtanh.f32 %v1555_v30  ;;  %v1573_v9 = vadd.f32 1.0, %v3164_v42 }
 0x4e5   :  { %3169 = vrcp.f32 %v1566_v41 }
 0x4e6   :  { %3171 = vrcp.f32 %v1573_v9 }
 0x4f0   :  { %v3166_v43 = vpop.eup %3165 }
 0x4f1   :  { %v3168_v44 = vpop.eup %3167 }
 0x4f2   :  { %v3170_v8 = vpop.eup %3169  ;;  %v1577_v10 = vmul.f32 %v3168_v44, %v3166_v43 }
 0x4f3   :  { %v1576_v11 = vmul.f32 %v3170_v8, %v3804_v7  ;;  %v3172_v12 = vpop.eup %3171  ;;  %v2832_v7 = vld [vmem:[%s3999_s0 + $0xa0] sm:$0xff] }
 0x4f5   :  { %v3854_v33 = vadd.f32 %v1577_v10, %v1576_v11 }
 0x4f7   :  { %3173 = vtanh.f32 %v3854_v33 }
 0x504   :  { %v3174_v13 = vpop.eup %3173 }
 0x505   :  { %v1580_v14 = vmul.f32 %v3174_v13, %v3172_v12 }
 0x507   :  { %v1590_v15 = vpack.c.bf16 %v1580_v14, %v1580_v14 }
 0x509   :  { %1816 = vmatmul.mubr.bf16.vlgmr.msra.gmra.mxu0 %v1590_v15  ;;  %1857 = vmatmul.mubr.bf16.vlgmr.msra.gmra.mxu1 %v1590_v15 }
 0x50a   :  { %2096 = vmatpush1.bf16.msra.mxu0 %v3610_v47  ;;  %2137 = vmatpush1.bf16.msra.mxu1 %v3615_v48 }
 0x50b   :  { %2097 = vmatprep.subr.bf16.mxu0 %v3624_v0  ;;  %2138 = vmatprep.subr.bf16.mxu1 %v3629_v6 }
 0x50c   :  { %2127 = vmatprep.mubr.bf16.mxu0 %v3223_v1  ;;  %2168 = vmatprep.mubr.bf16.mxu1 %v3223_v1 }
 0x50e   :  { %2098 = vmatpush1.bf16.msra.mxu0 %v3634_v49  ;;  %2139 = vmatpush1.bf16.msra.mxu1 %v3639_v50 }
 0x50f   :  { %2099 = vmatprep.subr.bf16.mxu0 %v3648_v51  ;;  %2140 = vmatprep.subr.bf16.mxu1 %v3653_v52 }
 0x512   :  { %2100 = vmatpush1.bf16.msra.mxu0 %v3658_v53  ;;  %2141 = vmatpush1.bf16.msra.mxu1 %v3663_v54 }
 0x513   :  { %2101 = vmatprep.subr.bf16.mxu0 %v3672_v55  ;;  %2142 = vmatprep.subr.bf16.mxu1 %v3677_v56 }
 0x516   :  { %2102 = vmatpush1.bf16.msra.mxu0 %v3682_v57  ;;  %2143 = vmatpush1.bf16.msra.mxu1 %v3687_v58 }
 0x517   :  { %2103 = vmatprep.subr.bf16.mxu0 %v3694_v59  ;;  %2144 = vmatprep.subr.bf16.mxu1 %v3699_v60 }
 0x51a   :  { %2104 = vmatpush1.bf16.msra.mxu0 %v3706_v61  ;;  %2145 = vmatpush1.bf16.msra.mxu1 %v3711_v62 }
 0x51b   :  { %2105 = vmatprep.subr.bf16.mxu0 %v3718_v63  ;;  %2146 = vmatprep.subr.bf16.mxu1 %v3723_v34 }
 0x51e   :  { %2106 = vmatpush1.bf16.msra.mxu0 %v3730_v35  ;;  %2147 = vmatpush1.bf16.msra.mxu1 %v3735_v36 }
 0x51f   :  { %2107 = vmatprep.subr.bf16.mxu0 %v3742_v37  ;;  %2148 = vmatprep.subr.bf16.mxu1 %v3747_v38 }
 0x522   :  { %2108 = vmatpush1.bf16.msra.mxu0 %v3754_v39  ;;  %2149 = vmatpush1.bf16.msra.mxu1 %v3759_v40 }
 0x523   :  { %2109 = vmatprep.subr.bf16.mxu0 %v3766_v2  ;;  %2150 = vmatprep.subr.bf16.mxu1 %v3771_v3 }
 0x526   :  { %2110 = vmatpush1.bf16.msra.mxu0 %v3778_v4  ;;  %2151 = vmatpush1.bf16.msra.mxu1 %v3783_v5 }
 0x527   :  { %2407 = vmatprep.subr.bf16.mxu0 %v3600_v45  ;;  %2448 = vmatprep.subr.bf16.mxu1 %v3605_v46 }
 0x5c9   :  { %v1817_v16 = vpop.f32.mrf.mxu0  ;;  %v1858_v17 = vpop.f32.mrf.mxu1 }
 0x5ca   :  { %v1865_v19 = vadd.f32 %v2832_v7, %v1817_v16  ;;  %v1867_v32 = vadd.f32 %v2834_v29, %v1858_v17 }
 0x5cb   :  { %v1819_v20 = vpop.f32.mrf.mxu0  ;;  %v1860_v21 = vpop.f32.mrf.mxu1 }
 0x5cc   :  { %v2868_v22 = vmul.f32 -1.442695, %v1865_v19  ;;  %v1866_v23 = vadd.f32 %v2833_v18, %v1819_v20  ;;  %v1868_v28 = vadd.f32 %v2835_v27, %v1860_v21  ;;  %v3087_v21 = vld [vmem:[%s4000_s2 + $0x38] sm:$0xff]   ;;  %v3094_v27 = vld [vmem:[%s4000_s2] sm:$0xff]  }
 0x5cd   :  { %v1821_v24 = vpop.f32.mrf.mxu0  ;;  %v1862_v25 = vpop.f32.mrf.mxu1 }
 0x5ce   :  { %3175 = vpow2.f32 %v2868_v22  ;;  %v2869_v45 = vmul.f32 -1.442695, %v1866_v23  ;;  %v2870_v30 = vmul.f32 -1.442695, %v1868_v28  ;;  %v3225_v22 = vmov 0.0   ;;  %v3088_v23 = vld [vmem:[%s4000_s2 + $0x30] sm:$0xff]  }
 0x5cf   :  { %v1822_v46 = vpop.f32.mrf.mxu0  ;;  %v1863_v26 = vpop.f32.mrf.mxu1  ;;  %v3089_v24 = vld [vmem:[%s4000_s2 + $0x28] sm:$0xff]   ;;  %v3090_v25 = vld [vmem:[%s4000_s2 + $0x20] sm:$0xff]  }
 0x5d0   :  { %3177 = vpow2.f32 %v2869_v45  ;;  %v3091_v45 = vld [vmem:[%s4000_s2 + $0x18] sm:$0xff]   ;;  %v3092_v46 = vld [vmem:[%s4000_s2 + $0x10] sm:$0xff]   ;;  %v3093_v26 = vld [vmem:[%s4000_s2 + $0x8] sm:$0xff]  }
 0x5d1   :  { %3179 = vpow2.f32 %v2870_v30  ;;  %v2910_v28 = vld [vmem:[%s3999_s0 + $0xe0] sm:$0xff] }
 0x5db   :  { %v3176_v31 = vpop.eup %3175 }
 0x5dc   :  { %v1872_v41 = vadd.f32 1.0, %v3176_v31  ;;  %v2911_v31 = vld [vmem:[%s3999_s0 + $0xe8] sm:$0xff] }
 0x5dd   :  { %v3178_v42 = vpop.eup %3177 }
 0x5de   :  { %3181 = vrcp.f32 %v1872_v41  ;;  %v1878_v43 = vadd.f32 1.0, %v3178_v42  ;;  %v3180_v44 = vpop.eup %3179 }
 0x5df   :  { %3183 = vtanh.f32 %v1867_v32  ;;  %v1885_v11 = vadd.f32 1.0, %v3180_v44 }
 0x5e0   :  { %3185 = vrcp.f32 %v1878_v43 }
 0x5e1   :  { %3187 = vrcp.f32 %v1885_v11 }
 0x5eb   :  { %v3182_v8 = vpop.eup %3181 }
 0x5ec   :  { %v3184_v9 = vpop.eup %3183 }
 0x5ed   :  { %v3186_v10 = vpop.eup %3185  ;;  %v1889_v12 = vmul.f32 %v3184_v9, %v3182_v8 }
 0x5ee   :  { %v1888_v13 = vmul.f32 %v3186_v10, %v3854_v33  ;;  %v3188_v15 = vpop.eup %3187 }
 0x5f0   :  { %v3904_v14 = vadd.f32 %v1889_v12, %v1888_v13  ;;  %v2913_v13 = vld [vmem:[%s3999_s0 + $0xf8] sm:$0xff] }
 0x5f2   :  { %3189 = vtanh.f32 %v3904_v14 }
 0x5ff   :  { %v3190_v7 = vpop.eup %3189 }
 0x600   :  { %v1892_v16 = vmul.f32 %v3190_v7, %v3188_v15  ;;  %v2912_v15 = vld [vmem:[%s3999_s0 + $0xf0] sm:$0xff] }
 0x602   :  { %v1902_v17 = vpack.c.bf16 %v1892_v16, %v1892_v16 }
 0x604   :  { %2128 = vmatmul.mubr.bf16.vlgmr.msra.gmra.mxu0 %v1902_v17  ;;  %2169 = vmatmul.mubr.bf16.vlgmr.msra.gmra.mxu1 %v1902_v17 }
 0x605   :  { %2408 = vmatpush1.bf16.msra.mxu0 %v3610_v47  ;;  %2449 = vmatpush1.bf16.msra.mxu1 %v3615_v48 }
 0x606   :  { %2409 = vmatprep.subr.bf16.mxu0 %v3624_v0  ;;  %2450 = vmatprep.subr.bf16.mxu1 %v3629_v6  ;;  %v2872_v0 = vld [vmem:[%s3999_s0 + $0xc8] sm:$0xff] }
 0x607   :  { %2439 = vmatprep.mubr.bf16.mxu0 %v3223_v1  ;;  %2480 = vmatprep.mubr.bf16.mxu1 %v3223_v1  ;;  %v2871_v1 = vld [vmem:[%s3999_s0 + $0xc0] sm:$0xff] }
 0x609   :  { %2410 = vmatpush1.bf16.msra.mxu0 %v3634_v49  ;;  %2451 = vmatpush1.bf16.msra.mxu1 %v3639_v50 }
 0x60a   :  { %2411 = vmatprep.subr.bf16.mxu0 %v3648_v51  ;;  %2452 = vmatprep.subr.bf16.mxu1 %v3653_v52 }
 0x60d   :  { %2412 = vmatpush1.bf16.msra.mxu0 %v3658_v53  ;;  %2453 = vmatpush1.bf16.msra.mxu1 %v3663_v54 }
 0x60e   :  { %2413 = vmatprep.subr.bf16.mxu0 %v3672_v55  ;;  %2454 = vmatprep.subr.bf16.mxu1 %v3677_v56 }
 0x611   :  { %2414 = vmatpush1.bf16.msra.mxu0 %v3682_v57  ;;  %2455 = vmatpush1.bf16.msra.mxu1 %v3687_v58  ;;  %v2874_v58 = vld [vmem:[%s3999_s0 + $0xd8] sm:$0xff] }
 0x612   :  { %2415 = vmatprep.subr.bf16.mxu0 %v3694_v59  ;;  %2456 = vmatprep.subr.bf16.mxu1 %v3699_v60  ;;  %v2873_v60 = vld [vmem:[%s3999_s0 + $0xd0] sm:$0xff] }
 0x615   :  { %2416 = vmatpush1.bf16.msra.mxu0 %v3706_v61  ;;  %2457 = vmatpush1.bf16.msra.mxu1 %v3711_v62 }
 0x616   :  { %2417 = vmatprep.subr.bf16.mxu0 %v3718_v63  ;;  %2458 = vmatprep.subr.bf16.mxu1 %v3723_v34 }
 0x619   :  { %2418 = vmatpush1.bf16.msra.mxu0 %v3730_v35  ;;  %2459 = vmatpush1.bf16.msra.mxu1 %v3735_v36 }
 0x61a   :  { %2419 = vmatprep.subr.bf16.mxu0 %v3742_v37  ;;  %2460 = vmatprep.subr.bf16.mxu1 %v3747_v38 }
 0x61d   :  { %2420 = vmatpush1.bf16.msra.mxu0 %v3754_v39  ;;  %2461 = vmatpush1.bf16.msra.mxu1 %v3759_v40 }
 0x61e   :  { %2421 = vmatprep.subr.bf16.mxu0 %v3766_v2  ;;  %2462 = vmatprep.subr.bf16.mxu1 %v3771_v3 }
 0x621   :  { %2422 = vmatpush1.bf16.msra.mxu0 %v3778_v4  ;;  %2463 = vmatpush1.bf16.msra.mxu1 %v3783_v5 }
 0x622   :  { %2967 = vmatprep.subr.bf16.mxu0 %v3225_v22 }
 0x6c4   :  { %v2129_v47 = vpop.f32.mrf.mxu0  ;;  %v2170_v48 = vpop.f32.mrf.mxu1 }
 0x6c5   :  { %v2177_v6 = vadd.f32 %v2871_v1, %v2129_v47  ;;  %v2179_v63 = vadd.f32 %v2873_v60, %v2170_v48 }
 0x6c6   :  { %v2131_v49 = vpop.f32.mrf.mxu0  ;;  %v2172_v50 = vpop.f32.mrf.mxu1 }
 0x6c7   :  { %v2907_v51 = vmul.f32 -1.442695, %v2177_v6  ;;  %v2178_v52 = vadd.f32 %v2872_v0, %v2131_v49  ;;  %v2180_v59 = vadd.f32 %v2874_v58, %v2172_v50 }
 0x6c8   :  { %v2133_v53 = vpop.f32.mrf.mxu0  ;;  %v2174_v54 = vpop.f32.mrf.mxu1 }
 0x6c9   :  { %3191 = vpow2.f32 %v2907_v51  ;;  %v2908_v55 = vmul.f32 -1.442695, %v2178_v52  ;;  %v2909_v61 = vmul.f32 -1.442695, %v2180_v59  ;;  %v2949_v59 = vld [vmem:[%s4001_s3] ss:$0 sm:$0xff] }
 0x6ca   :  { %v2134_v56 = vpop.f32.mrf.mxu0  ;;  %v2175_v57 = vpop.f32.mrf.mxu1 }
 0x6cb   :  { %3193 = vpow2.f32 %v2908_v55 }
 0x6cc   :  { %3195 = vpow2.f32 %v2909_v61 }
 0x6d6   :  { %v3192_v62 = vpop.eup %3191 }
 0x6d7   :  { %v2184_v34 = vadd.f32 1.0, %v3192_v62 }
 0x6d8   :  { %v3194_v35 = vpop.eup %3193 }
 0x6d9   :  { %3197 = vrcp.f32 %v2184_v34  ;;  %v2190_v36 = vadd.f32 1.0, %v3194_v35  ;;  %v3196_v37 = vpop.eup %3195 }
 0x6da   :  { %3199 = vtanh.f32 %v2179_v63  ;;  %v2197_v2 = vadd.f32 1.0, %v3196_v37 }
 0x6db   :  { %3201 = vrcp.f32 %v2190_v36 }
 0x6dc   :  { %3203 = vrcp.f32 %v2197_v2 }
 0x6e6   :  { %v3198_v38 = vpop.eup %3197 }
 0x6e7   :  { %v3200_v39 = vpop.eup %3199 }
 0x6e8   :  { %v3202_v40 = vpop.eup %3201  ;;  %v2201_v3 = vmul.f32 %v3200_v39, %v3198_v38 }
 0x6e9   :  { %v2200_v4 = vmul.f32 %v3202_v40, %v3904_v14  ;;  %v3204_v33 = vpop.eup %3203 }
 0x6eb   :  { %v3952_v5 = vadd.f32 %v2201_v3, %v2200_v4 }
 0x6ed   :  { %3205 = vtanh.f32 %v3952_v5 }
 0x6fa   :  { %v3206_v18 = vpop.eup %3205 }
 0x6fb   :  { %v2204_v19 = vmul.f32 %v3206_v18, %v3204_v33 }
 0x6fd   :  { %v2214_v20 = vpack.c.bf16 %v2204_v19, %v2204_v19 }
 0x6ff   :  { %2440 = vmatmul.mubr.bf16.vlgmr.msra.gmra.mxu0 %v2214_v20  ;;  %2481 = vmatmul.mubr.bf16.vlgmr.msra.gmra.mxu1 %v2214_v20 }
 0x700   :  { %2968 = vmatpush3.bf16.msra.mxu0 %v3087_v21  ;;  %2983 = vmatprep.mubr.msk.bf16.mxu0 %vm3226_vm0, %v3225_v22 }
 0x701   :  { %2969 = vmatprep.subr.bf16.mxu0 %v3225_v22 }
 0x704   :  { %2970 = vmatpush3.bf16.msra.mxu0 %v3088_v23 }
 0x705   :  { %2971 = vmatprep.subr.bf16.mxu0 %v3225_v22 }
 0x708   :  { %2972 = vmatpush3.bf16.msra.mxu0 %v3089_v24 }
 0x709   :  { %2973 = vmatprep.subr.bf16.mxu0 %v3225_v22 }
 0x70c   :  { %2974 = vmatpush3.bf16.msra.mxu0 %v3090_v25 }
 0x70d   :  { %2975 = vmatprep.subr.bf16.mxu0 %v3225_v22 }
 0x710   :  { %2976 = vmatpush3.bf16.msra.mxu0 %v3091_v45 }
 0x711   :  { %2977 = vmatprep.subr.bf16.mxu0 %v3225_v22 }
 0x714   :  { %2978 = vmatpush3.bf16.msra.mxu0 %v3092_v46 }
 0x715   :  { %2979 = vmatprep.subr.bf16.mxu0 %v3225_v22 }
 0x718   :  { %2980 = vmatpush3.bf16.msra.mxu0 %v3093_v26 }
 0x719   :  { %2981 = vmatprep.subr.bf16.mxu0 %v3225_v22 }
 0x71c   :  { %2982 = vmatpush3.bf16.msra.mxu0 %v3094_v27 }
 0x7bf   :  { %v2441_v29 = vpop.f32.mrf.mxu0  ;;  %v2482_v30 = vpop.f32.mrf.mxu1 }
 0x7c0   :  { %v2489_v32 = vadd.f32 %v2910_v28, %v2441_v29  ;;  %v2491_v17 = vadd.f32 %v2912_v15, %v2482_v30 }
 0x7c1   :  { %v2443_v41 = vpop.f32.mrf.mxu0  ;;  %v2484_v42 = vpop.f32.mrf.mxu1 }
 0x7c2   :  { %v2946_v43 = vmul.f32 -1.442695, %v2489_v32  ;;  %v2490_v44 = vadd.f32 %v2911_v31, %v2443_v41  ;;  %v2492_v14 = vadd.f32 %v2913_v13, %v2484_v42 }
 0x7c3   :  { %v2445_v8 = vpop.f32.mrf.mxu0  ;;  %v2486_v9 = vpop.f32.mrf.mxu1 }
 0x7c4   :  { %3207 = vpow2.f32 %v2946_v43  ;;  %v2947_v10 = vmul.f32 -1.442695, %v2490_v44  ;;  %v2948_v7 = vmul.f32 -1.442695, %v2492_v14 }
 0x7c5   :  { %v2446_v11 = vpop.f32.mrf.mxu0  ;;  %v2487_v12 = vpop.f32.mrf.mxu1 }
 0x7c6   :  { %3209 = vpow2.f32 %v2947_v10 }
 0x7c7   :  { %3211 = vpow2.f32 %v2948_v7 }
 0x7d1   :  { %v3208_v16 = vpop.eup %3207 }
 0x7d2   :  { %v2496_v1 = vadd.f32 1.0, %v3208_v16 }
 0x7d3   :  { %v3210_v47 = vpop.eup %3209 }
 0x7d4   :  { %3213 = vrcp.f32 %v2496_v1  ;;  %v2502_v48 = vadd.f32 1.0, %v3210_v47  ;;  %v3212_v0 = vpop.eup %3211 }
 0x7d5   :  { %3215 = vtanh.f32 %v2491_v17  ;;  %v2509_v51 = vadd.f32 1.0, %v3212_v0 }
 0x7d6   :  { %3217 = vrcp.f32 %v2502_v48 }
 0x7d7   :  { %3219 = vrcp.f32 %v2509_v51 }
 0x7e1   :  { %v3214_v6 = vpop.eup %3213 }
 0x7e2   :  { %v3216_v49 = vpop.eup %3215 }
 0x7e3   :  { %v3218_v50 = vpop.eup %3217  ;;  %v2513_v52 = vmul.f32 %v3216_v49, %v3214_v6 }
 0x7e4   :  { %v2512_v53 = vmul.f32 %v3218_v50, %v3952_v5  ;;  %v3220_v55 = vpop.eup %3219 }
 0x7e6   :  { %v2514_v54 = vadd.f32 %v2513_v52, %v2512_v53 }
 0x7e8   :  { %3221 = vtanh.f32 %v2514_v54 }
 0x7f5   :  { %v3222_v56 = vpop.eup %3221 }
 0x7f6   :  { %v2516_v57 = vmul.f32 %v3222_v56, %v3220_v55 }
 0x7f8   :  { %v2523_v58 = vpack.c.bf16 %v2516_v57, %v2516_v57 }
 0x7fa   :  { %2984 = vmatmul.mubr.bf16.vlgmr.msra.gmra.mxu0 %v2523_v58 }
 0x8ba   :  { %v2629_v60 = vpop.f32.mrf.mxu0 }
 0x8bb   :  { %v2630_v61 = vadd.f32 %v2949_v59, %v2629_v60 }
 0x8bc   :  { %v2985_v62 = vpop.f32.mrf.mxu0 }
 0x8bd   :  { %2636 = vst.msk [vmem:[%s4002_s4] sm:$0xff] %vm2635_vm1, %v2630_v61 }
 0x8be   :  { %v2632_v63 = vpop.f32.mrf.mxu0 }
 0x8c0   :  { %v2986_v34 = vpop.f32.mrf.mxu0 }

</bundles_post_ra>
